<compile_context>
chip_gen: v5e
topology: v5e:2x2
jax: 0.10.0
libtpu: 0.0.40
codegen_flags: <defaults>
</compile_context>

<pallas_src>
import functools

import jax
import jax.numpy as jnp
from jax import lax
from jax.experimental import pallas as pl
from jax.experimental.pallas import tpu as pltpu

EPS = 1e-3


def _fused_kernel(x70_ref, x57_ref, g1_ref, b1_ref, w_ref, g2_ref, b2_ref,
                  out_ref, *, w_is_cin_cout):
    x70 = x70_ref[...]                       # (Cin, P)
    x57 = x57_ref[...]                       # (Cin, P)
    inv_p = 1.0 / float(x70.shape[1])        # static

    # --- BN1 (training-mode batch stats, biased var), two-pass, folded ---
    mean1 = jnp.sum(x70, axis=1, keepdims=True) * inv_p            # (Cin, 1)
    d1 = x70 - mean1
    var1 = jnp.sum(d1 * d1, axis=1, keepdims=True) * inv_p          # (Cin, 1)
    scale1 = g1_ref[...] * lax.rsqrt(var1 + EPS)                    # (Cin, 1)
    shift1 = b1_ref[...] - mean1 * scale1                           # (Cin, 1)

    # --- BN1 apply + residual add ---
    x72 = x70 * scale1 + shift1 + x57                               # (Cin, P)

    # --- Conv2d 1x1 (no bias) on the MXU ---
    if w_is_cin_cout:
        # w: (Cin, CoutBlk); contract Cin (dim 0 of both) -> (CoutBlk, P)
        x73 = lax.dot_general(w_ref[...], x72,
                              dimension_numbers=(((0,), (0,)), ((), ())),
                              preferred_element_type=jnp.float32)
    else:
        # w: (CoutBlk, Cin)
        x73 = jnp.dot(w_ref[...], x72, preferred_element_type=jnp.float32)

    # --- BN2 (batch stats), two-pass, folded to affine ---
    # Each grid block owns whole output channels, so per-channel stats over
    # all P positions are exact regardless of the Cout split.
    mean2 = jnp.sum(x73, axis=1, keepdims=True) * inv_p             # (CoutBlk, 1)
    d2 = x73 - mean2
    var2 = jnp.sum(d2 * d2, axis=1, keepdims=True) * inv_p
    scale2 = g2_ref[...] * lax.rsqrt(var2 + EPS)
    shift2 = b2_ref[...] - mean2 * scale2

    out_ref[...] = (x73 * scale2 + shift2).astype(out_ref.dtype)


def _num_grid_blocks():
    """2 blocks only on chips with 2 TensorCores (v7x); else 1."""
    try:
        kind = jax.devices()[0].device_kind.lower()
    except Exception:  # pragma: no cover - defensive
        return 1
    return 2 if "7" in kind else 1


def fused_bn_add_conv_bn(x70_nchw, x57_nchw, g1, b1, w_oi, g2, b2,
                         out_dtype=jnp.float32):
    """x70/x57: (1, Cin, H, W) f32; w_oi: (Cout, Cin) (1x1 conv weight squeezed).

    out_dtype=jnp.bfloat16 halves the dominant HBM writeback if the consumer
    tolerates it; default f32 matches the PyTorch module exactly.
    """
    N, Cin, H, W = x70_nchw.shape
    Cout = w_oi.shape[0]
    # Channel-major layout relies on N == 1 (NCHW -> (C, H*W) is a pure reshape).
    assert N == 1, "channel-major fast path requires N == 1"
    P = N * H * W

    x70_2d = x70_nchw.reshape(Cin, P)        # no data movement
    x57_2d = x57_nchw.reshape(Cin, P)
    g1_2d = g1.reshape(Cin, 1)
    b1_2d = b1.reshape(Cin, 1)
    g2_2d = g2.reshape(Cout, 1)
    b2_2d = b2.reshape(Cout, 1)

    n_blocks = _num_grid_blocks()
    if Cout % n_blocks != 0:
        n_blocks = 1
    tco = Cout // n_blocks

    # Advisory cost for XLA scheduling around this tiny custom call.
    itemsize_out = jnp.dtype(out_dtype).itemsize
    cost = pl.CostEstimate(
        flops=2 * Cout * Cin * P + 8 * (Cin + Cout) * P,
        transcendentals=Cin + Cout,
        bytes_accessed=(2 * Cin * P * 4            # x70 + x57
                        + Cout * Cin * 4           # conv weight
                        + 2 * (Cin + Cout) * 4     # BN params
                        + Cout * P * itemsize_out) # output
    )

    if n_blocks == 1:
        # Single TensorCore (v5e/v6e): one grid step, no redundant BN1/add.
        # Weight pre-transposed to (Cin, Cout): lane axis = dense Cout dim.
        w_arg = w_oi.T                                         # (Cin, Cout)
        kernel = functools.partial(_fused_kernel, w_is_cin_cout=True)
        w_spec = pl.BlockSpec((Cin, Cout), lambda i: (0, 0))
        g2_spec = pl.BlockSpec((Cout, 1), lambda i: (0, 0))
        b2_spec = pl.BlockSpec((Cout, 1), lambda i: (0, 0))
        out_spec = pl.BlockSpec((Cout, P), lambda i: (0, 0))
    else:
        # v7x: 2 TensorCores each take half of Cout (axis marked "parallel").
        # BN1/add is recomputed per core - cheaper than an HBM round-trip.
        # Weight stays (Cout, Cin) so the sliced dim (120) sits on sublanes.
        w_arg = w_oi                                           # (Cout, Cin)
        kernel = functools.partial(_fused_kernel, w_is_cin_cout=False)
        w_spec = pl.BlockSpec((tco, Cin), lambda i: (i, 0))
        g2_spec = pl.BlockSpec((tco, 1), lambda i: (i, 0))
        b2_spec = pl.BlockSpec((tco, 1), lambda i: (i, 0))
        out_spec = pl.BlockSpec((tco, P), lambda i: (i, 0))

    out_2d = pl.pallas_call(
        kernel,
        out_shape=jax.ShapeDtypeStruct((Cout, P), out_dtype),
        grid=(n_blocks,),
        in_specs=[
            pl.BlockSpec((Cin, P), lambda i: (0, 0)),          # x70
            pl.BlockSpec((Cin, P), lambda i: (0, 0)),          # x57
            pl.BlockSpec((Cin, 1), lambda i: (0, 0)),          # gamma1
            pl.BlockSpec((Cin, 1), lambda i: (0, 0)),          # beta1
            w_spec,                                            # conv weight
            g2_spec,                                           # gamma2
            b2_spec,                                           # beta2
        ],
        out_specs=out_spec,
        compiler_params=pltpu.CompilerParams(
            dimension_semantics=("parallel",),
        ),
        cost_estimate=cost,
    )(x70_2d, x57_2d, g1_2d, b1_2d, w_arg, g2_2d, b2_2d)

    return out_2d.reshape(N, Cout, H, W)     # no data movement


def _reference(x70_nchw, x57_nchw, g1, b1, w_oi, g2, b2):
    """Pure-JAX reference of the PyTorch forward (training-mode BN)."""
    def bn(x, g, b):
        mean = jnp.mean(x, axis=(0, 2, 3), keepdims=True)
        var = jnp.mean((x - mean) ** 2, axis=(0, 2, 3), keepdims=True)
        return (x - mean) * lax.rsqrt(var + EPS) * g[None, :, None, None] \
            + b[None, :, None, None]

    y1 = bn(x70_nchw, g1, b1)
    x72 = y1 + x57_nchw
    x73 = jnp.einsum("nchw,oc->nohw", x72, w_oi)   # 1x1 conv
    return bn(x73, g2, b2)


if __name__ == "__main__":
    key = jax.random.PRNGKey(0)
    k1, k2, k3, k4, k5, k6, k7 = jax.random.split(key, 7)

    N, Cin, H, W, Cout = 1, 40, 28, 28, 240

    x70 = jax.random.normal(k1, (N, Cin, H, W), dtype=jnp.float32)
    x57 = jax.random.normal(k2, (N, Cin, H, W), dtype=jnp.float32)

    # Deterministic synthetic parameters (not a checkpoint).
    gamma1 = 1.0 + 0.1 * jax.random.normal(k3, (Cin,), dtype=jnp.float32)
    beta1 = 0.1 * jax.random.normal(k4, (Cin,), dtype=jnp.float32)
    w_conv = 0.1 * jax.random.normal(k5, (Cout, Cin), dtype=jnp.float32)  # (Cout,Cin,1,1) squeezed
    gamma2 = 1.0 + 0.1 * jax.random.normal(k6, (Cout,), dtype=jnp.float32)
    beta2 = 0.1 * jax.random.normal(k7, (Cout,), dtype=jnp.float32)

    # TODO(synk): BN running-stat updates (momentum=0.01) are not reproduced;
    # this kernel implements the forward normalization only.
    out = fused_bn_add_conv_bn(x70, x57, gamma1, beta1, w_conv, gamma2, beta2)
    out = jax.block_until_ready(out)

    ref = _reference(x70, x57, gamma1, beta1, w_conv, gamma2, beta2)
    assert out.shape == (N, Cout, H, W)
    assert jnp.allclose(out, ref, atol=1e-3, rtol=1e-3), "mismatch vs reference"

    print("KERNEL_OK")
</pallas_src>

<mosaic_0001>
module attributes {stable_mosaic.version = 11 : i64} {
  func.func @_fused_kernel(%arg0: i32, %arg1: memref<40x784xf32, #tpu.memory_space<vmem>>, %arg2: memref<40x784xf32, #tpu.memory_space<vmem>>, %arg3: memref<40x1xf32, #tpu.memory_space<vmem>>, %arg4: memref<40x1xf32, #tpu.memory_space<vmem>>, %arg5: memref<40x240xf32, #tpu.memory_space<vmem>>, %arg6: memref<240x1xf32, #tpu.memory_space<vmem>>, %arg7: memref<240x1xf32, #tpu.memory_space<vmem>>, %arg8: memref<240x784xf32, #tpu.memory_space<vmem>>) attributes {dimension_semantics = [#tpu.dimension_semantics<parallel>], iteration_bounds = array<i64: 1>, scalar_prefetch = 0 : i64, scratch_operands = 0 : i64, tpu.core_type = #tpu.core_type<tc>, window_params = [{pipeline_mode = #tpu.pipeline_mode<synchronous>, transform_indices = @transform_0, window_bounds = array<i64: 40, 784>}, {pipeline_mode = #tpu.pipeline_mode<synchronous>, transform_indices = @transform_1, window_bounds = array<i64: 40, 784>}, {pipeline_mode = #tpu.pipeline_mode<synchronous>, transform_indices = @transform_2, window_bounds = array<i64: 40, 1>}, {pipeline_mode = #tpu.pipeline_mode<synchronous>, transform_indices = @transform_3, window_bounds = array<i64: 40, 1>}, {pipeline_mode = #tpu.pipeline_mode<synchronous>, transform_indices = @transform_4, window_bounds = array<i64: 40, 240>}, {pipeline_mode = #tpu.pipeline_mode<synchronous>, transform_indices = @transform_5, window_bounds = array<i64: 240, 1>}, {pipeline_mode = #tpu.pipeline_mode<synchronous>, transform_indices = @transform_6, window_bounds = array<i64: 240, 1>}, {pipeline_mode = #tpu.pipeline_mode<synchronous>, transform_indices = @transform_7, window_bounds = array<i64: 240, 784>}]} {
    %c0 = arith.constant 0 : index
    %c0_0 = arith.constant 0 : index
    %0 = vector.load %arg1[%c0, %c0_0] : memref<40x784xf32, #tpu.memory_space<vmem>>, vector<40x784xf32>
    %c0_1 = arith.constant 0 : index
    %c0_2 = arith.constant 0 : index
    %1 = vector.load %arg2[%c0_1, %c0_2] : memref<40x784xf32, #tpu.memory_space<vmem>>, vector<40x784xf32>
    %cst = arith.constant dense<0.000000e+00> : vector<40xf32>
    %2 = vector.multi_reduction <add>, %0, %cst [1] : vector<40x784xf32> to vector<40xf32>
    %3 = vector.shape_cast %2 : vector<40xf32> to vector<40x1xf32>
    %cst_3 = arith.constant 0.00127551018 : f32
    %4 = vector.broadcast %cst_3 : f32 to vector<40x1xf32>
    %5 = arith.mulf %3, %4 : vector<40x1xf32>
    %6 = vector.broadcast %5 : vector<40x1xf32> to vector<40x784xf32>
    %7 = arith.subf %0, %6 : vector<40x784xf32>
    %8 = arith.mulf %7, %7 : vector<40x784xf32>
    %cst_4 = arith.constant dense<0.000000e+00> : vector<40xf32>
    %9 = vector.multi_reduction <add>, %8, %cst_4 [1] : vector<40x784xf32> to vector<40xf32>
    %10 = vector.shape_cast %9 : vector<40xf32> to vector<40x1xf32>
    %cst_5 = arith.constant 0.00127551018 : f32
    %11 = vector.broadcast %cst_5 : f32 to vector<40x1xf32>
    %12 = arith.mulf %10, %11 : vector<40x1xf32>
    %c0_6 = arith.constant 0 : index
    %c0_7 = arith.constant 0 : index
    %13 = vector.load %arg3[%c0_6, %c0_7] : memref<40x1xf32, #tpu.memory_space<vmem>>, vector<40x1xf32>
    %cst_8 = arith.constant 1.000000e-03 : f32
    %14 = vector.broadcast %cst_8 : f32 to vector<40x1xf32>
    %15 = arith.addf %12, %14 : vector<40x1xf32>
    %16 = math.rsqrt %15 : vector<40x1xf32>
    %17 = arith.mulf %13, %16 : vector<40x1xf32>
    %c0_9 = arith.constant 0 : index
    %c0_10 = arith.constant 0 : index
    %18 = vector.load %arg4[%c0_9, %c0_10] : memref<40x1xf32, #tpu.memory_space<vmem>>, vector<40x1xf32>
    %19 = arith.mulf %5, %17 : vector<40x1xf32>
    %20 = arith.subf %18, %19 : vector<40x1xf32>
    %21 = vector.broadcast %17 : vector<40x1xf32> to vector<40x784xf32>
    %22 = arith.mulf %0, %21 : vector<40x784xf32>
    %23 = vector.broadcast %20 : vector<40x1xf32> to vector<40x784xf32>
    %24 = arith.addf %22, %23 : vector<40x784xf32>
    %25 = arith.addf %24, %1 : vector<40x784xf32>
    %c0_11 = arith.constant 0 : index
    %c0_12 = arith.constant 0 : index
    %26 = vector.load %arg5[%c0_11, %c0_12] : memref<40x240xf32, #tpu.memory_space<vmem>>, vector<40x240xf32>
    %cst_13 = arith.constant dense<0.000000e+00> : vector<240x784xf32>
    %27 = tpu.matmul %26, %25, %cst_13 {dimension_numbers = #tpu.dot_dimension_numbers<[0], [0], [1], [1], [0, 1, 1, 1], [], []>} : vector<40x240xf32>, vector<40x784xf32>, vector<240x784xf32> -> vector<240x784xf32>
    %cst_14 = arith.constant dense<0.000000e+00> : vector<240xf32>
    %28 = vector.multi_reduction <add>, %27, %cst_14 [1] : vector<240x784xf32> to vector<240xf32>
    %29 = vector.shape_cast %28 : vector<240xf32> to vector<240x1xf32>
    %cst_15 = arith.constant 0.00127551018 : f32
    %30 = vector.broadcast %cst_15 : f32 to vector<240x1xf32>
    %31 = arith.mulf %29, %30 : vector<240x1xf32>
    %32 = vector.broadcast %31 : vector<240x1xf32> to vector<240x784xf32>
    %33 = arith.subf %27, %32 : vector<240x784xf32>
    %34 = arith.mulf %33, %33 : vector<240x784xf32>
    %cst_16 = arith.constant dense<0.000000e+00> : vector<240xf32>
    %35 = vector.multi_reduction <add>, %34, %cst_16 [1] : vector<240x784xf32> to vector<240xf32>
    %36 = vector.shape_cast %35 : vector<240xf32> to vector<240x1xf32>
    %cst_17 = arith.constant 0.00127551018 : f32
    %37 = vector.broadcast %cst_17 : f32 to vector<240x1xf32>
    %38 = arith.mulf %36, %37 : vector<240x1xf32>
    %c0_18 = arith.constant 0 : index
    %c0_19 = arith.constant 0 : index
    %39 = vector.load %arg6[%c0_18, %c0_19] : memref<240x1xf32, #tpu.memory_space<vmem>>, vector<240x1xf32>
    %cst_20 = arith.constant 1.000000e-03 : f32
    %40 = vector.broadcast %cst_20 : f32 to vector<240x1xf32>
    %41 = arith.addf %38, %40 : vector<240x1xf32>
    %42 = math.rsqrt %41 : vector<240x1xf32>
    %43 = arith.mulf %39, %42 : vector<240x1xf32>
    %c0_21 = arith.constant 0 : index
    %c0_22 = arith.constant 0 : index
    %44 = vector.load %arg7[%c0_21, %c0_22] : memref<240x1xf32, #tpu.memory_space<vmem>>, vector<240x1xf32>
    %45 = arith.mulf %31, %43 : vector<240x1xf32>
    %46 = arith.subf %44, %45 : vector<240x1xf32>
    %47 = vector.broadcast %43 : vector<240x1xf32> to vector<240x784xf32>
    %48 = arith.mulf %27, %47 : vector<240x784xf32>
    %49 = vector.broadcast %46 : vector<240x1xf32> to vector<240x784xf32>
    %50 = arith.addf %48, %49 : vector<240x784xf32>
    %c0_23 = arith.constant 0 : index
    %c0_24 = arith.constant 0 : index
    %51 = vector.load %arg8[%c0_23, %c0_24] : memref<240x784xf32, #tpu.memory_space<vmem>>, vector<240x784xf32>
    tpu.vector_store %arg8[%c0_23, %c0_24], %50 {strides = array<i32>} : memref<240x784xf32, #tpu.memory_space<vmem>>, vector<240x784xf32>,
    return
  }
  func.func @transform_0(%arg0: i32) -> (i32, i32) {
    %c0_i32 = arith.constant 0 : i32
    %c0_i32_0 = arith.constant 0 : i32
    %c0_i32_1 = arith.constant 0 : i32
    return %c0_i32, %c0_i32_0 : i32, i32
  }
  func.func @transform_1(%arg0: i32) -> (i32, i32) {
    %c0_i32 = arith.constant 0 : i32
    %c0_i32_0 = arith.constant 0 : i32
    %c0_i32_1 = arith.constant 0 : i32
    return %c0_i32, %c0_i32_0 : i32, i32
  }
  func.func @transform_2(%arg0: i32) -> (i32, i32) {
    %c0_i32 = arith.constant 0 : i32
    %c0_i32_0 = arith.constant 0 : i32
    %c0_i32_1 = arith.constant 0 : i32
    return %c0_i32, %c0_i32_0 : i32, i32
  }
  func.func @transform_3(%arg0: i32) -> (i32, i32) {
    %c0_i32 = arith.constant 0 : i32
    %c0_i32_0 = arith.constant 0 : i32
    %c0_i32_1 = arith.constant 0 : i32
    return %c0_i32, %c0_i32_0 : i32, i32
  }
  func.func @transform_4(%arg0: i32) -> (i32, i32) {
    %c0_i32 = arith.constant 0 : i32
    %c0_i32_0 = arith.constant 0 : i32
    %c0_i32_1 = arith.constant 0 : i32
    return %c0_i32, %c0_i32_0 : i32, i32
  }
  func.func @transform_5(%arg0: i32) -> (i32, i32) {
    %c0_i32 = arith.constant 0 : i32
    %c0_i32_0 = arith.constant 0 : i32
    %c0_i32_1 = arith.constant 0 : i32
    return %c0_i32, %c0_i32_0 : i32, i32
  }
  func.func @transform_6(%arg0: i32) -> (i32, i32) {
    %c0_i32 = arith.constant 0 : i32
    %c0_i32_0 = arith.constant 0 : i32
    %c0_i32_1 = arith.constant 0 : i32
    return %c0_i32, %c0_i32_0 : i32, i32
  }
  func.func @transform_7(%arg0: i32) -> (i32, i32) {
    %c0_i32 = arith.constant 0 : i32
    %c0_i32_0 = arith.constant 0 : i32
    %c0_i32_1 = arith.constant 0 : i32
    return %c0_i32, %c0_i32_0 : i32, i32
  }
}

</mosaic_0001>

<bundles_post_ra>
// kernel: tpu_custom_call.1
= control target key start
LH: loop header
LB: loop body
LE: loop exit
PB: predicated region body
PF: predicated region fallthrough
CT: control target
= control target key end

     0   :  { %12 = vsyncpa [#allocation3], 0  ;;  %s4200_s27 = smov [#allocation2]   ;;  %s4201_s29 = smov 256   ;;  %s8149_s0 = inlined_call_operand.vmem [shape: f32[40,784], index: 0, kind: input, shape index: {}]   ;;  %s8150_s1 = inlined_call_operand.vmem [shape: f32[40,784], index: 1, kind: input, shape index: {}]   ;;  %s8151_s2 = inlined_call_operand.vmem [shape: f32[40,1], index: 2, kind: input, shape index: {}]   ;;  %s8152_s3 = inlined_call_operand.vmem [shape: f32[40,1], index: 3, kind: input, shape index: {}]   ;;  %s8153_s4 = inlined_call_operand.hbm [shape: f32[40,240], index: 4, kind: input, shape index: {}]   ;;  %s8154_s5 = inlined_call_operand.vmem [shape: f32[240,1], index: 5, kind: input, shape index: {}]   ;;  %s8155_s6 = inlined_call_operand.vmem [shape: f32[240,1], index: 6, kind: input, shape index: {}]   ;;  %s8156_s7 = inlined_call_operand.vmem [shape: f32[240,784], index: 7, kind: output, shape index: {}]  }
   0x1   :  { %s25_s26 = sshll.u32 %s8153_s4, 4  ;;  %s27_s28 = sshll.u32 %s4200_s27, 4  ;;  %s26_s26 = int_to_ptr.hbm [resolvable:$true] %s25_s26  ;;  %s28_s28 = int_to_ptr.vmem [resolvable:$true] %s27_s28 }
   0x2   :  { %s4202_s30 = smov 16  }
   0x3   :  { %33 = dma.hbm_to_vmem [thread:$0]  %s26_s26, 1280, %s28_s28, [#allocation3], %s4201_s29, %s4201_s29, %s4202_s30  }
   0x4   :  { %4198 = dma.done.wait [#allocation3], 1280  }
   0x5   :  { %4199 = vsyncadd [#allocation3], 4294966016  ;;  %v4250_v0 = vld [vmem:[%s8149_s0 + $0xe0] sm:$0xff]  ;;  %v4255_v1 = vld [vmem:[%s8149_s0 + $0xe8] sm:$0xff]  ;;  %vm117_vm0 = vcmask 130048  }
   0x6   :  { %v4260_v2 = vld [vmem:[%s8149_s0 + $0xf0] sm:$0xff]  ;;  %v149_v3 = vadd.f32 %v4255_v1, %v4250_v0  ;;  %v4267_v4 = vld [vmem:[%s8149_s0 + $0xf8] sm:$0xff]  ;;  %v4282_v7 = vld [vmem:[%s8149_s0 + $0x100] sm:$0xff] }
   0x7   :  { %v4272_v5 = vld [vmem:[%s8149_s0 + $0x70] sm:$0xff]  ;;  %v4277_v6 = vld [vmem:[%s8149_s0 + $0x78] sm:$0xff]  ;;  %8500 = vst [vmem:[#allocation5_spill] sm:$0xff] %v4282_v7  ;;  %v4288_v9 = vld [vmem:[%s8149_s0 + $0x80] sm:$0xff] }
   0x8   :  { %v150_v8 = vadd.f32 %v149_v3, %v4260_v2  ;;  %v131_v10 = vadd.f32 %v4277_v6, %v4272_v5  ;;  %v4295_v11 = vld [vmem:[%s8149_s0 + $0x108] sm:$0xff]  ;;  %v4310_v14 = vld [vmem:[%s8149_s0 + $0x110] sm:$0xff]  ;;  %v4322_v18 = vld [vmem:[%s8149_s0 + $0xb8] sm:$0xff] }
   0x9   :  { %v4300_v12 = vld [vmem:[%s8149_s0 + $0x88] sm:$0xff]  ;;  %8501 = vst [vmem:[#allocation6_spill] sm:$0xff] %v4310_v14  ;;  %v4317_v17 = vld [vmem:[%s8149_s0 + $0xb0] sm:$0xff]  ;;  %v4332_v20 = vld [vmem:[%s8149_s0 + $0xa0] sm:$0xff]  ;;  %v154_v28 = vsel %vm117_vm0, %v4310_v14, 0.0 }
   0xa   :  { %v4305_v13 = vld [vmem:[%s8149_s0 + $0xa8] sm:$0xff]  ;;  %v151_v15 = vadd.f32 %v150_v8, %v4267_v4  ;;  %v132_v16 = vadd.f32 %v131_v10, %v4288_v9  ;;  %v4327_v19 = vld [vmem:[%s8149_s0 + $0x90] sm:$0xff]  ;;  %v4337_v21 = vld [vmem:[%s8149_s0 + $0xc0] sm:$0xff]  ;;  %v136_v38 = vsel %vm117_vm0, %v4332_v20, 0.0 }
   0xb   :  { %v140_v22 = vadd.f32 %v4317_v17, %v4305_v13  ;;  %v4346_v25 = vld [vmem:[%s8149_s0 + $0x38] sm:$0xff]  ;;  %v4351_v26 = vld [vmem:[%s8149_s0 + $0x40] sm:$0xff]  ;;  %v4356_v27 = vld [vmem:[%s8149_s0 + $0x48] sm:$0xff] }
   0xc   :  { %v152_v23 = vadd.f32 %v151_v15, %v4282_v7  ;;  %v133_v24 = vadd.f32 %v132_v16, %v4300_v12  ;;  %v4363_v29 = vld [vmem:[%s8149_s0 + $0x98] sm:$0xff]  ;;  %v4368_v30 = vld [vmem:[%s8149_s0 + $0xc8] sm:$0xff]  ;;  %v122_v32 = vadd.f32 %v4351_v26, %v4346_v25  ;;  %v4378_v35 = vld [vmem:[%s8149_s0 + $0x50] sm:$0xff] }
   0xd   :  { %v141_v31 = vadd.f32 %v140_v22, %v4322_v18  ;;  %v4383_v36 = vld [vmem:[%s8149_s0] sm:$0xff]  ;;  %v4388_v37 = vld [vmem:[%s8149_s0 + $0x8] sm:$0xff]  ;;  %v4395_v39 = vld [vmem:[%s8149_s0 + $0xd0] sm:$0xff] }
   0xe   :  { %v153_v33 = vadd.f32 %v152_v23, %v4295_v11  ;;  %v134_v34 = vadd.f32 %v133_v24, %v4327_v19  ;;  %v123_v41 = vadd.f32 %v122_v32, %v4356_v27  ;;  %v4402_v42 = vld [vmem:[%s8149_s0 + $0x10] sm:$0xff]  ;;  %v112_v43 = vadd.f32 %v4388_v37, %v4383_v36  ;;  %v4410_v46 = vld [vmem:[%s8149_s0 + $0xd8] sm:$0xff]  ;;  %v4428_v53 = vld [vmem:[%s8149_s0 + $0x60] sm:$0xff] }
   0xf   :  { %v142_v40 = vadd.f32 %v141_v31, %v4337_v21  ;;  %v4415_v47 = vld [vmem:[%s8149_s0 + $0x58] sm:$0xff]  ;;  %v4433_v54 = vld [vmem:[%s8149_s0 + $0x68] sm:$0xff]  ;;  %v4438_v55 = vld [vmem:[%s8149_s0 + $0x20] sm:$0xff]  ;;  %v145_v57 = vsel %vm117_vm0, %v4410_v46, 0.0 }
  0x10   :  { %v155_v44 = vadd.f32 %v154_v28, %v153_v33  ;;  %v135_v45 = vadd.f32 %v134_v34, %v4363_v29  ;;  %v4420_v48 = vld [vmem:[%s8149_s0 + $0x18] sm:$0xff]  ;;  %v124_v50 = vadd.f32 %v123_v41, %v4378_v35  ;;  %v113_v51 = vadd.f32 %v112_v43, %v4402_v42  ;;  %v4447_v59 = vld [vmem:[%s8149_s0 + $0x30] sm:$0xff]  ;;  %v4453_v61 = vld [vmem:[%s8149_s0 + $0x28] sm:$0xff] }
  0x11   :  { %v143_v49 = vadd.f32 %v142_v40, %v4368_v30  ;;  %v127_v63 = vsel %vm117_vm0, %v4433_v54, 0.0  ;;  %v118_v10 = vsel %vm117_vm0, %v4447_v59, 0.0 }
  0x12   :  { %156 = vadd.xlane.f32.xlu0 %v155_v44  ;;  %v137_v52 = vadd.f32 %v136_v38, %v135_v45  ;;  %v125_v58 = vadd.f32 %v124_v50, %v4415_v47  ;;  %v114_v60 = vadd.f32 %v113_v51, %v4420_v48 }
  0x13   :  { %v144_v56 = vadd.f32 %v143_v49, %v4395_v39 }
  0x14   :  { %138 = vadd.xlane.f32.xlu1 %v137_v52  ;;  %v126_v62 = vadd.f32 %v125_v58, %v4428_v53  ;;  %v115_v3 = vadd.f32 %v114_v60, %v4438_v55 }
  0x15   :  { %v146_v8 = vadd.f32 %v145_v57, %v144_v56 }
  0x16   :  { %v116_v15 = vadd.f32 %v115_v3, %v4453_v61  ;;  %v128_v16 = vadd.f32 %v127_v63, %v126_v62 }
  0x18   :  { %v119_v22 = vadd.f32 %v118_v10, %v116_v15 }
  0x1a   :  { %147 = vadd.xlane.f32.xlu0 %v146_v8  ;;  %120 = vadd.xlane.f32.xlu2 %v119_v22 }
  0x1c   :  { %129 = vadd.xlane.f32.xlu1 %v128_v16 }
  0x85   :  { %v157_v23 = vpop.xlane.xlu0 %156 }
  0x86   :  { %v4462_v24 = vmul.f32 0.0012755102, %v157_v23 }
  0x87   :  { %v139_v28 = vpop.xlane.xlu1 %138 }
  0x88   :  { %v4464_v31 = vmul.f32 0.0012755102, %v139_v28  ;;  %v191_v32 = vsub.f32 %v4250_v0, %v4462_v24  ;;  %v192_v33 = vsub.f32 %v4255_v1, %v4462_v24  ;;  %v193_v34 = vsub.f32 %v4260_v2, %v4462_v24 }
  0x89   :  { %v194_v38 = vsub.f32 %v4267_v4, %v4462_v24  ;;  %v197_v50 = vsub.f32 %v4310_v14, %v4462_v24  ;;  %v195_v62 = vsub.f32 %v4282_v7, %v4462_v24  ;;  %v196_v63 = vsub.f32 %v4295_v11, %v4462_v24 }
  0x8a   :  { %v177_v40 = vsub.f32 %v4272_v5, %v4464_v31  ;;  %v178_v41 = vsub.f32 %v4277_v6, %v4464_v31  ;;  %v179_v43 = vsub.f32 %v4288_v9, %v4464_v31  ;;  %v180_v44 = vsub.f32 %v4300_v12, %v4464_v31 }
  0x8b   :  { %v181_v45 = vsub.f32 %v4327_v19, %v4464_v31  ;;  %v182_v49 = vsub.f32 %v4363_v29, %v4464_v31  ;;  %v183_v4 = vsub.f32 %v4332_v20, %v4464_v31  ;;  %v226_v57 = vmul.f32 %v191_v32, %v191_v32 }
  0x8c   :  { %v212_v51 = vmul.f32 %v177_v40, %v177_v40  ;;  %v213_v52 = vmul.f32 %v178_v41, %v178_v41  ;;  %v214_v56 = vmul.f32 %v179_v43, %v179_v43  ;;  %v227_v3 = vmul.f32 %v192_v33, %v192_v33 }
  0x8d   :  { %v148_v58 = vpop.xlane.xlu0 %147  ;;  %v218_v60 = vmul.f32 %v183_v4, %v183_v4  ;;  %v121_v10 = vpop.xlane.xlu2 %120  ;;  %v215_v15 = vmul.f32 %v180_v44, %v180_v44  ;;  %v216_v16 = vmul.f32 %v181_v45, %v181_v45  ;;  %v217_v40 = vmul.f32 %v182_v49, %v182_v49 }
  0x8e   :  { %v4494_v8 = vmul.f32 0.0012755102, %v148_v58  ;;  %v251_v22 = vadd.f32 %v213_v52, %v212_v51  ;;  %v4496_v28 = vmul.f32 0.0012755102, %v121_v10  ;;  %v228_v32 = vmul.f32 %v193_v34, %v193_v34 }
  0x8f   :  { %v130_v23 = vpop.xlane.xlu1 %129  ;;  %v229_v41 = vmul.f32 %v194_v38, %v194_v38  ;;  %v256_v4 = vsel %vm117_vm0, %v218_v60, 0.0  ;;  %v232_v14 = vmul.f32 %v197_v50, %v197_v50  ;;  %v269_v7 = vadd.f32 %v227_v3, %v226_v57 }
  0x90   :  { %v252_v43 = vadd.f32 %v251_v22, %v214_v56  ;;  %v184_v33 = vsub.f32 %v4305_v13, %v4494_v8  ;;  %v185_v58 = vsub.f32 %v4317_v17, %v4494_v8  ;;  %v186_v44 = vsub.f32 %v4322_v18, %v4494_v8 }
  0x91   :  { %v187_v45 = vsub.f32 %v4337_v21, %v4494_v8  ;;  %v4507_v49 = vmul.f32 0.0012755102, %v130_v23  ;;  %v230_v38 = vmul.f32 %v195_v62, %v195_v62  ;;  %v270_v51 = vadd.f32 %v269_v7, %v228_v32 }
  0x92   :  { %v253_v34 = vadd.f32 %v252_v43, %v215_v15  ;;  %v231_v52 = vmul.f32 %v196_v63, %v196_v63  ;;  %v190_v50 = vsub.f32 %v4410_v46, %v4494_v8  ;;  %v219_v56 = vmul.f32 %v184_v33, %v184_v33 }
  0x93   :  { %v220_v57 = vmul.f32 %v185_v58, %v185_v58  ;;  %v271_v3 = vadd.f32 %v270_v51, %v229_v41  ;;  %v274_v10 = vsel %vm117_vm0, %v232_v14, 0.0  ;;  %v188_v22 = vsub.f32 %v4368_v30, %v4494_v8 }
  0x94   :  { %v254_v60 = vadd.f32 %v253_v34, %v216_v16  ;;  %v189_v21 = vsub.f32 %v4395_v39, %v4494_v8  ;;  %v221_v23 = vmul.f32 %v186_v44, %v186_v44  ;;  %v222_v15 = vmul.f32 %v187_v45, %v187_v45 }
  0x95   :  { %v260_v62 = vadd.f32 %v220_v57, %v219_v56  ;;  %v272_v63 = vadd.f32 %v271_v3, %v230_v38  ;;  %v170_v32 = vsub.f32 %v4346_v25, %v4507_v49  ;;  %v171_v16 = vsub.f32 %v4351_v26, %v4507_v49 }
  0x96   :  { %v255_v7 = vadd.f32 %v254_v60, %v217_v40  ;;  %v225_v41 = vmul.f32 %v190_v50, %v190_v50  ;;  %v172_v14 = vsub.f32 %v4356_v27, %v4507_v49  ;;  %v173_v33 = vsub.f32 %v4378_v35, %v4507_v49 }
  0x97   :  { %v261_v43 = vadd.f32 %v260_v62, %v221_v23  ;;  %v273_v44 = vadd.f32 %v272_v63, %v231_v52  ;;  %v223_v45 = vmul.f32 %v188_v22, %v188_v22  ;;  %v174_v40 = vsub.f32 %v4415_v47, %v4507_v49 }
  0x98   :  { %v257_v58 = vadd.f32 %v256_v4, %v255_v7  ;;  %v175_v38 = vsub.f32 %v4428_v53, %v4507_v49  ;;  %v205_v51 = vmul.f32 %v170_v32, %v170_v32  ;;  %v206_v56 = vmul.f32 %v171_v16, %v171_v16 }
  0x99   :  { %v262_v34 = vadd.f32 %v261_v43, %v222_v15  ;;  %v275_v50 = vadd.f32 %v274_v10, %v273_v44  ;;  %v224_v57 = vmul.f32 %v189_v21, %v189_v21  ;;  %v176_v60 = vsub.f32 %v4433_v54, %v4507_v49 }
  0x9a   :  { %258 = vadd.xlane.f32.xlu1 %v257_v58  ;;  %v207_v3 = vmul.f32 %v172_v14, %v172_v14  ;;  %v265_v4 = vsel %vm117_vm0, %v225_v41, 0.0  ;;  %v208_v52 = vmul.f32 %v173_v33, %v173_v33  ;;  %v242_v22 = vadd.f32 %v206_v56, %v205_v51 }
  0x9b   :  { %v263_v35 = vadd.f32 %v262_v34, %v223_v45  ;;  %276 = vadd.xlane.f32.xlu2 %v275_v50  ;;  %v163_v23 = vsub.f32 %v4383_v36, %v4496_v28  ;;  %v164_v15 = vsub.f32 %v4388_v37, %v4496_v28  ;;  %v165_v10 = vsub.f32 %v4402_v42, %v4496_v28 }
  0x9c   :  { %v166_v21 = vsub.f32 %v4420_v48, %v4496_v28  ;;  %v209_v7 = vmul.f32 %v174_v40, %v174_v40  ;;  %v210_v63 = vmul.f32 %v175_v38, %v175_v38  ;;  %v243_v32 = vadd.f32 %v242_v22, %v207_v3 }
  0x9d   :  { %v264_v62 = vadd.f32 %v263_v35, %v224_v57  ;;  %v211_v16 = vmul.f32 %v176_v60, %v176_v60  ;;  %v167_v41 = vsub.f32 %v4438_v55, %v4496_v28  ;;  %v198_v43 = vmul.f32 %v163_v23, %v163_v23 }
  0x9e   :  { %v199_v14 = vmul.f32 %v164_v15, %v164_v15  ;;  %v244_v58 = vadd.f32 %v243_v32, %v208_v52  ;;  %v169_v44 = vsub.f32 %v4447_v59, %v4496_v28  ;;  %v200_v45 = vmul.f32 %v165_v10, %v165_v10 }
  0x9f   :  { %v266_v33 = vadd.f32 %v265_v4, %v264_v62  ;;  %v168_v34 = vsub.f32 %v4453_v61, %v4496_v28  ;;  %v201_v48 = vmul.f32 %v166_v21, %v166_v21  ;;  %v247_v38 = vsel %vm117_vm0, %v211_v16, 0.0 }
  0xa0   :  { %v233_v51 = vadd.f32 %v199_v14, %v198_v43  ;;  %v245_v40 = vadd.f32 %v244_v58, %v209_v7  ;;  %v202_v56 = vmul.f32 %v167_v41, %v167_v41  ;;  %v204_v60 = vmul.f32 %v169_v44, %v169_v44 }
  0xa1   :  { %267 = vadd.xlane.f32.xlu0 %v266_v33  ;;  %v203_v3 = vmul.f32 %v168_v34, %v168_v34  ;;  %v4203_v10 = vmov 0  }
  0xa2   :  { %v234_v50 = vadd.f32 %v233_v51, %v200_v45  ;;  %v246_v57 = vadd.f32 %v245_v40, %v210_v63  ;;  %v238_v22 = vsel %vm117_vm0, %v204_v60, 0.0  ;;  %4097 = vset.pattern.permute.xlu1 %v4203_v10  ;;  %4099 = vset.pattern.permute.xlu0 %v4203_v10 }
  0xa3   :  { %4098 = vset.pattern.permute.xlu2 %v4203_v10 }
  0xa4   :  { %v235_v35 = vadd.f32 %v234_v50, %v201_v48  ;;  %v248_v4 = vadd.f32 %v247_v38, %v246_v57 }
  0xa6   :  { %v236_v52 = vadd.f32 %v235_v35, %v202_v56  ;;  %249 = vadd.xlane.f32.xlu2 %v248_v4 }
  0xa8   :  { %v237_v23 = vadd.f32 %v236_v52, %v203_v3 }
  0xaa   :  { %v239_v15 = vadd.f32 %v238_v22, %v237_v23  ;;  %v287_v23 = vld [vmem:[%s8151_s2 + $0x20] sm:$0xff] }
  0xac   :  { %240 = vadd.xlane.f32.xlu0 %v239_v15 }
 0x10d   :  { %v259_v21 = vpop.xlane.xlu1 %258 }
 0x10e   :  { %v280_v62 = vmul.f32 0.0012755102, %v259_v21  ;;  %v277_v7 = vpop.xlane.xlu2 %276 }
 0x10f   :  { %v282_v63 = vmul.f32 0.0012755102, %v277_v7 }
 0x110   :  { %v290_v32 = vadd.f32 0.001, %v280_v62 }
 0x111   :  { %v292_v16 = vadd.f32 0.001, %v282_v63 }
 0x112   :  { %4100 = vrsqrt.f32 %v290_v32  ;;  %vm319_vm5 = vweird.f32 %v290_v32 }
 0x113   :  { %4102 = vrsqrt.f32 %v292_v16  ;;  %vm339_vm2 = vweird.f32 %v292_v16 }
 0x114   :  { %v268_v41 = vpop.xlane.xlu0 %267 }
 0x115   :  { %v281_v43 = vmul.f32 0.0012755102, %v268_v41 }
 0x117   :  { %v291_v14 = vadd.f32 0.001, %v281_v43 }
 0x118   :  { %v4547_v33 = vpop.eup %4100 }
 0x119   :  { %v314_v58 = vmul.f32 %v4547_v33, %v290_v32  ;;  %4104 = vrsqrt.f32 %v291_v14  ;;  %v4103_v44 = vpop.eup %4102  ;;  %v250_v45 = vpop.xlane.xlu2 %249  ;;  %vm329_vm6 = vweird.f32 %v291_v14  ;;  %vm320_vm7 = vweird.f32 %v4547_v33 }
 0x11a   :  { %v334_v34 = vmul.f32 %v4103_v44, %v292_v16  ;;  %v279_v48 = vmul.f32 0.0012755102, %v250_v45  ;;  %vm340_vm1 = vweird.f32 %v4103_v44  ;;  %v352_v16 = vld [vmem:[%s8152_s3 + $0x20] sm:$0xff]  ;;  %vm321_vm9 = vmor %vm319_vm5, %vm320_vm7 }
 0x11b   :  { %v315_v51 = vmul.f32 %v4547_v33, %v314_v58  ;;  %vm341_vm3 = vmor %vm339_vm2, %vm340_vm1  ;;  %vm592_vm1 = vcmask 326656  }
 0x11c   :  { %v335_v40 = vmul.f32 %v4103_v44, %v334_v34  ;;  %v4551_v38 = vadd.f32 0.001, %v279_v48 }
 0x11d   :  { %v316_v60 = vmul.f32 0.5, %v315_v51 }
 0x11e   :  { %v336_v50 = vmul.f32 0.5, %v335_v40  ;;  %4106 = vrsqrt.f32 %v4551_v38  ;;  %vm309_vm10 = vweird.f32 %v4551_v38 }
 0x11f   :  { %v4105_v56 = vpop.eup %4104  ;;  %v241_v57 = vpop.xlane.xlu0 %240  ;;  %v317_v10 = vsub.f32 1.5, %v316_v60 }
 0x120   :  { %v324_v3 = vmul.f32 %v4105_v56, %v291_v14  ;;  %v278_v35 = vmul.f32 0.0012755102, %v241_v57  ;;  %v337_v4 = vsub.f32 1.5, %v336_v50  ;;  %vm330_vm4 = vweird.f32 %v4105_v56 }
 0x121   :  { %v318_v48 = vmul.f32 %v4547_v33, %v317_v10  ;;  %vm331_vm8 = vmor %vm329_vm6, %vm330_vm4 }
 0x122   :  { %v325_v52 = vmul.f32 %v4105_v56, %v324_v3  ;;  %v288_v22 = vadd.f32 0.001, %v278_v35  ;;  %v338_v15 = vmul.f32 %v4103_v44, %v337_v4  ;;  %v285_v35 = vld [vmem:[%s8151_s2 + $0x10] sm:$0xff] }
 0x123   :  { %v322_v4 = vsel %vm321_vm9, %v4547_v33, %v318_v48  ;;  %v283_v33 = vld [vmem:[%s8151_s2] sm:$0xff] }
 0x124   :  { %v326_v21 = vmul.f32 0.5, %v325_v52  ;;  %4108 = vrsqrt.f32 %v288_v22  ;;  %v4107_v62 = vpop.eup %4106  ;;  %v342_v7 = vsel %vm341_vm3, %v4103_v44, %v338_v15  ;;  %v286_v44 = vld [vmem:[%s8151_s2 + $0x18] sm:$0xff]  ;;  %v345_v32 = vmul.f32 %v322_v4, %v285_v35  ;;  %v526_v35 = vld [vmem:[#allocation2 + $0x40] sm:$0xff] }
 0x125   :  { %v304_v41 = vmul.f32 %v4107_v62, %v4551_v38  ;;  %v347_v43 = vmul.f32 %v342_v7, %v287_v23  ;;  %vm310_vm11 = vweird.f32 %v4107_v62  ;;  %vm299_vm12 = vweird.f32 %v288_v22  ;;  %v284_v38 = vld [vmem:[%s8151_s2 + $0x8] sm:$0xff] }
 0x126   :  { %v327_v63 = vsub.f32 1.5, %v326_v21  ;;  %vm311_vm14 = vmor %vm309_vm10, %vm310_vm11 }
 0x127   :  { %v305_v58 = vmul.f32 %v4107_v62, %v304_v41  ;;  %385 = vperm.xlu1 %4097, %v347_v43   ;;  %v357_v45 = vmul.f32 %v347_v43, %v4462_v24  ;;  %v351_v24 = vld [vmem:[%s8152_s3 + $0x18] sm:$0xff] }
 0x128   :  { %v328_v34 = vmul.f32 %v4105_v56, %v327_v63  ;;  %v355_v63 = vmul.f32 %v345_v32, %v4464_v31  ;;  %v348_v31 = vld [vmem:[%s8152_s3] sm:$0xff] }
 0x129   :  { %v306_v14 = vmul.f32 0.5, %v305_v58  ;;  %v362_v40 = vsub.f32 %v352_v16, %v357_v45 }
 0x12a   :  { %v4109_v51 = vpop.eup %4108  ;;  %v332_v50 = vsel %vm331_vm8, %v4105_v56, %v328_v34 }
 0x12b   :  { %v294_v57 = vmul.f32 %v4109_v51, %v288_v22  ;;  %v346_v60 = vmul.f32 %v332_v50, %v286_v44  ;;  %v307_v3 = vsub.f32 1.5, %v306_v14  ;;  %445 = vperm.xlu0 %4099, %v362_v40   ;;  %vm300_vm13 = vweird.f32 %v4109_v51  ;;  %v521_v14 = vld [vmem:[#allocation2 + $0x18] sm:$0xff]  ;;  %v518_v40 = vld [vmem:[#allocation2] sm:$0xff]  ;;  %v520_v50 = vld [vmem:[#allocation2 + $0x10] sm:$0xff] }
 0x12c   :  { %vm301_vm15 = vmor %vm299_vm12, %vm300_vm13 }
 0x12d   :  { %v295_v52 = vmul.f32 %v4109_v51, %v294_v57  ;;  %380 = vperm.xlu2 %4098, %v346_v60   ;;  %v356_v56 = vmul.f32 %v346_v60, %v4494_v8  ;;  %v308_v10 = vmul.f32 %v4107_v62, %v307_v3  ;;  %v350_v8 = vld [vmem:[%s8152_s3 + $0x10] sm:$0xff]  ;;  %v522_v57 = vld [vmem:[#allocation2 + $0x20] sm:$0xff]  ;;  %v527_v60 = vld [vmem:[#allocation2 + $0x48] sm:$0xff] }
 0x12e   :  { %v360_v16 = vsub.f32 %v350_v8, %v355_v63  ;;  %v524_v3 = vld [vmem:[#allocation2 + $0x30] sm:$0xff] }
 0x12f   :  { %v296_v23 = vmul.f32 0.5, %v295_v52  ;;  %v361_v15 = vsub.f32 %v351_v24, %v356_v56  ;;  %v312_v22 = vsel %vm311_vm14, %v4107_v62, %v308_v10  ;;  %v349_v62 = vld [vmem:[%s8152_s3 + $0x8] sm:$0xff]  ;;  %v105_v10 = vld [vmem:[%s8150_s1 + $0xe0] sm:$0xff] }
 0x130   :  { %v344_v58 = vmul.f32 %v312_v22, %v284_v38 }
 0x131   :  { %v297_v21 = vsub.f32 1.5, %v296_v23  ;;  %440 = vperm.xlu1 %4097, %v361_v15  }
 0x132   :  { %v354_v34 = vmul.f32 %v344_v58, %v4507_v49  ;;  %v525_v49 = vld [vmem:[#allocation2 + $0x38] sm:$0xff] }
 0x133   :  { %v298_v7 = vmul.f32 %v4109_v51, %v297_v21  ;;  %v106_v21 = vld [vmem:[%s8150_s1 + $0xe8] sm:$0xff] }
 0x134   :  { %v359_v48 = vsub.f32 %v349_v62, %v354_v34 }
 0x135   :  { %375 = vperm.xlu2 %4098, %v345_v32   ;;  %v302_v41 = vsel %vm301_vm15, %v4109_v51, %v298_v7  ;;  %v519_v51 = vld [vmem:[#allocation2 + $0x8] sm:$0xff] }
 0x136   :  { %v343_v43 = vmul.f32 %v302_v41, %v283_v33 }
 0x138   :  { %v353_v45 = vmul.f32 %v343_v43, %v4496_v28  ;;  %v523_v28 = vld [vmem:[#allocation2 + $0x28] sm:$0xff] }
 0x139   :  { %435 = vperm.xlu1 %4097, %v360_v16   ;;  %v98_v16 = vld [vmem:[%s8150_s1 + $0xa8] sm:$0xff] }
 0x13a   :  { %v358_v44 = vsub.f32 %v348_v31, %v353_v45  ;;  %v99_v31 = vld [vmem:[%s8150_s1 + $0xb0] sm:$0xff] }
 0x13c   :  { %425 = vperm.xlu0 %4099, %v358_v44  }
 0x13d   :  { %370 = vperm.xlu2 %4098, %v344_v58  }
 0x141   :  { %430 = vperm.xlu1 %4097, %v359_v48  }
 0x145   :  { %365 = vperm.xlu2 %4098, %v343_v43  }
 0x16b   :  { %560 = vxpose.xlu2.b32.start [1/5] (short) (narrow) %v519_v51, 112 }
 0x173   :  { %561 = vxpose.xlu2.b32.cont [2/5] (short) (narrow) %v521_v14, 112 }
 0x176   :  { %528 = vxpose.xlu1.b32.start [1/5] (short) %v518_v40, 128 }
 0x17b   :  { %562 = vxpose.xlu2.b32.cont [3/5] (short) (narrow) %v523_v28, 112  ;;  %v91_v28 = vld [vmem:[%s8150_s1 + $0x70] sm:$0xff] }
 0x17e   :  { %529 = vxpose.xlu1.b32.cont [2/5] (short) %v520_v50, 128  ;;  %v92_v50 = vld [vmem:[%s8150_s1 + $0x78] sm:$0xff] }
 0x183   :  { %563 = vxpose.xlu2.b32.cont [4/5] (short) (narrow) %v525_v49, 112  ;;  %v93_v49 = vld [vmem:[%s8150_s1 + $0x80] sm:$0xff] }
 0x186   :  { %530 = vxpose.xlu1.b32.cont [3/5] (short) %v522_v57, 128 }
 0x187   :  { %v4595_v24 = vpop.permute.xlu2 %380 }
 0x188   :  { %v409_v38 = vmul.f32 %v4595_v24, %v4305_v13  ;;  %v410_v22 = vmul.f32 %v4595_v24, %v4317_v17  ;;  %v411_v41 = vmul.f32 %v4595_v24, %v4322_v18  ;;  %v100_v13 = vld [vmem:[%s8150_s1 + $0xb8] sm:$0xff] }
 0x18b   :  { %564 = vxpose.xlu2.b32.end [5/5] (short) (narrow) %v527_v60, 112 }
 0x18e   :  { %531 = vxpose.xlu1.b32.cont [4/5] (short) %v524_v3, 128 }
 0x18f   :  { %v376_v52 = vpop.permute.xlu2 %375 }
 0x190   :  { %v402_v48 = vmul.f32 %v376_v52, %v4272_v5  ;;  %v403_v51 = vmul.f32 %v376_v52, %v4277_v6  ;;  %v404_v14 = vmul.f32 %v376_v52, %v4288_v9  ;;  %v405_v5 = vmul.f32 %v376_v52, %v4300_v12 }
 0x191   :  { %v414_v12 = vmul.f32 %v4595_v24, %v4395_v39  ;;  %v8502_v39 = vld [vmem:[#allocation5_spill] sm:$0xff] }
 0x196   :  { %532 = vxpose.xlu1.b32.end [5/5] (short) %v526_v35, 128 }
 0x197   :  { %v4645_v45 = vpop.permute.xlu2 %370 }
 0x199   :  { %v4597_v4 = vpop.permute.xlu1 %385 }
 0x19a   :  { %v416_v56 = vmul.f32 %v4597_v4, %v4250_v0  ;;  %v417_v23 = vmul.f32 %v4597_v4, %v4255_v1  ;;  %v418_v15 = vmul.f32 %v4597_v4, %v4260_v2  ;;  %v107_v0 = vld [vmem:[%s8150_s1 + $0xf0] sm:$0xff] }
 0x19d   :  { %v4605_v32 = vpop.permute.xlu0 %445 }
 0x19e   :  { %v476_v7 = vadd.f32 %v4605_v32, %v416_v56  ;;  %v477_v1 = vadd.f32 %v4605_v32, %v417_v23  ;;  %v478_v2 = vadd.f32 %v4605_v32, %v418_v15  ;;  %v413_v15 = vmul.f32 %v4595_v24, %v4368_v30 }
 0x19f   :  { %v4678_v23 = vpop.permute.xlu2 %365  ;;  %v395_v30 = vmul.f32 %v4645_v45, %v4346_v25  ;;  %v84_v25 = vld [vmem:[%s8150_s1 + $0x38] sm:$0xff] }
 0x1a0   :  { %v511_v63 = vadd.f32 %v476_v7, %v105_v10  ;;  %v4619_v33 = vadd.f32 %v477_v1, %v106_v21  ;;  %v4621_v8 = vadd.f32 %v478_v2, %v107_v0  ;;  %v415_v10 = vmul.f32 %v4595_v24, %v4410_v46 }
 0x1a1   :  { %v406_v21 = vmul.f32 %v376_v52, %v4327_v19  ;;  %v407_v0 = vmul.f32 %v376_v52, %v4363_v29  ;;  %v4689_v7 = vmul.f32 %v376_v52, %v4332_v20  ;;  %v420_v46 = vmul.f32 %v4597_v4, %v8502_v39 }
 0x1a2   :  { %694 = vmatpush.msra.mxu0 %v511_v63  ;;  %4077 = vmatpush.msra.mxu3 %v511_v63  ;;  %v421_v19 = vmul.f32 %v4597_v4, %v4295_v11  ;;  %v396_v29 = vmul.f32 %v4645_v45, %v4351_v26  ;;  %v397_v20 = vmul.f32 %v4645_v45, %v4356_v27  ;;  %v85_v11 = vld [vmem:[%s8150_s1 + $0x40] sm:$0xff]  ;;  %v86_v26 = vld [vmem:[%s8150_s1 + $0x48] sm:$0xff] }
 0x1a3   :  { %v4629_v43 = vpop.permute.xlu1 %440  ;;  %801 = vmatpush.msra.mxu1 %v4619_v33  ;;  %908 = vmatpush.msra.mxu2 %v4621_v8  ;;  %v388_v52 = vmul.f32 %v4678_v23, %v4383_v36  ;;  %v399_v2 = vmul.f32 %v4645_v45, %v4415_v47  ;;  %v389_v27 = vmul.f32 %v4678_v23, %v4388_v37  ;;  %v110_v37 = vld [vmem:[%s8150_s1 + $0x108] sm:$0xff] }
 0x1a4   :  { %v469_v17 = vadd.f32 %v4629_v43, %v409_v38  ;;  %v470_v18 = vadd.f32 %v4629_v43, %v410_v22  ;;  %v471_v58 = vadd.f32 %v4629_v43, %v411_v41  ;;  %v390_v36 = vmul.f32 %v4678_v23, %v4402_v42  ;;  %v77_v42 = vld [vmem:[%s8150_s1] sm:$0xff] }
 0x1a5   :  { %v480_v47 = vadd.f32 %v4605_v32, %v420_v46  ;;  %v481_v38 = vadd.f32 %v4605_v32, %v421_v19  ;;  %v473_v39 = vadd.f32 %v4629_v43, %v413_v15  ;;  %v474_v46 = vadd.f32 %v4629_v43, %v414_v12  ;;  %v104_v15 = vld [vmem:[%s8150_s1 + $0xd8] sm:$0xff] }
 0x1a6   :  { %v504_v44 = vadd.f32 %v469_v17, %v98_v16  ;;  %v4647_v34 = vadd.f32 %v470_v18, %v99_v31  ;;  %v4649_v62 = vadd.f32 %v471_v58, %v100_v13  ;;  %v109_v13 = vld [vmem:[%s8150_s1 + $0x100] sm:$0xff]  ;;  %v8503_v58 = vld [vmem:[#allocation6_spill] sm:$0xff] }
 0x1a8   :  { %695 = vmatpush.msra.mxu0 %v504_v44  ;;  %4078 = vmatpush.msra.mxu3 %v504_v44  ;;  %v422_v44 = vmul.f32 %v4597_v4, %v8503_v58 }
 0x1a9   :  { %802 = vmatpush.msra.mxu1 %v4647_v34  ;;  %909 = vmatpush.msra.mxu2 %v4649_v62 }
 0x1ab   :  { %v4656_v40 = vpop.permute.xlu1 %435 }
 0x1ac   :  { %v462_v6 = vadd.f32 %v4656_v40, %v402_v48  ;;  %v463_v9 = vadd.f32 %v4656_v40, %v403_v51  ;;  %v464_v57 = vadd.f32 %v4656_v40, %v404_v14  ;;  %v4672_v60 = vadd.f32 %v4656_v40, %v405_v5 }
 0x1ad   :  { %v400_v48 = vmul.f32 %v4645_v45, %v4428_v53  ;;  %v401_v5 = vmul.f32 %v4645_v45, %v4433_v54  ;;  %v482_v53 = vadd.f32 %v4605_v32, %v422_v44  ;;  %v466_v12 = vadd.f32 %v4656_v40, %v406_v21 }
 0x1ae   :  { %v497_v3 = vadd.f32 %v462_v6, %v91_v28  ;;  %v4674_v35 = vadd.f32 %v463_v9, %v92_v50  ;;  %v4676_v56 = vadd.f32 %v464_v57, %v93_v49  ;;  %v4691_v1 = vpop.permute.xlu0 %425  ;;  %v78_v50 = vld [vmem:[%s8150_s1 + $0x8] sm:$0xff]  ;;  %v79_v49 = vld [vmem:[%s8150_s1 + $0x10] sm:$0xff]  ;;  %v515_v6 = vadd.f32 %v480_v47, %v109_v13 }
 0x1af   :  { %v448_v31 = vadd.f32 %v4691_v1, %v388_v52  ;;  %v449_v17 = vadd.f32 %v4691_v1, %v389_v27  ;;  %v450_v18 = vadd.f32 %v4691_v1, %v390_v36  ;;  %v516_v9 = vadd.f32 %v481_v38, %v110_v37  ;;  %v97_v36 = vld [vmem:[%s8150_s1 + $0xa0] sm:$0xff] }
 0x1b0   :  { %696 = vmatpush.msra.mxu0 %v497_v3  ;;  %4079 = vmatpush.msra.mxu3 %v497_v3  ;;  %v392_v57 = vmul.f32 %v4678_v23, %v4438_v55  ;;  %v102_v55 = vld [vmem:[%s8150_s1 + $0xc8] sm:$0xff]  ;;  %v467_v52 = vadd.f32 %v4656_v40, %v407_v0  ;;  %v468_v21 = vadd.f32 %v4656_v40, %v4689_v7  ;;  %v88_v40 = vld [vmem:[%s8150_s1 + $0x58] sm:$0xff] }
 0x1b1   :  { %803 = vmatpush.msra.mxu1 %v4674_v35  ;;  %910 = vmatpush.msra.mxu2 %v4676_v56  ;;  %v483_v3 = vadd.f32 %v448_v31, %v77_v42  ;;  %v484_v54 = vadd.f32 %v449_v17, %v78_v50  ;;  %v4767_v19 = vadd.f32 %v450_v18, %v79_v49  ;;  %v82_v17 = vld [vmem:[%s8150_s1 + $0x28] sm:$0xff]  ;;  %v83_v18 = vld [vmem:[%s8150_s1 + $0x30] sm:$0xff] }
 0x1b2   :  { %v394_v0 = vmul.f32 %v4678_v23, %v4447_v59  ;;  %v503_v31 = vadd.f32 %v468_v21, %v97_v36  ;;  %v4171_v21 = vld [vmem:[%s8149_s0 + $0xc0] sm:$0xff] }
 0x1b3   :  { %v4709_v63 = vpop.permute.xlu1 %430 }
 0x1b4   :  { %v455_v22 = vadd.f32 %v4709_v63, %v395_v30  ;;  %v456_v41 = vadd.f32 %v4709_v63, %v396_v29  ;;  %v457_v16 = vadd.f32 %v4709_v63, %v397_v20  ;;  %v111_v30 = vld [vmem:[%s8150_s1 + $0x110] sm:$0xff]  ;;  %v475_v20 = vadd.f32 %v4629_v43, %v415_v10 }
 0x1b5   :  { %v103_v29 = vld [vmem:[%s8150_s1 + $0xd0] sm:$0xff]  ;;  %v459_v47 = vadd.f32 %v4709_v63, %v399_v2  ;;  %v460_v59 = vadd.f32 %v4709_v63, %v400_v48  ;;  %v89_v2 = vld [vmem:[%s8150_s1 + $0x60] sm:$0xff]  ;;  %v454_v37 = vadd.f32 %v4691_v1, %v394_v0  ;;  %v412_v0 = vmul.f32 %v4171_v21, %v4595_v24 }
 0x1b6   :  { %v490_v51 = vadd.f32 %v455_v22, %v84_v25  ;;  %v4745_v14 = vadd.f32 %v456_v41, %v85_v11  ;;  %v4747_v28 = vadd.f32 %v457_v16, %v86_v26  ;;  %v393_v25 = vmul.f32 %v4678_v23, %v4453_v61  ;;  %v95_v10 = vld [vmem:[%s8150_s1 + $0x90] sm:$0xff]  ;;  %v96_v26 = vld [vmem:[%s8150_s1 + $0x98] sm:$0xff]  ;;  %v90_v41 = vld [vmem:[%s8150_s1 + $0x68] sm:$0xff] }
 0x1b7   :  { %v517_v11 = vadd.f32 %v482_v53, %v111_v30  ;;  %v508_v61 = vadd.f32 %v473_v39, %v102_v55  ;;  %v509_v27 = vadd.f32 %v474_v46, %v103_v29  ;;  %v510_v38 = vadd.f32 %v475_v20, %v104_v15 }
 0x1b8   :  { %697 = vmatpush.msra.mxu0 %v490_v51  ;;  %4080 = vmatpush.msra.mxu3 %v490_v51  ;;  %v501_v7 = vadd.f32 %v466_v12, %v95_v10  ;;  %v502_v22 = vadd.f32 %v467_v52, %v96_v26  ;;  %v452_v16 = vadd.f32 %v4691_v1, %v392_v57 }
 0x1b9   :  { %804 = vmatpush.msra.mxu1 %v4745_v14  ;;  %911 = vmatpush.msra.mxu2 %v4747_v28  ;;  %v453_v13 = vadd.f32 %v4691_v1, %v393_v25  ;;  %v494_v42 = vadd.f32 %v459_v47, %v88_v40  ;;  %v495_v58 = vadd.f32 %v460_v59, %v89_v2  ;;  %v94_v47 = vld [vmem:[%s8150_s1 + $0x88] sm:$0xff]  ;;  %v4173_v59 = vld [vmem:[%s8149_s0 + $0x18] sm:$0xff] }
 0x1ba   :  { %698 = vmatpush.msra.mxu0 %v483_v3  ;;  %4081 = vmatpush.msra.mxu3 %v483_v3  ;;  %v489_v51 = vadd.f32 %v454_v37, %v83_v18  ;;  %v472_v36 = vadd.f32 %v4629_v43, %v412_v0  ;;  %v80_v2 = vld [vmem:[%s8150_s1 + $0x18] sm:$0xff] }
 0x1bb   :  { %805 = vmatpush.msra.mxu1 %v484_v54  ;;  %912 = vmatpush.msra.mxu2 %v4767_v19 }
 0x1bc   :  { %4082 = vmatpush.msrb.mxu3 %v4619_v33  ;;  %1122 = vmatpush.msrb.mxu0 %v515_v6  ;;  %v461_v33 = vadd.f32 %v4709_v63, %v401_v5 }
 0x1bd   :  { %1229 = vmatpush.msrb.mxu1 %v516_v9  ;;  %1336 = vmatpush.msrb.mxu2 %v517_v11  ;;  %v4170_v11 = vld [vmem:[%s8149_s0 + $0xf8] sm:$0xff] }
 0x1be   :  { %4083 = vmatpush.msrb.mxu3 %v4647_v34  ;;  %1123 = vmatpush.msrb.mxu0 %v508_v61  ;;  %v81_v34 = vld [vmem:[%s8150_s1 + $0x20] sm:$0xff]  ;;  %v496_v44 = vadd.f32 %v461_v33, %v90_v41  ;;  %v419_v10 = vmul.f32 %v4170_v11, %v4597_v4  ;;  %v108_v61 = vld [vmem:[%s8150_s1 + $0xf8] sm:$0xff]  ;;  %v391_v33 = vmul.f32 %v4173_v59, %v4678_v23 }
 0x1bf   :  { %1230 = vmatpush.msrb.mxu1 %v509_v27  ;;  %1337 = vmatpush.msrb.mxu2 %v510_v38  ;;  %v487_v48 = vadd.f32 %v452_v16, %v81_v34  ;;  %v101_v4 = vld [vmem:[%s8150_s1 + $0xc0] sm:$0xff] }
 0x1c0   :  { %4084 = vmatpush.msrb.mxu3 %v4674_v35  ;;  %1124 = vmatpush.msrb.mxu0 %v501_v7  ;;  %v488_v35 = vadd.f32 %v453_v13, %v82_v17  ;;  %v479_v26 = vadd.f32 %v4605_v32, %v419_v10  ;;  %v4172_v32 = vld [vmem:[%s8149_s0 + $0x50] sm:$0xff]  ;;  %v507_v38 = vadd.f32 %v472_v36, %v101_v4 }
 0x1c1   :  { %1231 = vmatpush.msrb.mxu1 %v502_v22  ;;  %1338 = vmatpush.msrb.mxu2 %v503_v31  ;;  %v398_v43 = vmul.f32 %v4172_v32, %v4645_v45  ;;  %v87_v45 = vld [vmem:[%s8150_s1 + $0x50] sm:$0xff]  ;;  %v500_v7 = vadd.f32 %v4672_v60, %v94_v47  ;;  %v451_v22 = vadd.f32 %v4691_v1, %v391_v33 }
 0x1c2   :  { %4085 = vmatpush.msrb.mxu3 %v4745_v14  ;;  %1125 = vmatpush.msrb.mxu0 %v494_v42  ;;  %v514_v24 = vadd.f32 %v479_v26, %v108_v61 }
 0x1c3   :  { %1232 = vmatpush.msrb.mxu1 %v495_v58  ;;  %1339 = vmatpush.msrb.mxu2 %v496_v44  ;;  %v458_v40 = vadd.f32 %v4709_v63, %v398_v43  ;;  %v486_v60 = vadd.f32 %v451_v22, %v80_v2 }
 0x1c4   :  { %4086 = vmatpush.msrb.mxu3 %v484_v54  ;;  %1126 = vmatpush.msrb.mxu0 %v487_v48 }
 0x1c5   :  { %1233 = vmatpush.msrb.mxu1 %v488_v35  ;;  %1340 = vmatpush.msrb.mxu2 %v489_v51  ;;  %v493_v41 = vadd.f32 %v458_v40, %v87_v45 }
 0x204   :  { %v4825_v50 = vpop.trf.xlu2 }
 0x20c   :  { %v4827_v49 = vpop.trf.xlu2 }
 0x214   :  { %v4829_v5 = vpop.trf.xlu2 }
 0x21a   :  { %v4831_v6 = vpop.trf.xlu1 }
 0x21b   :  { %3867 = vmatmul.msk.f32.vlgmr.msra.gmra.mxu0 %vm592_vm1, %v4831_v6  ;;  %3897 = vmatmul.msk.f32.vlgmr.msra.gmra.mxu1 %vm592_vm1, %v4831_v6 }
 0x21c   :  { %3927 = vmatmul.msk.f32.vlgmr.msra.gmra.mxu2 %vm592_vm1, %v4831_v6  ;;  %v4839_v14 = vpop.trf.xlu2 }
 0x222   :  { %v4841_v9 = vpop.trf.xlu1 }
 0x223   :  { %3868 = vmatmul.msk.f32.gmra.mxu0 %vm592_vm1, %v4841_v9  ;;  %3898 = vmatmul.msk.f32.gmra.mxu1 %vm592_vm1, %v4841_v9 }
 0x224   :  { %3928 = vmatmul.msk.f32.gmra.mxu2 %vm592_vm1, %v4841_v9  ;;  %v4849_v53 = vpop.trf.xlu2 }
 0x22a   :  { %v4851_v57 = vpop.trf.xlu1 }
 0x22b   :  { %3869 = vmatmul.msk.f32.gmra.mxu0 %vm592_vm1, %v4851_v57  ;;  %3899 = vmatmul.msk.f32.gmra.mxu1 %vm592_vm1, %v4851_v57 }
 0x22c   :  { %3929 = vmatmul.msk.f32.gmra.mxu2 %vm592_vm1, %v4851_v57  ;;  %v4859_v3 = vpop.trf.xlu2 }
 0x232   :  { %v4861_v30 = vpop.trf.xlu1 }
 0x233   :  { %3870 = vmatmul.msk.f32.gmra.mxu0 %vm592_vm1, %v4861_v30  ;;  %3900 = vmatmul.msk.f32.gmra.mxu1 %vm592_vm1, %v4861_v30 }
 0x234   :  { %3930 = vmatmul.msk.f32.gmra.mxu2 %vm592_vm1, %v4861_v30  ;;  %v4869_v39 = vpop.trf.xlu2 }
 0x23a   :  { %v4871_v46 = vpop.trf.xlu1 }
 0x23b   :  { %3871 = vmatmul.msk.f32.gmra.mxu0 %vm592_vm1, %v4871_v46  ;;  %3901 = vmatmul.msk.f32.gmra.mxu1 %vm592_vm1, %v4871_v46 }
 0x23c   :  { %3931 = vmatmul.msk.f32.gmra.mxu2 %vm592_vm1, %v4871_v46  ;;  %v4879_v54 = vpop.trf.xlu2 }
 0x23d   :  { %3890 = vmatmul.msk.f32.vlgmr.msra.gmra.mxu3 %vm592_vm1, %v4879_v54 }
 0x23e   :  { %4087 = vmatpush.msra.mxu3 %v4621_v8 }
 0x240   :  { %4088 = vmatpush.msra.mxu3 %v4649_v62 }
 0x242   :  { %4089 = vmatpush.msra.mxu3 %v4676_v56  ;;  %v4886_v55 = vpop.trf.xlu1 }
 0x243   :  { %3872 = vmatmul.msk.f32.gmra.mxu0 %vm592_vm1, %v4886_v55  ;;  %3902 = vmatmul.msk.f32.gmra.mxu1 %vm592_vm1, %v4886_v55 }
 0x244   :  { %4090 = vmatpush.msra.mxu3 %v4747_v28  ;;  %3932 = vmatmul.msk.f32.gmra.mxu2 %vm592_vm1, %v4886_v55  ;;  %v4895_v29 = vpop.trf.xlu2 }
 0x245   :  { %3891 = vmatmul.msk.f32.gmra.mxu3 %vm592_vm1, %v4895_v29 }
 0x246   :  { %4091 = vmatpush.msra.mxu3 %v4767_v19 }
 0x24a   :  { %v4900_v8 = vpop.trf.xlu1 }
 0x24b   :  { %3873 = vmatmul.msk.f32.gmra.mxu0 %vm592_vm1, %v4900_v8  ;;  %3903 = vmatmul.msk.f32.gmra.mxu1 %vm592_vm1, %v4900_v8 }
 0x24c   :  { %3933 = vmatmul.msk.f32.gmra.mxu2 %vm592_vm1, %v4900_v8  ;;  %v4908_v62 = vpop.trf.xlu2 }
 0x24d   :  { %3892 = vmatmul.msk.f32.gmra.mxu3 %vm592_vm1, %v4908_v62 }
 0x252   :  { %v4912_v56 = vpop.trf.xlu1 }
 0x253   :  { %3874 = vmatmul.msk.f32.gmra.mxu0 %vm592_vm1, %v4912_v56  ;;  %3904 = vmatmul.msk.f32.gmra.mxu1 %vm592_vm1, %v4912_v56 }
 0x254   :  { %3934 = vmatmul.msk.f32.gmra.mxu2 %vm592_vm1, %v4912_v56  ;;  %v4920_v28 = vpop.trf.xlu2 }
 0x255   :  { %3893 = vmatmul.msk.f32.gmra.mxu3 %vm592_vm1, %v4920_v28 }
 0x25a   :  { %v4924_v19 = vpop.trf.xlu1 }
 0x25b   :  { %3875 = vmatmul.msk.f32.gmra.mxu0 %vm592_vm1, %v4924_v19  ;;  %3905 = vmatmul.msk.f32.gmra.mxu1 %vm592_vm1, %v4924_v19 }
 0x25c   :  { %3935 = vmatmul.msk.f32.gmra.mxu2 %vm592_vm1, %v4924_v19  ;;  %v4932_v20 = vpop.trf.xlu2 }
 0x25d   :  { %3894 = vmatmul.msk.f32.gmra.mxu3 %vm592_vm1, %v4932_v20 }
 0x262   :  { %v4936_v15 = vpop.trf.xlu1 }
 0x263   :  { %3876 = vmatmul.msk.f32.gmra.mxu0 %vm592_vm1, %v4936_v15  ;;  %3906 = vmatmul.msk.f32.gmra.mxu1 %vm592_vm1, %v4936_v15 }
 0x264   :  { %3936 = vmatmul.msk.f32.gmra.mxu2 %vm592_vm1, %v4936_v15  ;;  %v4944_v12 = vpop.trf.xlu2 }
 0x265   :  { %3895 = vmatmul.msk.f32.gmra.mxu3 %vm592_vm1, %v4944_v12 }
 0x26a   :  { %v4948_v52 = vpop.trf.xlu1 }
 0x26b   :  { %3877 = vmatmul.msk.f32.gmra.mxu0 %vm592_vm1, %v4948_v52  ;;  %3907 = vmatmul.msk.f32.gmra.mxu1 %vm592_vm1, %v4948_v52 }
 0x26c   :  { %3937 = vmatmul.msk.f32.gmra.mxu2 %vm592_vm1, %v4948_v52  ;;  %v4956_v25 = vpop.trf.xlu2 }
 0x26d   :  { %8504 = vst [vmem:[#allocation5_spill] sm:$0xff] %v4956_v25  ;;  %3896 = vmatmul.msk.f32.gmra.mxu3 %vm592_vm1, %v4956_v25 }
 0x272   :  { %v4972_v27 = vpop.trf.xlu1 }
 0x273   :  { %3878 = vmatmul.msk.f32.gmra.mxu0 %vm592_vm1, %v4972_v27  ;;  %3908 = vmatmul.msk.f32.gmra.mxu1 %vm592_vm1, %v4972_v27 }
 0x274   :  { %3938 = vmatmul.msk.f32.gmra.mxu2 %vm592_vm1, %v4972_v27 }
 0x275   :  { %3920 = vmatmul.msk.f32.vlgmr.msrb.gmra.mxu3 %vm592_vm1, %v4879_v54 }
 0x276   :  { %1015 = vmatpush.msrb.mxu3 %v514_v24 }
 0x278   :  { %1016 = vmatpush.msrb.mxu3 %v507_v38 }
 0x27a   :  { %1017 = vmatpush.msrb.mxu3 %v500_v7  ;;  %v5006_v63 = vpop.trf.xlu1 }
 0x27b   :  { %3879 = vmatmul.msk.f32.gmra.mxu0 %vm592_vm1, %v5006_v63  ;;  %3909 = vmatmul.msk.f32.gmra.mxu1 %vm592_vm1, %v5006_v63 }
 0x27c   :  { %3939 = vmatmul.msk.f32.gmra.mxu2 %vm592_vm1, %v5006_v63  ;;  %1018 = vmatpush.msrb.mxu3 %v493_v41 }
 0x27d   :  { %3921 = vmatmul.msk.f32.gmra.mxu3 %vm592_vm1, %v4895_v29 }
 0x27e   :  { %1019 = vmatpush.msrb.mxu3 %v486_v60 }
 0x282   :  { %v5016_v23 = vpop.trf.xlu1 }
 0x283   :  { %3880 = vmatmul.msk.f32.gmra.mxu0 %vm592_vm1, %v5016_v23  ;;  %3910 = vmatmul.msk.f32.gmra.mxu1 %vm592_vm1, %v5016_v23 }
 0x284   :  { %3940 = vmatmul.msk.f32.gmra.mxu2 %vm592_vm1, %v5016_v23 }
 0x285   :  { %3922 = vmatmul.msk.f32.gmra.mxu3 %vm592_vm1, %v4908_v62 }
 0x28a   :  { %v5026_v1 = vpop.trf.xlu1 }
 0x28b   :  { %3881 = vmatmul.msk.f32.gmra.mxu0 %vm592_vm1, %v5026_v1  ;;  %3911 = vmatmul.msk.f32.gmra.mxu1 %vm592_vm1, %v5026_v1 }
 0x28c   :  { %3941 = vmatmul.msk.f32.gmra.mxu2 %vm592_vm1, %v5026_v1 }
 0x28d   :  { %3923 = vmatmul.msk.f32.gmra.mxu3 %vm592_vm1, %v4920_v28 }
 0x292   :  { %v5036_v16 = vpop.trf.xlu1 }
 0x293   :  { %3882 = vmatmul.msk.f32.gmra.mxu0 %vm592_vm1, %v5036_v16  ;;  %3912 = vmatmul.msk.f32.gmra.mxu1 %vm592_vm1, %v5036_v16 }
 0x294   :  { %3942 = vmatmul.msk.f32.gmra.mxu2 %vm592_vm1, %v5036_v16 }
 0x295   :  { %3924 = vmatmul.msk.f32.gmra.mxu3 %vm592_vm1, %v4932_v20 }
 0x298   :  { %v5046_v31 = vpop.f32.mrf.mxu0  ;;  %v5048_v34 = vpop.f32.mrf.mxu1 }
 0x299   :  { %8505 = vst [vmem:[#allocation6_spill] sm:$0xff] %v5046_v31 }
 0x29a   :  { %8506 = vst [vmem:[#allocation7_spill] sm:$0xff] %v5048_v34 }
 0x29b   :  { %3883 = vmatmul.msk.f32.gmra.mxu0 %vm592_vm1, %v4825_v50  ;;  %3913 = vmatmul.msk.f32.gmra.mxu1 %vm592_vm1, %v4825_v50 }
 0x29c   :  { %3943 = vmatmul.msk.f32.gmra.mxu2 %vm592_vm1, %v4825_v50 }
 0x29d   :  { %3925 = vmatmul.msk.f32.gmra.mxu3 %vm592_vm1, %v4944_v12 }
 0x29f   :  { %v5058_v13 = vpop.f32.mrf.mxu2 }
 0x2a0   :  { %8507 = vst [vmem:[#allocation8_spill] sm:$0xff] %v5058_v13  ;;  %v5060_v37 = vpop.f32.mrf.mxu0  ;;  %v5062_v42 = vpop.f32.mrf.mxu1 }
 0x2a1   :  { %8508 = vst [vmem:[#allocation9_spill] sm:$0xff] %v5060_v37 }
 0x2a2   :  { %8509 = vst [vmem:[#allocation10_spill] sm:$0xff] %v5062_v42 }
 0x2a3   :  { %3884 = vmatmul.msk.f32.gmra.mxu0 %vm592_vm1, %v4827_v49  ;;  %3914 = vmatmul.msk.f32.gmra.mxu1 %vm592_vm1, %v4827_v49 }
 0x2a4   :  { %3944 = vmatmul.msk.f32.gmra.mxu2 %vm592_vm1, %v4827_v49 }
 0x2a5   :  { %3926 = vmatmul.msk.f32.gmra.mxu3 %vm592_vm1, %v4956_v25 }
 0x2a7   :  { %v5072_v17 = vpop.f32.mrf.mxu2 }
 0x2a8   :  { %8510 = vst [vmem:[#allocation11_spill] sm:$0xff] %v5072_v17  ;;  %v5074_v18 = vpop.f32.mrf.mxu0  ;;  %v5076_v58 = vpop.f32.mrf.mxu1 }
 0x2a9   :  { %8511 = vst [vmem:[#allocation12_spill] sm:$0xff] %v5074_v18 }
 0x2aa   :  { %8512 = vst [vmem:[#allocation13_spill] sm:$0xff] %v5076_v58 }
 0x2ab   :  { %3885 = vmatmul.msk.f32.gmra.mxu0 %vm592_vm1, %v4829_v5  ;;  %3915 = vmatmul.msk.f32.gmra.mxu1 %vm592_vm1, %v4829_v5 }
 0x2ac   :  { %3945 = vmatmul.msk.f32.gmra.mxu2 %vm592_vm1, %v4829_v5 }
 0x2ad   :  { %3950 = vmatmul.msk.f32.vlgmr.msra.gmra.mxu3 %vm592_vm1, %v4879_v54 }
 0x2af   :  { %v5086_v44 = vpop.f32.mrf.mxu2 }
 0x2b0   :  { %8513 = vst [vmem:[#allocation14_spill] sm:$0xff] %v5086_v44  ;;  %v5088_v48 = vpop.f32.mrf.mxu0  ;;  %v5090_v35 = vpop.f32.mrf.mxu1 }
 0x2b1   :  { %8514 = vst [vmem:[#allocation15_spill] sm:$0xff] %v5088_v48 }
 0x2b2   :  { %8515 = vst [vmem:[#allocation16_spill] sm:$0xff] %v5090_v35 }
 0x2b3   :  { %3886 = vmatmul.msk.f32.gmra.mxu0 %vm592_vm1, %v4839_v14  ;;  %3916 = vmatmul.msk.f32.gmra.mxu1 %vm592_vm1, %v4839_v14 }
 0x2b4   :  { %3946 = vmatmul.msk.f32.gmra.mxu2 %vm592_vm1, %v4839_v14 }
 0x2b5   :  { %3951 = vmatmul.msk.f32.gmra.mxu3 %vm592_vm1, %v4895_v29 }
 0x2b7   :  { %v5100_v51 = vpop.f32.mrf.mxu2 }
 0x2b8   :  { %8516 = vst [vmem:[#allocation17_spill] sm:$0xff] %v5100_v51  ;;  %v5102_v11 = vpop.f32.mrf.mxu0  ;;  %v5104_v10 = vpop.f32.mrf.mxu1 }
 0x2b9   :  { %8517 = vst [vmem:[#allocation18_spill] sm:$0xff] %v5102_v11 }
 0x2ba   :  { %8518 = vst [vmem:[#allocation19_spill] sm:$0xff] %v5104_v10 }
 0x2bb   :  { %3887 = vmatmul.msk.f32.gmra.mxu0 %vm592_vm1, %v4849_v53  ;;  %3917 = vmatmul.msk.f32.gmra.mxu1 %vm592_vm1, %v4849_v53 }
 0x2bc   :  { %3947 = vmatmul.msk.f32.gmra.mxu2 %vm592_vm1, %v4849_v53 }
 0x2bd   :  { %3952 = vmatmul.msk.f32.gmra.mxu3 %vm592_vm1, %v4908_v62 }
 0x2bf   :  { %v5114_v26 = vpop.f32.mrf.mxu2 }
 0x2c0   :  { %8519 = vst [vmem:[#allocation20_spill] sm:$0xff] %v5114_v26  ;;  %v5116_v21 = vpop.f32.mrf.mxu0  ;;  %v5118_v0 = vpop.f32.mrf.mxu3 }
 0x2c1   :  { %8520 = vst [vmem:[#allocation21_spill] sm:$0xff] %v5116_v21  ;;  %v5120_v61 = vpop.f32.mrf.mxu1 }
 0x2c2   :  { %8521 = vst [vmem:[#allocation22_spill] sm:$0xff] %v5118_v0 }
 0x2c3   :  { %8522 = vst [vmem:[#allocation23_spill] sm:$0xff] %v5120_v61  ;;  %3888 = vmatmul.msk.f32.gmra.mxu0 %vm592_vm1, %v4859_v3  ;;  %3918 = vmatmul.msk.f32.gmra.mxu1 %vm592_vm1, %v4859_v3 }
 0x2c4   :  { %3948 = vmatmul.msk.f32.gmra.mxu2 %vm592_vm1, %v4859_v3 }
 0x2c5   :  { %3953 = vmatmul.msk.f32.gmra.mxu3 %vm592_vm1, %v4920_v28 }
 0x2c7   :  { %v5130_v36 = vpop.f32.mrf.mxu2 }
 0x2c8   :  { %8523 = vst [vmem:[#allocation24_spill] sm:$0xff] %v5130_v36  ;;  %v5132_v4 = vpop.f32.mrf.mxu0  ;;  %v5134_v24 = vpop.f32.mrf.mxu3 }
 0x2c9   :  { %8524 = vst [vmem:[#allocation25_spill] sm:$0xff] %v5132_v4  ;;  %v5136_v32 = vpop.f32.mrf.mxu1 }
 0x2ca   :  { %8525 = vst [vmem:[#allocation26_spill] sm:$0xff] %v5134_v24 }
 0x2cb   :  { %8526 = vst [vmem:[#allocation27_spill] sm:$0xff] %v5136_v32  ;;  %3889 = vmatmul.msk.f32.gmra.mxu0 %vm592_vm1, %v4869_v39  ;;  %3919 = vmatmul.msk.f32.gmra.mxu1 %vm592_vm1, %v4869_v39 }
 0x2cc   :  { %3949 = vmatmul.msk.f32.gmra.mxu2 %vm592_vm1, %v4869_v39 }
 0x2cd   :  { %3954 = vmatmul.msk.f32.gmra.mxu3 %vm592_vm1, %v4932_v20 }
 0x2cf   :  { %v5146_v43 = vpop.f32.mrf.mxu2 }
 0x2d0   :  { %8527 = vst [vmem:[#allocation28_spill] sm:$0xff] %v5146_v43  ;;  %v5148_v47 = vpop.f32.mrf.mxu0  ;;  %v5150_v38 = vpop.f32.mrf.mxu3 }
 0x2d1   :  { %8528 = vst [vmem:[#allocation29_spill] sm:$0xff] %v5148_v47  ;;  %v5152_v40 = vpop.f32.mrf.mxu1 }
 0x2d2   :  { %8529 = vst [vmem:[#allocation30_spill] sm:$0xff] %v5150_v38 }
 0x2d3   :  { %8530 = vst [vmem:[#allocation31_spill] sm:$0xff] %v5152_v40  ;;  %3987 = vmatmul.msk.f32.vlgmr.msrb.gmra.mxu0 %vm592_vm1, %v4831_v6  ;;  %4017 = vmatmul.msk.f32.vlgmr.msrb.gmra.mxu1 %vm592_vm1, %v4831_v6 }
 0x2d4   :  { %4047 = vmatmul.msk.f32.vlgmr.msrb.gmra.mxu2 %vm592_vm1, %v4831_v6 }
 0x2d5   :  { %3955 = vmatmul.msk.f32.gmra.mxu3 %vm592_vm1, %v4944_v12 }
 0x2d7   :  { %v5162_v59 = vpop.f32.mrf.mxu2 }
 0x2d8   :  { %8531 = vst [vmem:[#allocation32_spill] sm:$0xff] %v5162_v59  ;;  %v5164_v33 = vpop.f32.mrf.mxu0  ;;  %v5166_v45 = vpop.f32.mrf.mxu3 }
 0x2d9   :  { %8532 = vst [vmem:[#allocation33_spill] sm:$0xff] %v5164_v33  ;;  %v5168_v7 = vpop.f32.mrf.mxu1 }
 0x2da   :  { %8533 = vst [vmem:[#allocation34_spill] sm:$0xff] %v5166_v45 }
 0x2db   :  { %8534 = vst [vmem:[#allocation35_spill] sm:$0xff] %v5168_v7  ;;  %3988 = vmatmul.msk.f32.gmra.mxu0 %vm592_vm1, %v4841_v9  ;;  %4018 = vmatmul.msk.f32.gmra.mxu1 %vm592_vm1, %v4841_v9 }
 0x2dc   :  { %4048 = vmatmul.msk.f32.gmra.mxu2 %vm592_vm1, %v4841_v9 }
 0x2dd   :  { %3956 = vmatmul.msk.f32.gmra.mxu3 %vm592_vm1, %v4956_v25 }
 0x2df   :  { %v5178_v22 = vpop.f32.mrf.mxu2 }
 0x2e0   :  { %8535 = vst [vmem:[#allocation36_spill] sm:$0xff] %v5178_v22  ;;  %v5180_v2 = vpop.f32.mrf.mxu0  ;;  %v5182_v41 = vpop.f32.mrf.mxu3 }
 0x2e1   :  { %8536 = vst [vmem:[#allocation37_spill] sm:$0xff] %v5180_v2  ;;  %v5184_v60 = vpop.f32.mrf.mxu1 }
 0x2e2   :  { %8537 = vst [vmem:[#allocation38_spill] sm:$0xff] %v5182_v41 }
 0x2e3   :  { %8538 = vst [vmem:[#allocation39_spill] sm:$0xff] %v5184_v60  ;;  %3989 = vmatmul.msk.f32.gmra.mxu0 %vm592_vm1, %v4851_v57  ;;  %4019 = vmatmul.msk.f32.gmra.mxu1 %vm592_vm1, %v4851_v57 }
 0x2e4   :  { %4049 = vmatmul.msk.f32.gmra.mxu2 %vm592_vm1, %v4851_v57 }
 0x2e5   :  { %3957 = vmatmul.msk.f32.vlgmr.msrb.gmra.mxu3 %vm592_vm1, %v4831_v6 }
 0x2e7   :  { %v5194_v45 = vpop.f32.mrf.mxu2 }
 0x2e8   :  { %8539 = vst [vmem:[#allocation40_spill] sm:$0xff] %v5194_v45  ;;  %v5196_v38 = vpop.f32.mrf.mxu0  ;;  %v5198_v24 = vpop.f32.mrf.mxu3 }
 0x2e9   :  { %8540 = vst [vmem:[#allocation41_spill] sm:$0xff] %v5196_v38  ;;  %v5200_v41 = vpop.f32.mrf.mxu1 }
 0x2ea   :  { %8541 = vst [vmem:[#allocation42_spill] sm:$0xff] %v5198_v24 }
 0x2eb   :  { %8542 = vst [vmem:[#allocation43_spill] sm:$0xff] %v5200_v41  ;;  %3990 = vmatmul.msk.f32.gmra.mxu0 %vm592_vm1, %v4861_v30  ;;  %4020 = vmatmul.msk.f32.gmra.mxu1 %vm592_vm1, %v4861_v30 }
 0x2ec   :  { %4050 = vmatmul.msk.f32.gmra.mxu2 %vm592_vm1, %v4861_v30 }
 0x2ed   :  { %3958 = vmatmul.msk.f32.gmra.mxu3 %vm592_vm1, %v4841_v9 }
 0x2ef   :  { %v5210_v6 = vpop.f32.mrf.mxu2 }
 0x2f0   :  { %8543 = vst [vmem:[#allocation44_spill] sm:$0xff] %v5210_v6  ;;  %v5212_v0 = vpop.f32.mrf.mxu0  ;;  %v5214_v25 = vpop.f32.mrf.mxu3 }
 0x2f1   :  { %8544 = vst [vmem:[#allocation45_spill] sm:$0xff] %v5212_v0  ;;  %v5216_v24 = vpop.f32.mrf.mxu1 }
 0x2f2   :  { %8545 = vst [vmem:[#allocation46_spill] sm:$0xff] %v5214_v25 }
 0x2f3   :  { %8546 = vst [vmem:[#allocation47_spill] sm:$0xff] %v5216_v24  ;;  %3991 = vmatmul.msk.f32.gmra.mxu0 %vm592_vm1, %v4871_v46  ;;  %4021 = vmatmul.msk.f32.gmra.mxu1 %vm592_vm1, %v4871_v46 }
 0x2f4   :  { %4051 = vmatmul.msk.f32.gmra.mxu2 %vm592_vm1, %v4871_v46 }
 0x2f5   :  { %3959 = vmatmul.msk.f32.gmra.mxu3 %vm592_vm1, %v4851_v57 }
 0x2f7   :  { %v5226_v9 = vpop.f32.mrf.mxu2 }
 0x2f8   :  { %8547 = vst [vmem:[#allocation48_spill] sm:$0xff] %v5226_v9  ;;  %v5228_v6 = vpop.f32.mrf.mxu0  ;;  %v5230_v0 = vpop.f32.mrf.mxu3 }
 0x2f9   :  { %8548 = vst [vmem:[#allocation49_spill] sm:$0xff] %v5228_v6  ;;  %v5232_v25 = vpop.f32.mrf.mxu1 }
 0x2fa   :  { %8549 = vst [vmem:[#allocation50_spill] sm:$0xff] %v5230_v0 }
 0x2fb   :  { %8550 = vst [vmem:[#allocation51_spill] sm:$0xff] %v5232_v25  ;;  %3992 = vmatmul.msk.f32.gmra.mxu0 %vm592_vm1, %v4886_v55  ;;  %4022 = vmatmul.msk.f32.gmra.mxu1 %vm592_vm1, %v4886_v55 }
 0x2fc   :  { %4052 = vmatmul.msk.f32.gmra.mxu2 %vm592_vm1, %v4886_v55 }
 0x2fd   :  { %3960 = vmatmul.msk.f32.gmra.mxu3 %vm592_vm1, %v4861_v30 }
 0x2ff   :  { %v5242_v57 = vpop.f32.mrf.mxu2 }
 0x300   :  { %8551 = vst [vmem:[#allocation52_spill] sm:$0xff] %v5242_v57  ;;  %v5244_v9 = vpop.f32.mrf.mxu0  ;;  %v5246_v6 = vpop.f32.mrf.mxu3 }
 0x301   :  { %8552 = vst [vmem:[#allocation53_spill] sm:$0xff] %v5244_v9  ;;  %v5248_v0 = vpop.f32.mrf.mxu1 }
 0x302   :  { %8553 = vst [vmem:[#allocation54_spill] sm:$0xff] %v5246_v6 }
 0x303   :  { %8554 = vst [vmem:[#allocation55_spill] sm:$0xff] %v5248_v0  ;;  %3993 = vmatmul.msk.f32.gmra.mxu0 %vm592_vm1, %v4900_v8  ;;  %4023 = vmatmul.msk.f32.gmra.mxu1 %vm592_vm1, %v4900_v8 }
 0x304   :  { %4053 = vmatmul.msk.f32.gmra.mxu2 %vm592_vm1, %v4900_v8 }
 0x305   :  { %3961 = vmatmul.msk.f32.gmra.mxu3 %vm592_vm1, %v4871_v46 }
 0x307   :  { %v5258_v30 = vpop.f32.mrf.mxu2 }
 0x308   :  { %8555 = vst [vmem:[#allocation56_spill] sm:$0xff] %v5258_v30  ;;  %v5260_v57 = vpop.f32.mrf.mxu0  ;;  %v5262_v9 = vpop.f32.mrf.mxu3 }
 0x309   :  { %8556 = vst [vmem:[#allocation57_spill] sm:$0xff] %v5260_v57  ;;  %v5264_v6 = vpop.f32.mrf.mxu1 }
 0x30a   :  { %8557 = vst [vmem:[#allocation58_spill] sm:$0xff] %v5262_v9 }
 0x30b   :  { %8558 = vst [vmem:[#allocation59_spill] sm:$0xff] %v5264_v6  ;;  %3994 = vmatmul.msk.f32.gmra.mxu0 %vm592_vm1, %v4912_v56  ;;  %4024 = vmatmul.msk.f32.gmra.mxu1 %vm592_vm1, %v4912_v56 }
 0x30c   :  { %4054 = vmatmul.msk.f32.gmra.mxu2 %vm592_vm1, %v4912_v56 }
 0x30d   :  { %3962 = vmatmul.msk.f32.gmra.mxu3 %vm592_vm1, %v4886_v55 }
 0x30f   :  { %v5274_v46 = vpop.f32.mrf.mxu2 }
 0x310   :  { %8559 = vst [vmem:[#allocation60_spill] sm:$0xff] %v5274_v46  ;;  %v5276_v30 = vpop.f32.mrf.mxu0  ;;  %v5278_v57 = vpop.f32.mrf.mxu3 }
 0x311   :  { %8560 = vst [vmem:[#allocation61_spill] sm:$0xff] %v5276_v30  ;;  %v5280_v9 = vpop.f32.mrf.mxu1 }
 0x312   :  { %8561 = vst [vmem:[#allocation62_spill] sm:$0xff] %v5278_v57 }
 0x313   :  { %8562 = vst [vmem:[#allocation63_spill] sm:$0xff] %v5280_v9  ;;  %3995 = vmatmul.msk.f32.gmra.mxu0 %vm592_vm1, %v4924_v19  ;;  %4025 = vmatmul.msk.f32.gmra.mxu1 %vm592_vm1, %v4924_v19 }
 0x314   :  { %4055 = vmatmul.msk.f32.gmra.mxu2 %vm592_vm1, %v4924_v19 }
 0x315   :  { %3963 = vmatmul.msk.f32.gmra.mxu3 %vm592_vm1, %v4900_v8 }
 0x317   :  { %v5290_v55 = vpop.f32.mrf.mxu2 }
 0x318   :  { %8563 = vst [vmem:[#allocation64_spill] sm:$0xff] %v5290_v55  ;;  %v5292_v46 = vpop.f32.mrf.mxu0  ;;  %v5294_v30 = vpop.f32.mrf.mxu3 }
 0x319   :  { %8564 = vst [vmem:[#allocation65_spill] sm:$0xff] %v5292_v46  ;;  %v5296_v57 = vpop.f32.mrf.mxu1 }
 0x31a   :  { %8565 = vst [vmem:[#allocation66_spill] sm:$0xff] %v5294_v30 }
 0x31b   :  { %8566 = vst [vmem:[#allocation67_spill] sm:$0xff] %v5296_v57  ;;  %3996 = vmatmul.msk.f32.gmra.mxu0 %vm592_vm1, %v4936_v15  ;;  %4026 = vmatmul.msk.f32.gmra.mxu1 %vm592_vm1, %v4936_v15  ;;  %v1441_v57 = vadd.f32 %v5062_v42, %v5060_v37 }
 0x31c   :  { %4056 = vmatmul.msk.f32.gmra.mxu2 %vm592_vm1, %v4936_v15 }
 0x31d   :  { %3964 = vmatmul.msk.f32.gmra.mxu3 %vm592_vm1, %v4912_v56  ;;  %v1442_v42 = vadd.f32 %v1441_v57, %v5072_v17 }
 0x31f   :  { %v5306_v8 = vpop.f32.mrf.mxu2 }
 0x320   :  { %8567 = vst [vmem:[#allocation68_spill] sm:$0xff] %v5306_v8  ;;  %v5308_v55 = vpop.f32.mrf.mxu0  ;;  %v5310_v46 = vpop.f32.mrf.mxu3 }
 0x321   :  { %8568 = vst [vmem:[#allocation69_spill] sm:$0xff] %v5308_v55  ;;  %v5312_v30 = vpop.f32.mrf.mxu1 }
 0x322   :  { %8569 = vst [vmem:[#allocation70_spill] sm:$0xff] %v5310_v46 }
 0x323   :  { %8570 = vst [vmem:[#allocation71_spill] sm:$0xff] %v5312_v30  ;;  %3997 = vmatmul.msk.f32.gmra.mxu0 %vm592_vm1, %v4948_v52  ;;  %4027 = vmatmul.msk.f32.gmra.mxu1 %vm592_vm1, %v4948_v52 }
 0x324   :  { %4057 = vmatmul.msk.f32.gmra.mxu2 %vm592_vm1, %v4948_v52 }
 0x325   :  { %3965 = vmatmul.msk.f32.gmra.mxu3 %vm592_vm1, %v4924_v19 }
 0x327   :  { %v5322_v56 = vpop.f32.mrf.mxu2 }
 0x328   :  { %8571 = vst [vmem:[#allocation72_spill] sm:$0xff] %v5322_v56  ;;  %v5324_v8 = vpop.f32.mrf.mxu0  ;;  %v5326_v55 = vpop.f32.mrf.mxu3 }
 0x329   :  { %8572 = vst [vmem:[#allocation73_spill] sm:$0xff] %v5324_v8  ;;  %v5328_v46 = vpop.f32.mrf.mxu1 }
 0x32a   :  { %8573 = vst [vmem:[#allocation74_spill] sm:$0xff] %v5326_v55 }
 0x32b   :  { %8574 = vst [vmem:[#allocation75_spill] sm:$0xff] %v5328_v46  ;;  %3998 = vmatmul.msk.f32.gmra.mxu0 %vm592_vm1, %v4972_v27  ;;  %4028 = vmatmul.msk.f32.gmra.mxu1 %vm592_vm1, %v4972_v27 }
 0x32c   :  { %4058 = vmatmul.msk.f32.gmra.mxu2 %vm592_vm1, %v4972_v27 }
 0x32d   :  { %3966 = vmatmul.msk.f32.gmra.mxu3 %vm592_vm1, %v4936_v15 }
 0x32f   :  { %v5338_v19 = vpop.f32.mrf.mxu2 }
 0x330   :  { %8575 = vst [vmem:[#allocation76_spill] sm:$0xff] %v5338_v19  ;;  %v5340_v56 = vpop.f32.mrf.mxu0  ;;  %v5342_v8 = vpop.f32.mrf.mxu3 }
 0x331   :  { %8576 = vst [vmem:[#allocation77_spill] sm:$0xff] %v5340_v56  ;;  %v5344_v55 = vpop.f32.mrf.mxu1 }
 0x332   :  { %8577 = vst [vmem:[#allocation78_spill] sm:$0xff] %v5342_v8 }
 0x333   :  { %8578 = vst [vmem:[#allocation79_spill] sm:$0xff] %v5344_v55  ;;  %3999 = vmatmul.msk.f32.gmra.mxu0 %vm592_vm1, %v5006_v63  ;;  %4029 = vmatmul.msk.f32.gmra.mxu1 %vm592_vm1, %v5006_v63  ;;  %v1432_v55 = vadd.f32 %v5048_v34, %v5046_v31 }
 0x334   :  { %4059 = vmatmul.msk.f32.gmra.mxu2 %vm592_vm1, %v5006_v63 }
 0x335   :  { %3967 = vmatmul.msk.f32.gmra.mxu3 %vm592_vm1, %v4948_v52 }
 0x337   :  { %v5354_v15 = vpop.f32.mrf.mxu2 }
 0x338   :  { %8579 = vst [vmem:[#allocation80_spill] sm:$0xff] %v5354_v15  ;;  %v5356_v19 = vpop.f32.mrf.mxu0  ;;  %v5358_v56 = vpop.f32.mrf.mxu3 }
 0x339   :  { %8580 = vst [vmem:[#allocation81_spill] sm:$0xff] %v5356_v19  ;;  %v5360_v8 = vpop.f32.mrf.mxu1 }
 0x33a   :  { %8581 = vst [vmem:[#allocation82_spill] sm:$0xff] %v5358_v56 }
 0x33b   :  { %8582 = vst [vmem:[#allocation83_spill] sm:$0xff] %v5360_v8  ;;  %4000 = vmatmul.msk.f32.gmra.mxu0 %vm592_vm1, %v5016_v23  ;;  %4030 = vmatmul.msk.f32.gmra.mxu1 %vm592_vm1, %v5016_v23 }
 0x33c   :  { %4060 = vmatmul.msk.f32.gmra.mxu2 %vm592_vm1, %v5016_v23 }
 0x33d   :  { %3968 = vmatmul.msk.f32.gmra.mxu3 %vm592_vm1, %v4972_v27 }
 0x33f   :  { %v5370_v52 = vpop.f32.mrf.mxu2 }
 0x340   :  { %8583 = vst [vmem:[#allocation84_spill] sm:$0xff] %v5370_v52  ;;  %v5372_v15 = vpop.f32.mrf.mxu0  ;;  %v5374_v19 = vpop.f32.mrf.mxu3 }
 0x341   :  { %8584 = vst [vmem:[#allocation85_spill] sm:$0xff] %v5372_v15  ;;  %v5376_v56 = vpop.f32.mrf.mxu1 }
 0x342   :  { %8585 = vst [vmem:[#allocation86_spill] sm:$0xff] %v5374_v19 }
 0x343   :  { %8586 = vst [vmem:[#allocation87_spill] sm:$0xff] %v5376_v56  ;;  %4001 = vmatmul.msk.f32.gmra.mxu0 %vm592_vm1, %v5026_v1  ;;  %4031 = vmatmul.msk.f32.gmra.mxu1 %vm592_vm1, %v5026_v1 }
 0x344   :  { %4061 = vmatmul.msk.f32.gmra.mxu2 %vm592_vm1, %v5026_v1 }
 0x345   :  { %3969 = vmatmul.msk.f32.gmra.mxu3 %vm592_vm1, %v5006_v63 }
 0x347   :  { %v5386_v27 = vpop.f32.mrf.mxu2 }
 0x348   :  { %8587 = vst [vmem:[#allocation88_spill] sm:$0xff] %v5386_v27  ;;  %v5388_v52 = vpop.f32.mrf.mxu0  ;;  %v5390_v15 = vpop.f32.mrf.mxu3 }
 0x349   :  { %8588 = vst [vmem:[#allocation89_spill] sm:$0xff] %v5388_v52  ;;  %v5392_v19 = vpop.f32.mrf.mxu1 }
 0x34a   :  { %8589 = vst [vmem:[#allocation90_spill] sm:$0xff] %v5390_v15 }
 0x34b   :  { %8590 = vst [vmem:[#allocation91_spill] sm:$0xff] %v5392_v19  ;;  %4002 = vmatmul.msk.f32.gmra.mxu0 %vm592_vm1, %v5036_v16  ;;  %4032 = vmatmul.msk.f32.gmra.mxu1 %vm592_vm1, %v5036_v16 }
 0x34c   :  { %4062 = vmatmul.msk.f32.gmra.mxu2 %vm592_vm1, %v5036_v16 }
 0x34d   :  { %3970 = vmatmul.msk.f32.gmra.mxu3 %vm592_vm1, %v5016_v23 }
 0x34f   :  { %v5402_v63 = vpop.f32.mrf.mxu2 }
 0x350   :  { %8591 = vst [vmem:[#allocation92_spill] sm:$0xff] %v5402_v63  ;;  %v5404_v27 = vpop.f32.mrf.mxu3  ;;  %v5406_v52 = vpop.f32.mrf.mxu0 }
 0x351   :  { %8592 = vst [vmem:[#allocation93_spill] sm:$0xff] %v5404_v27  ;;  %v5408_v15 = vpop.f32.mrf.mxu1 }
 0x352   :  { %8593 = vst [vmem:[#allocation94_spill] sm:$0xff] %v5406_v52 }
 0x353   :  { %8594 = vst [vmem:[#allocation95_spill] sm:$0xff] %v5408_v15  ;;  %4003 = vmatmul.msk.f32.gmra.mxu0 %vm592_vm1, %v4825_v50  ;;  %4033 = vmatmul.msk.f32.gmra.mxu1 %vm592_vm1, %v4825_v50 }
 0x354   :  { %4063 = vmatmul.msk.f32.gmra.mxu2 %vm592_vm1, %v4825_v50 }
 0x355   :  { %3971 = vmatmul.msk.f32.gmra.mxu3 %vm592_vm1, %v5026_v1 }
 0x357   :  { %v5418_v23 = vpop.f32.mrf.mxu2 }
 0x358   :  { %8595 = vst [vmem:[#allocation96_spill] sm:$0xff] %v5418_v23  ;;  %v5420_v63 = vpop.f32.mrf.mxu3  ;;  %v5422_v27 = vpop.f32.mrf.mxu0 }
 0x359   :  { %8596 = vst [vmem:[#allocation97_spill] sm:$0xff] %v5420_v63  ;;  %v5424_v19 = vpop.f32.mrf.mxu1 }
 0x35a   :  { %8597 = vst [vmem:[#allocation98_spill] sm:$0xff] %v5422_v27 }
 0x35b   :  { %8598 = vst [vmem:[#allocation99_spill] sm:$0xff] %v5424_v19  ;;  %4004 = vmatmul.msk.f32.gmra.mxu0 %vm592_vm1, %v4827_v49  ;;  %4034 = vmatmul.msk.f32.gmra.mxu1 %vm592_vm1, %v4827_v49 }
 0x35c   :  { %4064 = vmatmul.msk.f32.gmra.mxu2 %vm592_vm1, %v4827_v49 }
 0x35d   :  { %3972 = vmatmul.msk.f32.gmra.mxu3 %vm592_vm1, %v5036_v16  ;;  %v1433_v16 = vadd.f32 %v1432_v55, %v5058_v13 }
 0x35f   :  { %v5434_v1 = vpop.f32.mrf.mxu2 }
 0x360   :  { %8599 = vst [vmem:[#allocation100_spill] sm:$0xff] %v5434_v1  ;;  %v5436_v56 = vpop.f32.mrf.mxu3  ;;  %v5438_v63 = vpop.f32.mrf.mxu0 }
 0x361   :  { %8600 = vst [vmem:[#allocation101_spill] sm:$0xff] %v5436_v56  ;;  %v5440_v8 = vpop.f32.mrf.mxu1 }
 0x362   :  { %8601 = vst [vmem:[#allocation102_spill] sm:$0xff] %v5438_v63 }
 0x363   :  { %8602 = vst [vmem:[#allocation103_spill] sm:$0xff] %v5440_v8  ;;  %4005 = vmatmul.msk.f32.gmra.mxu0 %vm592_vm1, %v4829_v5  ;;  %4035 = vmatmul.msk.f32.gmra.mxu1 %vm592_vm1, %v4829_v5 }
 0x364   :  { %4065 = vmatmul.msk.f32.gmra.mxu2 %vm592_vm1, %v4829_v5 }
 0x365   :  { %3973 = vmatmul.msk.f32.gmra.mxu3 %vm592_vm1, %v4825_v50 }
 0x367   :  { %v5453_v56 = vpop.f32.mrf.mxu2 }
 0x368   :  { %8603 = vst [vmem:[#allocation104_spill] sm:$0xff] %v5453_v56  ;;  %v5455_v46 = vpop.f32.mrf.mxu3  ;;  %v5457_v30 = vpop.f32.mrf.mxu0 }
 0x369   :  { %8604 = vst [vmem:[#allocation105_spill] sm:$0xff] %v5455_v46  ;;  %v1434_v34 = vadd.f32 %v1433_v16, %v5455_v46  ;;  %v5460_v31 = vpop.f32.mrf.mxu1  ;;  %v1437_v16 = vsel %vm117_vm0, %v5418_v23, 0.0 }
 0x36a   :  { %8605 = vst [vmem:[#allocation106_spill] sm:$0xff] %v5457_v30 }
 0x36b   :  { %8606 = vst [vmem:[#allocation107_spill] sm:$0xff] %v5460_v31  ;;  %4006 = vmatmul.msk.f32.gmra.mxu0 %vm592_vm1, %v4839_v14  ;;  %4036 = vmatmul.msk.f32.gmra.mxu1 %vm592_vm1, %v4839_v14  ;;  %v1435_v50 = vadd.f32 %v1434_v34, %v5406_v52 }
 0x36c   :  { %4066 = vmatmul.msk.f32.gmra.mxu2 %vm592_vm1, %v4839_v14 }
 0x36d   :  { %3974 = vmatmul.msk.f32.gmra.mxu3 %vm592_vm1, %v4827_v49  ;;  %v1436_v55 = vadd.f32 %v1435_v50, %v5408_v15  ;;  %v1450_v49 = vadd.f32 %v5076_v58, %v5074_v18 }
 0x36f   :  { %v5477_v37 = vpop.f32.mrf.mxu2  ;;  %v1438_v46 = vadd.f32 %v1437_v16, %v1436_v55  ;;  %v1451_v50 = vadd.f32 %v1450_v49, %v5086_v44 }
 0x370   :  { %8607 = vst [vmem:[#allocation108_spill] sm:$0xff] %v5477_v37  ;;  %v5479_v13 = vpop.f32.mrf.mxu3  ;;  %v5481_v9 = vpop.f32.mrf.mxu0 }
 0x371   :  { %8608 = vst [vmem:[#allocation109_spill] sm:$0xff] %v5479_v13  ;;  %v1443_v34 = vadd.f32 %v1442_v42, %v5479_v13  ;;  %v5484_v52 = vpop.f32.mrf.mxu1  ;;  %1439 = vadd.xlane.f32.xlu0 %v1438_v46  ;;  %v1446_v46 = vsel %vm117_vm0, %v5434_v1, 0.0 }
 0x372   :  { %8609 = vst [vmem:[#allocation110_spill] sm:$0xff] %v5481_v9 }
 0x373   :  { %8610 = vst [vmem:[#allocation111_spill] sm:$0xff] %v5484_v52  ;;  %4007 = vmatmul.msk.f32.gmra.mxu0 %vm592_vm1, %v4849_v53  ;;  %4037 = vmatmul.msk.f32.gmra.mxu1 %vm592_vm1, %v4849_v53  ;;  %v1444_v57 = vadd.f32 %v1443_v34, %v5422_v27 }
 0x374   :  { %4067 = vmatmul.msk.f32.gmra.mxu2 %vm592_vm1, %v4849_v53 }
 0x375   :  { %3975 = vmatmul.msk.f32.gmra.mxu3 %vm592_vm1, %v4829_v5  ;;  %v1445_v42 = vadd.f32 %v1444_v57, %v5424_v19  ;;  %v1459_v5 = vadd.f32 %v5090_v35, %v5088_v48 }
 0x377   :  { %v5501_v55 = vpop.f32.mrf.mxu2  ;;  %v1447_v16 = vadd.f32 %v1446_v46, %v1445_v42  ;;  %v1455_v42 = vsel %vm117_vm0, %v5453_v56, 0.0  ;;  %v1460_v46 = vadd.f32 %v1459_v5, %v5100_v51 }
 0x378   :  { %8611 = vst [vmem:[#allocation112_spill] sm:$0xff] %v5501_v55  ;;  %v5503_v58 = vpop.f32.mrf.mxu3  ;;  %v5505_v18 = vpop.f32.mrf.mxu0 }
 0x379   :  { %8612 = vst [vmem:[#allocation113_spill] sm:$0xff] %v5503_v58  ;;  %v1452_v34 = vadd.f32 %v1451_v50, %v5503_v58  ;;  %v5508_v27 = vpop.f32.mrf.mxu1  ;;  %1448 = vadd.xlane.f32.xlu0 %v1447_v16 }
 0x37a   :  { %8613 = vst [vmem:[#allocation114_spill] sm:$0xff] %v5505_v18 }
 0x37b   :  { %8614 = vst [vmem:[#allocation115_spill] sm:$0xff] %v5508_v27  ;;  %4008 = vmatmul.msk.f32.gmra.mxu0 %vm592_vm1, %v4859_v3  ;;  %4038 = vmatmul.msk.f32.gmra.mxu1 %vm592_vm1, %v4859_v3  ;;  %v1453_v49 = vadd.f32 %v1452_v34, %v5438_v63 }
 0x37c   :  { %4068 = vmatmul.msk.f32.gmra.mxu2 %vm592_vm1, %v4859_v3 }
 0x37d   :  { %3976 = vmatmul.msk.f32.gmra.mxu3 %vm592_vm1, %v4839_v14  ;;  %v1454_v57 = vadd.f32 %v1453_v49, %v5440_v8  ;;  %v1468_v14 = vadd.f32 %v5104_v10, %v5102_v11 }
 0x37f   :  { %v5525_v50 = vpop.f32.mrf.mxu2  ;;  %v1456_v16 = vadd.f32 %v1455_v42, %v1454_v57  ;;  %v1464_v57 = vsel %vm117_vm0, %v5477_v37, 0.0  ;;  %v1469_v42 = vadd.f32 %v1468_v14, %v5114_v26 }
 0x380   :  { %8615 = vst [vmem:[#allocation116_spill] sm:$0xff] %v5525_v50  ;;  %v5527_v35 = vpop.f32.mrf.mxu3  ;;  %v5529_v48 = vpop.f32.mrf.mxu0 }
 0x381   :  { %8616 = vst [vmem:[#allocation117_spill] sm:$0xff] %v5527_v35  ;;  %v1461_v34 = vadd.f32 %v1460_v46, %v5527_v35  ;;  %v5532_v63 = vpop.f32.mrf.mxu1  ;;  %1457 = vadd.xlane.f32.xlu0 %v1456_v16 }
 0x382   :  { %8617 = vst [vmem:[#allocation118_spill] sm:$0xff] %v5529_v48 }
 0x383   :  { %8618 = vst [vmem:[#allocation119_spill] sm:$0xff] %v5532_v63  ;;  %4009 = vmatmul.msk.f32.gmra.mxu0 %vm592_vm1, %v4869_v39  ;;  %4039 = vmatmul.msk.f32.gmra.mxu1 %vm592_vm1, %v4869_v39  ;;  %v1462_v5 = vadd.f32 %v1461_v34, %v5457_v30 }
 0x384   :  { %4069 = vmatmul.msk.f32.gmra.mxu2 %vm592_vm1, %v4869_v39 }
 0x385   :  { %3977 = vmatmul.msk.f32.gmra.mxu3 %vm592_vm1, %v4849_v53  ;;  %v1463_v49 = vadd.f32 %v1462_v5, %v5460_v31  ;;  %v1477_v53 = vadd.f32 %v5120_v61, %v5116_v21 }
 0x387   :  { %v5549_v46 = vpop.f32.mrf.mxu2  ;;  %v1465_v16 = vadd.f32 %v1464_v57, %v1463_v49  ;;  %v1473_v49 = vsel %vm117_vm0, %v5501_v55, 0.0  ;;  %v1478_v57 = vadd.f32 %v1477_v53, %v5130_v36 }
 0x388   :  { %8619 = vst [vmem:[#allocation120_spill] sm:$0xff] %v5549_v46  ;;  %v5551_v10 = vpop.f32.mrf.mxu3  ;;  %v5553_v11 = vpop.f32.mrf.mxu0 }
 0x389   :  { %8620 = vst [vmem:[#allocation121_spill] sm:$0xff] %v5551_v10  ;;  %v1470_v34 = vadd.f32 %v1469_v42, %v5551_v10  ;;  %v5556_v56 = vpop.f32.mrf.mxu1  ;;  %1466 = vadd.xlane.f32.xlu0 %v1465_v16 }
 0x38a   :  { %8621 = vst [vmem:[#allocation122_spill] sm:$0xff] %v5553_v11 }
 0x38b   :  { %8622 = vst [vmem:[#allocation123_spill] sm:$0xff] %v5556_v56  ;;  %4010 = vmatmul.msk.f32.gmra.mxu0 %vm592_vm1, %v4879_v54  ;;  %4040 = vmatmul.msk.f32.gmra.mxu1 %vm592_vm1, %v4879_v54  ;;  %v1471_v14 = vadd.f32 %v1470_v34, %v5481_v9 }
 0x38c   :  { %4070 = vmatmul.msk.f32.gmra.mxu2 %vm592_vm1, %v4879_v54 }
 0x38d   :  { %3978 = vmatmul.msk.f32.gmra.mxu3 %vm592_vm1, %v4859_v3  ;;  %v1472_v5 = vadd.f32 %v1471_v14, %v5484_v52  ;;  %v1486_v3 = vadd.f32 %v5136_v32, %v5132_v4 }
 0x38f   :  { %v5573_v42 = vpop.f32.mrf.mxu2  ;;  %v1474_v16 = vadd.f32 %v1473_v49, %v1472_v5  ;;  %v1482_v5 = vsel %vm117_vm0, %v5525_v50, 0.0 }
 0x390   :  { %8623 = vst [vmem:[#allocation124_spill] sm:$0xff] %v5573_v42  ;;  %v5575_v61 = vpop.f32.mrf.mxu3  ;;  %v5577_v21 = vpop.f32.mrf.mxu0 }
 0x391   :  { %8624 = vst [vmem:[#allocation125_spill] sm:$0xff] %v5575_v61  ;;  %v1479_v34 = vadd.f32 %v1478_v57, %v5575_v61  ;;  %v5580_v9 = vpop.f32.mrf.mxu1  ;;  %1475 = vadd.xlane.f32.xlu2 %v1474_v16  ;;  %v1487_v57 = vadd.f32 %v1486_v3, %v5146_v43 }
 0x392   :  { %8625 = vst [vmem:[#allocation126_spill] sm:$0xff] %v5577_v21 }
 0x393   :  { %8626 = vst [vmem:[#allocation127_spill] sm:$0xff] %v5580_v9  ;;  %4011 = vmatmul.msk.f32.gmra.mxu0 %vm592_vm1, %v4895_v29  ;;  %4041 = vmatmul.msk.f32.gmra.mxu1 %vm592_vm1, %v4895_v29  ;;  %v1480_v53 = vadd.f32 %v1479_v34, %v5505_v18 }
 0x394   :  { %4071 = vmatmul.msk.f32.gmra.mxu2 %vm592_vm1, %v4895_v29 }
 0x395   :  { %3979 = vmatmul.msk.f32.gmra.mxu3 %vm592_vm1, %v4869_v39  ;;  %v1481_v14 = vadd.f32 %v1480_v53, %v5508_v27  ;;  %v1495_v39 = vadd.f32 %v5152_v40, %v5148_v47 }
 0x397   :  { %v5596_v49 = vpop.f32.mrf.mxu2  ;;  %v1483_v16 = vadd.f32 %v1482_v5, %v1481_v14  ;;  %v1491_v14 = vsel %vm117_vm0, %v5549_v46, 0.0 }
 0x398   :  { %8627 = vst [vmem:[#allocation128_spill] sm:$0xff] %v5596_v49  ;;  %v5599_v61 = vpop.f32.mrf.mxu3  ;;  %v5601_v36 = vpop.f32.mrf.mxu0 }
 0x399   :  { %8628 = vst [vmem:[#allocation129_spill] sm:$0xff] %v5599_v61  ;;  %v1488_v34 = vadd.f32 %v1487_v57, %v5599_v61  ;;  %v5604_v18 = vpop.f32.mrf.mxu1  ;;  %1484 = vadd.xlane.f32.xlu0 %v1483_v16  ;;  %v1496_v57 = vadd.f32 %v1495_v39, %v5162_v59 }
 0x39a   :  { %8629 = vst [vmem:[#allocation130_spill] sm:$0xff] %v5601_v36 }
 0x39b   :  { %8630 = vst [vmem:[#allocation131_spill] sm:$0xff] %v5604_v18  ;;  %4012 = vmatmul.msk.f32.gmra.mxu0 %vm592_vm1, %v4908_v62  ;;  %4042 = vmatmul.msk.f32.gmra.mxu1 %vm592_vm1, %v4908_v62  ;;  %v1489_v3 = vadd.f32 %v1488_v34, %v5529_v48 }
 0x39c   :  { %4072 = vmatmul.msk.f32.gmra.mxu2 %vm592_vm1, %v4908_v62 }
 0x39d   :  { %3980 = vmatmul.msk.f32.gmra.mxu3 %vm592_vm1, %v4879_v54  ;;  %v1490_v53 = vadd.f32 %v1489_v3, %v5532_v63  ;;  %v1504_v54 = vadd.f32 %v5168_v7, %v5164_v33 }
 0x39f   :  { %v5620_v5 = vpop.f32.mrf.mxu2  ;;  %v1492_v16 = vadd.f32 %v1491_v14, %v1490_v53  ;;  %v1500_v53 = vsel %vm117_vm0, %v5573_v42, 0.0 }
 0x3a0   :  { %8631 = vst [vmem:[#allocation132_spill] sm:$0xff] %v5620_v5  ;;  %v5623_v50 = vpop.f32.mrf.mxu3  ;;  %v5625_v27 = vpop.f32.mrf.mxu0 }
 0x3a1   :  { %8632 = vst [vmem:[#allocation133_spill] sm:$0xff] %v5623_v50  ;;  %v1497_v34 = vadd.f32 %v1496_v57, %v5623_v50  ;;  %v5628_v40 = vpop.f32.mrf.mxu1  ;;  %1493 = vadd.xlane.f32.xlu0 %v1492_v16  ;;  %v1505_v57 = vadd.f32 %v1504_v54, %v5178_v22 }
 0x3a2   :  { %8633 = vst [vmem:[#allocation134_spill] sm:$0xff] %v5625_v27 }
 0x3a3   :  { %8634 = vst [vmem:[#allocation135_spill] sm:$0xff] %v5628_v40  ;;  %4013 = vmatmul.msk.f32.gmra.mxu0 %vm592_vm1, %v4920_v28  ;;  %4043 = vmatmul.msk.f32.gmra.mxu1 %vm592_vm1, %v4920_v28  ;;  %v1498_v39 = vadd.f32 %v1497_v34, %v5553_v11 }
 0x3a4   :  { %4073 = vmatmul.msk.f32.gmra.mxu2 %vm592_vm1, %v4920_v28 }
 0x3a5   :  { %3981 = vmatmul.msk.f32.gmra.mxu3 %vm592_vm1, %v4895_v29  ;;  %v1499_v3 = vadd.f32 %v1498_v39, %v5556_v56  ;;  %v1513_v29 = vadd.f32 %v5184_v60, %v5180_v2 }
 0x3a7   :  { %v5644_v14 = vpop.f32.mrf.mxu2  ;;  %v1501_v16 = vadd.f32 %v1500_v53, %v1499_v3  ;;  %v1509_v3 = vsel %vm117_vm0, %v5596_v49, 0.0 }
 0x3a8   :  { %8635 = vst [vmem:[#allocation136_spill] sm:$0xff] %v5644_v14  ;;  %v5647_v7 = vpop.f32.mrf.mxu3  ;;  %v5649_v33 = vpop.f32.mrf.mxu0 }
 0x3a9   :  { %8636 = vst [vmem:[#allocation137_spill] sm:$0xff] %v5647_v7  ;;  %v1506_v34 = vadd.f32 %v1505_v57, %v5647_v7  ;;  %v5652_v11 = vpop.f32.mrf.mxu1  ;;  %1502 = vadd.xlane.f32.xlu1 %v1501_v16  ;;  %v1514_v57 = vadd.f32 %v1513_v29, %v5194_v45  ;;  %v8702_v45 = vld [vmem:[#allocation73_spill] sm:$0xff] }
 0x3aa   :  { %8637 = vst [vmem:[#allocation138_spill] sm:$0xff] %v5649_v33 }
 0x3ab   :  { %8638 = vst [vmem:[#allocation139_spill] sm:$0xff] %v5652_v11  ;;  %4014 = vmatmul.msk.f32.gmra.mxu0 %vm592_vm1, %v4932_v20  ;;  %4044 = vmatmul.msk.f32.gmra.mxu1 %vm592_vm1, %v4932_v20  ;;  %v1507_v54 = vadd.f32 %v1506_v34, %v5577_v21 }
 0x3ac   :  { %4074 = vmatmul.msk.f32.gmra.mxu2 %vm592_vm1, %v4932_v20 }
 0x3ad   :  { %3982 = vmatmul.msk.f32.gmra.mxu3 %vm592_vm1, %v4908_v62  ;;  %v1508_v39 = vadd.f32 %v1507_v54, %v5580_v9  ;;  %v1522_v62 = vadd.f32 %v5200_v41, %v5196_v38 }
 0x3af   :  { %v5668_v53 = vpop.f32.mrf.mxu2  ;;  %v1510_v16 = vadd.f32 %v1509_v3, %v1508_v39  ;;  %v1518_v39 = vsel %vm117_vm0, %v5620_v5, 0.0  ;;  %v8693_v5 = vld [vmem:[#allocation71_spill] sm:$0xff] }
 0x3b0   :  { %8639 = vst [vmem:[#allocation140_spill] sm:$0xff] %v5668_v53  ;;  %v5671_v7 = vpop.f32.mrf.mxu3  ;;  %v5673_v22 = vpop.f32.mrf.mxu0 }
 0x3b1   :  { %8640 = vst [vmem:[#allocation141_spill] sm:$0xff] %v5671_v7  ;;  %v1515_v34 = vadd.f32 %v1514_v57, %v5671_v7  ;;  %v5676_v21 = vpop.f32.mrf.mxu1  ;;  %1511 = vadd.xlane.f32.xlu0 %v1510_v16  ;;  %v8644_v57 = vld [vmem:[#allocation44_spill] sm:$0xff] }
 0x3b2   :  { %8641 = vst [vmem:[#allocation142_spill] sm:$0xff] %v5673_v22  ;;  %v1523_v16 = vadd.f32 %v1522_v62, %v8644_v57 }
 0x3b3   :  { %8642 = vst [vmem:[#allocation143_spill] sm:$0xff] %v5676_v21  ;;  %4015 = vmatmul.msk.f32.gmra.mxu0 %vm592_vm1, %v4944_v12  ;;  %4045 = vmatmul.msk.f32.gmra.mxu1 %vm592_vm1, %v4944_v12  ;;  %v1516_v29 = vadd.f32 %v1515_v34, %v5601_v36 }
 0x3b4   :  { %4075 = vmatmul.msk.f32.gmra.mxu2 %vm592_vm1, %v4944_v12 }
 0x3b5   :  { %3983 = vmatmul.msk.f32.gmra.mxu3 %vm592_vm1, %v4920_v28  ;;  %v1517_v54 = vadd.f32 %v1516_v29, %v5604_v18  ;;  %v8648_v28 = vld [vmem:[#allocation45_spill] sm:$0xff] }
 0x3b6   :  { %v1531_v29 = vadd.f32 %v5216_v24, %v8648_v28  ;;  %v8649_v18 = vld [vmem:[#allocation5_spill] sm:$0xff] }
 0x3b7   :  { %v5692_v3 = vpop.f32.mrf.mxu2  ;;  %v1519_v49 = vadd.f32 %v1518_v39, %v1517_v54 }
 0x3b8   :  { %8643 = vst [vmem:[#allocation144_spill] sm:$0xff] %v5692_v3  ;;  %v5695_v9 = vpop.f32.mrf.mxu3  ;;  %v5697_v41 = vpop.f32.mrf.mxu0 }
 0x3b9   :  { %8645 = vst [vmem:[#allocation145_spill] sm:$0xff] %v5695_v9  ;;  %v1524_v34 = vadd.f32 %v1523_v16, %v5695_v9  ;;  %v5700_v38 = vpop.f32.mrf.mxu1  ;;  %1520 = vadd.xlane.f32.xlu0 %v1519_v49  ;;  %v1527_v49 = vsel %vm117_vm0, %v5644_v14, 0.0  ;;  %v8651_v16 = vld [vmem:[#allocation48_spill] sm:$0xff] }
 0x3ba   :  { %8646 = vst [vmem:[#allocation146_spill] sm:$0xff] %v5697_v41  ;;  %v1532_v24 = vadd.f32 %v1531_v29, %v8651_v16  ;;  %v8657_v16 = vld [vmem:[#allocation52_spill] sm:$0xff] }
 0x3bb   :  { %8647 = vst [vmem:[#allocation147_spill] sm:$0xff] %v5700_v38  ;;  %4016 = vmatmul.msk.f32.gmra.mxu0 %vm592_vm1, %v8649_v18  ;;  %4046 = vmatmul.msk.f32.gmra.mxu1 %vm592_vm1, %v8649_v18  ;;  %v1525_v62 = vadd.f32 %v1524_v34, %v5625_v27 }
 0x3bc   :  { %4076 = vmatmul.msk.f32.gmra.mxu2 %vm592_vm1, %v8649_v18 }
 0x3bd   :  { %3984 = vmatmul.msk.f32.gmra.mxu3 %vm592_vm1, %v4932_v20  ;;  %v1526_v54 = vadd.f32 %v1525_v62, %v5628_v40  ;;  %v8655_v20 = vld [vmem:[#allocation49_spill] sm:$0xff] }
 0x3be   :  { %v1540_v62 = vadd.f32 %v5232_v25, %v8655_v20 }
 0x3bf   :  { %v5716_v39 = vpop.f32.mrf.mxu2  ;;  %v1528_v28 = vadd.f32 %v1527_v49, %v1526_v54  ;;  %v1536_v54 = vsel %vm117_vm0, %v5668_v53, 0.0  ;;  %v8663_v53 = vld [vmem:[#allocation56_spill] sm:$0xff] }
 0x3c0   :  { %8650 = vst [vmem:[#allocation5_spill] sm:$0xff] %v5716_v39  ;;  %v5719_v9 = vpop.f32.mrf.mxu3  ;;  %v5721_v57 = vpop.f32.mrf.mxu0 }
 0x3c1   :  { %8652 = vst [vmem:[#allocation148_spill] sm:$0xff] %v5719_v9  ;;  %v1533_v34 = vadd.f32 %v1532_v24, %v5719_v9  ;;  %v5724_v27 = vpop.f32.mrf.mxu1  ;;  %1529 = vadd.xlane.f32.xlu0 %v1528_v28  ;;  %v1541_v24 = vadd.f32 %v1540_v62, %v8657_v16 }
 0x3c2   :  { %8653 = vst [vmem:[#allocation149_spill] sm:$0xff] %v5721_v57 }
 0x3c3   :  { %8654 = vst [vmem:[#allocation150_spill] sm:$0xff] %v5724_v27  ;;  %v1534_v40 = vadd.f32 %v1533_v34, %v5649_v33 }
 0x3c5   :  { %3985 = vmatmul.msk.f32.gmra.mxu3 %vm592_vm1, %v4944_v12  ;;  %v1535_v29 = vadd.f32 %v1534_v40, %v5652_v11  ;;  %v8661_v12 = vld [vmem:[#allocation53_spill] sm:$0xff] }
 0x3c6   :  { %v1549_v40 = vadd.f32 %v5248_v0, %v8661_v12 }
 0x3c7   :  { %v5734_v49 = vpop.f32.mrf.mxu2  ;;  %v1537_v9 = vadd.f32 %v1536_v54, %v1535_v29  ;;  %v1545_v29 = vsel %vm117_vm0, %v5692_v3, 0.0 }
 0x3c8   :  { %8656 = vst [vmem:[#allocation151_spill] sm:$0xff] %v5734_v49  ;;  %v5737_v14 = vpop.f32.mrf.mxu3  ;;  %v5739_v28 = vpop.f32.mrf.mxu0 }
 0x3c9   :  { %8658 = vst [vmem:[#allocation152_spill] sm:$0xff] %v5737_v14  ;;  %v1542_v25 = vadd.f32 %v1541_v24, %v5737_v14  ;;  %v5742_v34 = vpop.f32.mrf.mxu1  ;;  %1538 = vadd.xlane.f32.xlu0 %v1537_v9  ;;  %v1550_v24 = vadd.f32 %v1549_v40, %v8663_v53  ;;  %v1554_v40 = vsel %vm117_vm0, %v5716_v39, 0.0 }
 0x3ca   :  { %8659 = vst [vmem:[#allocation153_spill] sm:$0xff] %v5739_v28 }
 0x3cb   :  { %8660 = vst [vmem:[#allocation154_spill] sm:$0xff] %v5742_v34  ;;  %v1543_v11 = vadd.f32 %v1542_v25, %v5673_v22 }
 0x3cd   :  { %3986 = vmatmul.msk.f32.gmra.mxu3 %vm592_vm1, %v8649_v18  ;;  %v1544_v62 = vadd.f32 %v1543_v11, %v5676_v21  ;;  %v8667_v18 = vld [vmem:[#allocation57_spill] sm:$0xff] }
 0x3ce   :  { %v1558_v11 = vadd.f32 %v5264_v6, %v8667_v18  ;;  %v8672_v6 = vld [vmem:[#allocation61_spill] sm:$0xff]  ;;  %v8673_v18 = vld [vmem:[#allocation63_spill] sm:$0xff] }
 0x3cf   :  { %v5752_v54 = vpop.f32.mrf.mxu2  ;;  %v1546_v33 = vadd.f32 %v1545_v29, %v1544_v62  ;;  %v8669_v29 = vld [vmem:[#allocation60_spill] sm:$0xff] }
 0x3d0   :  { %8662 = vst [vmem:[#allocation155_spill] sm:$0xff] %v5752_v54  ;;  %v5755_v14 = vpop.f32.mrf.mxu3  ;;  %v5757_v9 = vpop.f32.mrf.mxu0  ;;  %v1559_v53 = vadd.f32 %v1558_v11, %v8669_v29  ;;  %v1563_v11 = vsel %vm117_vm0, %v5734_v49, 0.0 }
 0x3d1   :  { %8664 = vst [vmem:[#allocation156_spill] sm:$0xff] %v5755_v14  ;;  %v1551_v0 = vadd.f32 %v1550_v24, %v5755_v14  ;;  %1547 = vadd.xlane.f32.xlu0 %v1546_v33  ;;  %v5760_v25 = vpop.f32.mrf.mxu1 }
 0x3d2   :  { %8665 = vst [vmem:[#allocation157_spill] sm:$0xff] %v5757_v9 }
 0x3d3   :  { %8666 = vst [vmem:[#allocation158_spill] sm:$0xff] %v5760_v25  ;;  %v1552_v12 = vadd.f32 %v1551_v0, %v5697_v41  ;;  %v1567_v0 = vadd.f32 %v8673_v18, %v8672_v6 }
 0x3d5   :  { %v1553_v3 = vadd.f32 %v1552_v12, %v5700_v38 }
 0x3d7   :  { %v5768_v62 = vpop.f32.mrf.mxu2  ;;  %v1555_v21 = vadd.f32 %v1554_v40, %v1553_v3  ;;  %v8676_v40 = vld [vmem:[#allocation64_spill] sm:$0xff] }
 0x3d8   :  { %8668 = vst [vmem:[#allocation159_spill] sm:$0xff] %v5768_v62  ;;  %v5771_v22 = vpop.f32.mrf.mxu3  ;;  %v5774_v24 = vpop.f32.mrf.mxu0  ;;  %v1568_v29 = vadd.f32 %v1567_v0, %v8676_v40 }
 0x3d9   :  { %8670 = vst [vmem:[#allocation160_spill] sm:$0xff] %v5771_v22  ;;  %v1560_v33 = vadd.f32 %v1559_v53, %v5771_v22  ;;  %1556 = vadd.xlane.f32.xlu0 %v1555_v21  ;;  %v5779_v38 = vpop.f32.mrf.mxu1 }
 0x3da   :  { %8671 = vst [vmem:[#allocation161_spill] sm:$0xff] %v5774_v24 }
 0x3db   :  { %v1561_v12 = vadd.f32 %v1560_v33, %v5721_v57  ;;  %8674 = vst [vmem:[#allocation162_spill] sm:$0xff] %v5779_v38  ;;  %v8678_v33 = vld [vmem:[#allocation65_spill] sm:$0xff]  ;;  %v8679_v57 = vld [vmem:[#allocation67_spill] sm:$0xff] }
 0x3dc   :  { %v1576_v6 = vadd.f32 %v8679_v57, %v8678_v33  ;;  %v8686_v33 = vld [vmem:[#allocation7_spill] sm:$0xff] }
 0x3dd   :  { %v1562_v39 = vadd.f32 %v1561_v12, %v5724_v27 }
 0x3df   :  { %v5784_v3 = vpop.f32.mrf.mxu2  ;;  %v1564_v53 = vadd.f32 %v1563_v11, %v1562_v39  ;;  %v8683_v39 = vld [vmem:[#allocation68_spill] sm:$0xff] }
 0x3e0   :  { %8675 = vst [vmem:[#allocation163_spill] sm:$0xff] %v5784_v3  ;;  %v5787_v21 = vpop.f32.mrf.mxu3  ;;  %v5793_v41 = vpop.f32.mrf.mxu0  ;;  %v1577_v0 = vadd.f32 %v1576_v6, %v8683_v39  ;;  %v8689_v6 = vld [vmem:[#allocation105_spill] sm:$0xff] }
 0x3e1   :  { %8677 = vst [vmem:[#allocation164_spill] sm:$0xff] %v5787_v21  ;;  %v1569_v22 = vadd.f32 %v1568_v29, %v5787_v21  ;;  %1565 = vadd.xlane.f32.xlu0 %v1564_v53  ;;  %v5798_v14 = vpop.f32.mrf.mxu1  ;;  %v1572_v29 = vsel %vm117_vm0, %v5752_v54, 0.0  ;;  %v8685_v53 = vld [vmem:[#allocation6_spill] sm:$0xff] }
 0x3e2   :  { %8680 = vst [vmem:[#allocation165_spill] sm:$0xff] %v5793_v41 }
 0x3e3   :  { %v1570_v18 = vadd.f32 %v1569_v22, %v5739_v28  ;;  %8682 = vst [vmem:[#allocation167_spill] sm:$0xff] %v5798_v14 }
 0x3e4   :  { %v1440_v12 = vpop.xlane.xlu0 %1439 }
 0x3e5   :  { %v5795_v27 = vmul.f32 0.0012755102, %v1440_v12  ;;  %v1571_v49 = vadd.f32 %v1570_v18, %v5742_v34  ;;  %v8687_v12 = vld [vmem:[#allocation8_spill] sm:$0xff] }
 0x3e7   :  { %8681 = vst [vmem:[#allocation166_spill] sm:$0xff] %v5795_v27  ;;  %v5803_v11 = vpop.f32.mrf.mxu2  ;;  %v1573_v22 = vadd.f32 %v1572_v29, %v1571_v49  ;;  %v1732_v57 = vsub.f32 %v8685_v53, %v5795_v27  ;;  %v1733_v28 = vsub.f32 %v8686_v33, %v5795_v27  ;;  %v1734_v21 = vsub.f32 %v8687_v12, %v5795_v27  ;;  %v8690_v49 = vld [vmem:[#allocation94_spill] sm:$0xff] }
 0x3e8   :  { %8684 = vst [vmem:[#allocation168_spill] sm:$0xff] %v5803_v11  ;;  %v5811_v18 = vpop.f32.mrf.mxu3  ;;  %v1735_v39 = vsub.f32 %v8689_v6, %v5795_v27  ;;  %v1736_v29 = vsub.f32 %v8690_v49, %v5795_v27  ;;  %v1737_v12 = vsub.f32 %v5408_v15, %v5795_v27  ;;  %v5828_v36 = vpop.f32.mrf.mxu0 }
 0x3e9   :  { %8688 = vst [vmem:[#allocation169_spill] sm:$0xff] %v5811_v18  ;;  %v1578_v34 = vadd.f32 %v1577_v0, %v5811_v18  ;;  %1574 = vadd.xlane.f32.xlu0 %v1573_v22  ;;  %v1942_v54 = vmul.f32 %v1732_v57, %v1732_v57  ;;  %v1943_v40 = vmul.f32 %v1733_v28, %v1733_v28  ;;  %v8692_v18 = vld [vmem:[#allocation69_spill] sm:$0xff] }
 0x3ea   :  { %v1944_v16 = vmul.f32 %v1734_v21, %v1734_v21  ;;  %v1738_v0 = vsub.f32 %v5418_v23, %v5795_v27  ;;  %v1945_v57 = vmul.f32 %v1735_v39, %v1735_v39  ;;  %v1585_v49 = vadd.f32 %v8693_v5, %v8692_v18  ;;  %8694 = vst [vmem:[#allocation171_spill] sm:$0xff] %v5828_v36  ;;  %v8700_v27 = vld [vmem:[#allocation72_spill] sm:$0xff] }
 0x3eb   :  { %v1579_v53 = vadd.f32 %v1578_v34, %v5757_v9  ;;  %v2152_v33 = vadd.f32 %v1943_v40, %v1942_v54  ;;  %v1581_v34 = vsel %vm117_vm0, %v5768_v62, 0.0  ;;  %v1946_v54 = vmul.f32 %v1736_v29, %v1736_v29  ;;  %v8701_v9 = vld [vmem:[#allocation98_spill] sm:$0xff] }
 0x3ec   :  { %v1449_v20 = vpop.xlane.xlu0 %1448  ;;  %v1586_v5 = vadd.f32 %v1585_v49, %v8700_v27  ;;  %v1947_v29 = vmul.f32 %v1737_v12, %v1737_v12  ;;  %v1948_v62 = vmul.f32 %v1738_v0, %v1738_v0 }
 0x3ed   :  { %v5823_v22 = vmul.f32 0.0012755102, %v1449_v20  ;;  %v1580_v6 = vadd.f32 %v1579_v53, %v5760_v25  ;;  %v2153_v28 = vadd.f32 %v2152_v33, %v1944_v16  ;;  %v8696_v20 = vld [vmem:[#allocation9_spill] sm:$0xff]  ;;  %v8697_v53 = vld [vmem:[#allocation10_spill] sm:$0xff]  ;;  %v5838_v16 = vpop.f32.mrf.mxu1 }
 0x3ee   :  { %8698 = vst [vmem:[#allocation173_spill] sm:$0xff] %v5838_v16 }
 0x3ef   :  { %8691 = vst [vmem:[#allocation170_spill] sm:$0xff] %v5823_v22  ;;  %v5832_v40 = vpop.f32.mrf.mxu2  ;;  %v1582_v21 = vadd.f32 %v1581_v34, %v1580_v6  ;;  %v2154_v15 = vadd.f32 %v2153_v28, %v1945_v57  ;;  %v1739_v23 = vsub.f32 %v8696_v20, %v5823_v22  ;;  %v1740_v39 = vsub.f32 %v8697_v53, %v5823_v22 }
 0x3f0   :  { %8695 = vst [vmem:[#allocation172_spill] sm:$0xff] %v5832_v40  ;;  %v5840_v33 = vpop.f32.mrf.mxu3  ;;  %v1741_v18 = vsub.f32 %v5072_v17, %v5823_v22  ;;  %v1742_v34 = vsub.f32 %v5479_v13, %v5823_v22  ;;  %v1743_v7 = vsub.f32 %v8701_v9, %v5823_v22  ;;  %v8703_v17 = vld [vmem:[#allocation75_spill] sm:$0xff]  ;;  %v8709_v9 = vld [vmem:[#allocation76_spill] sm:$0xff] }
 0x3f1   :  { %8699 = vst [vmem:[#allocation174_spill] sm:$0xff] %v5840_v33  ;;  %1583 = vadd.xlane.f32.xlu0 %v1582_v21  ;;  %v2155_v6 = vadd.f32 %v2154_v15, %v1946_v54  ;;  %v1949_v57 = vmul.f32 %v1739_v23, %v1739_v23  ;;  %v1587_v28 = vadd.f32 %v1586_v5, %v5840_v33  ;;  %v2157_v15 = vsel %vm117_vm0, %v1948_v62, 0.0 }
 0x3f2   :  { %v1950_v53 = vmul.f32 %v1740_v39, %v1740_v39  ;;  %v1951_v49 = vmul.f32 %v1741_v18, %v1741_v18  ;;  %v1594_v21 = vadd.f32 %v8703_v17, %v8702_v45  ;;  %v1745_v23 = vsub.f32 %v5434_v1, %v5823_v22  ;;  %v8705_v18 = vld [vmem:[#allocation12_spill] sm:$0xff] }
 0x3f3   :  { %v2156_v20 = vadd.f32 %v2155_v6, %v1947_v29  ;;  %v1744_v5 = vsub.f32 %v5424_v19, %v5823_v22  ;;  %v1952_v0 = vmul.f32 %v1742_v34, %v1742_v34  ;;  %v1588_v39 = vadd.f32 %v1587_v28, %v5774_v24  ;;  %v8706_v6 = vld [vmem:[#allocation13_spill] sm:$0xff] }
 0x3f4   :  { %v1458_v25 = vpop.xlane.xlu0 %1457  ;;  %v2161_v27 = vadd.f32 %v1950_v53, %v1949_v57  ;;  %v5864_v57 = vpop.f32.mrf.mxu0  ;;  %v1595_v1 = vadd.f32 %v1594_v21, %v8709_v9  ;;  %v1953_v13 = vmul.f32 %v1743_v7, %v1743_v7 }
 0x3f5   :  { %v5852_v12 = vmul.f32 0.0012755102, %v1458_v25  ;;  %v2158_v29 = vadd.f32 %v2157_v15, %v2156_v20  ;;  %8707 = vst [vmem:[#allocation176_spill] sm:$0xff] %v5864_v57  ;;  %v1589_v22 = vadd.f32 %v1588_v39, %v5779_v38  ;;  %v8714_v39 = vld [vmem:[#allocation16_spill] sm:$0xff] }
 0x3f6   :  { %v2162_v54 = vadd.f32 %v2161_v27, %v1951_v49  ;;  %v1955_v27 = vmul.f32 %v1745_v23, %v1745_v23  ;;  %v5873_v49 = vpop.f32.mrf.mxu1 }
 0x3f7   :  { %8704 = vst [vmem:[#allocation175_spill] sm:$0xff] %v5852_v12  ;;  %v1746_v53 = vsub.f32 %v8705_v18, %v5852_v12  ;;  %v1747_v25 = vsub.f32 %v8706_v6, %v5852_v12  ;;  %v5869_v19 = vpop.f32.mrf.mxu2  ;;  %v1748_v20 = vsub.f32 %v5086_v44, %v5852_v12  ;;  %v1954_v6 = vmul.f32 %v1744_v5, %v1744_v5 }
 0x3f8   :  { %v5866_v62 = vpop.f32.mrf.mxu3  ;;  %v2163_v17 = vadd.f32 %v2162_v54, %v1952_v0  ;;  %8710 = vst [vmem:[#allocation178_spill] sm:$0xff] %v5869_v19  ;;  %v1590_v54 = vsel %vm117_vm0, %v5784_v3, 0.0 }
 0x3f9   :  { %8708 = vst [vmem:[#allocation177_spill] sm:$0xff] %v5866_v62  ;;  %2159 = vadd.xlane.f32.xlu0 %v2158_v29  ;;  %v1956_v28 = vmul.f32 %v1746_v53, %v1746_v53  ;;  %v1957_v34 = vmul.f32 %v1747_v25, %v1747_v25  ;;  %v1596_v15 = vadd.f32 %v1595_v1, %v5866_v62  ;;  %v2166_v29 = vsel %vm117_vm0, %v1955_v27, 0.0 }
 0x3fa   :  { %8711 = vst [vmem:[#allocation179_spill] sm:$0xff] %v5873_v49  ;;  %v2164_v18 = vadd.f32 %v2163_v17, %v1953_v13  ;;  %v1749_v53 = vsub.f32 %v5503_v58, %v5852_v12  ;;  %v1958_v25 = vmul.f32 %v1748_v20, %v1748_v20  ;;  %v1591_v1 = vadd.f32 %v1590_v54, %v1589_v22  ;;  %v8713_v17 = vld [vmem:[#allocation15_spill] sm:$0xff] }
 0x3fb   :  { %v2170_v21 = vadd.f32 %v1957_v34, %v1956_v28  ;;  %v1597_v13 = vadd.f32 %v1596_v15, %v5793_v41  ;;  %v8716_v34 = vld [vmem:[#allocation102_spill] sm:$0xff] }
 0x3fc   :  { %v1467_v7 = vpop.xlane.xlu0 %1466  ;;  %v2165_v0 = vadd.f32 %v2164_v18, %v1954_v6  ;;  %v1750_v20 = vsub.f32 %v8716_v34, %v5852_v12  ;;  %v5897_v54 = vpop.f32.mrf.mxu0 }
 0x3fd   :  { %v5879_v23 = vmul.f32 0.0012755102, %v1467_v7  ;;  %v2171_v28 = vadd.f32 %v2170_v21, %v1958_v25  ;;  %8717 = vst [vmem:[#allocation182_spill] sm:$0xff] %v5897_v54  ;;  %v1599_v25 = vsel %vm117_vm0, %v5803_v11, 0.0 }
 0x3fe   :  { %v2167_v44 = vadd.f32 %v2166_v29, %v2165_v0  ;;  %v1959_v0 = vmul.f32 %v1749_v53, %v1749_v53  ;;  %v1598_v29 = vadd.f32 %v1597_v13, %v5798_v14  ;;  %v1751_v13 = vsub.f32 %v5440_v8, %v5852_v12  ;;  %v8724_v8 = vld [vmem:[#allocation18_spill] sm:$0xff] }
 0x3ff   :  { %8712 = vst [vmem:[#allocation180_spill] sm:$0xff] %v5879_v23  ;;  %v1753_v5 = vsub.f32 %v8713_v17, %v5879_v23  ;;  %v1754_v18 = vsub.f32 %v8714_v39, %v5879_v23  ;;  %v1755_v6 = vsub.f32 %v5100_v51, %v5879_v23  ;;  %v1756_v22 = vsub.f32 %v5527_v35, %v5879_v23  ;;  %v5906_v17 = vpop.f32.mrf.mxu1 }
 0x400   :  { %2168 = vadd.xlane.f32.xlu2 %v2167_v44  ;;  %v5891_v27 = vpop.f32.mrf.mxu3  ;;  %v1757_v21 = vsub.f32 %v5457_v30, %v5879_v23  ;;  %v5902_v44 = vpop.f32.mrf.mxu2  ;;  %v2172_v39 = vadd.f32 %v2171_v28, %v1959_v0  ;;  %8719 = vst [vmem:[#allocation184_spill] sm:$0xff] %v5906_v17  ;;  %v1759_v53 = vsub.f32 %v5477_v37, %v5879_v23  ;;  %v8723_v0 = vld [vmem:[#allocation79_spill] sm:$0xff] }
 0x401   :  { %8715 = vst [vmem:[#allocation181_spill] sm:$0xff] %v5891_v27  ;;  %1592 = vadd.xlane.f32.xlu0 %v1591_v1  ;;  %v1963_v15 = vmul.f32 %v1753_v5, %v1753_v5  ;;  %v1964_v7 = vmul.f32 %v1754_v18, %v1754_v18  ;;  %v1965_v51 = vmul.f32 %v1755_v6, %v1755_v6  ;;  %v8720_v18 = vld [vmem:[#allocation104_spill] sm:$0xff] }
 0x402   :  { %8718 = vst [vmem:[#allocation183_spill] sm:$0xff] %v5902_v44  ;;  %v1752_v30 = vsub.f32 %v8720_v18, %v5852_v12  ;;  %v1960_v35 = vmul.f32 %v1750_v20, %v1750_v20  ;;  %v1758_v6 = vsub.f32 %v5460_v31, %v5879_v23  ;;  %v1600_v11 = vadd.f32 %v1599_v25, %v1598_v29  ;;  %v8725_v18 = vld [vmem:[#allocation19_spill] sm:$0xff] }
 0x403   :  { %v2179_v1 = vadd.f32 %v1964_v7, %v1963_v15  ;;  %v1966_v15 = vmul.f32 %v1756_v22, %v1756_v22  ;;  %v8722_v7 = vld [vmem:[#allocation77_spill] sm:$0xff]  ;;  %v1967_v14 = vmul.f32 %v1757_v21, %v1757_v21  ;;  %v1969_v31 = vmul.f32 %v1759_v53, %v1759_v53 }
 0x404   :  { %v1476_v5 = vpop.xlane.xlu2 %1475  ;;  %v1603_v58 = vadd.f32 %v8723_v0, %v8722_v7  ;;  %v2173_v41 = vadd.f32 %v2172_v39, %v1960_v35  ;;  %v1968_v22 = vmul.f32 %v1758_v6, %v1758_v6  ;;  %v1961_v21 = vmul.f32 %v1751_v13, %v1751_v13  ;;  %v8731_v13 = vld [vmem:[#allocation83_spill] sm:$0xff] }
 0x405   :  { %v5914_v34 = vmul.f32 0.0012755102, %v1476_v5  ;;  %v2180_v28 = vadd.f32 %v2179_v1, %v1965_v51  ;;  %v8726_v5 = vld [vmem:[#allocation80_spill] sm:$0xff]  ;;  %v1962_v25 = vmul.f32 %v1752_v30, %v1752_v30  ;;  %v8730_v30 = vld [vmem:[#allocation81_spill] sm:$0xff] }
 0x406   :  { %v1604_v12 = vadd.f32 %v1603_v58, %v8726_v5  ;;  %v2174_v58 = vadd.f32 %v2173_v41, %v1961_v21  ;;  %v8735_v21 = vld [vmem:[#allocation84_spill] sm:$0xff] }
 0x407   :  { %8721 = vst [vmem:[#allocation185_spill] sm:$0xff] %v5914_v34  ;;  %v2181_v37 = vadd.f32 %v2180_v28, %v1966_v15  ;;  %v1760_v62 = vsub.f32 %v8724_v8, %v5914_v34  ;;  %v1761_v20 = vsub.f32 %v8725_v18, %v5914_v34  ;;  %v1762_v51 = vsub.f32 %v5114_v26, %v5914_v34  ;;  %v5932_v18 = vpop.f32.mrf.mxu0 }
 0x408   :  { %v5925_v9 = vpop.f32.mrf.mxu3  ;;  %v1763_v35 = vsub.f32 %v5551_v10, %v5914_v34  ;;  %v1605_v15 = vadd.f32 %v1604_v12, %v5891_v27  ;;  %8728 = vst [vmem:[#allocation187_spill] sm:$0xff] %v5932_v18  ;;  %v2184_v8 = vsel %vm117_vm0, %v1969_v31, 0.0  ;;  %v1612_v26 = vadd.f32 %v8731_v13, %v8730_v30  ;;  %v5939_v10 = vpop.f32.mrf.mxu2 }
 0x409   :  { %8727 = vst [vmem:[#allocation186_spill] sm:$0xff] %v5925_v9  ;;  %1601 = vadd.xlane.f32.xlu0 %v1600_v11  ;;  %v2182_v29 = vadd.f32 %v2181_v37, %v1967_v14  ;;  %v1970_v39 = vmul.f32 %v1760_v62, %v1760_v62  ;;  %v1971_v1 = vmul.f32 %v1761_v20, %v1761_v20  ;;  %v8729_v11 = vld [vmem:[#allocation110_spill] sm:$0xff]  ;;  %v2175_v12 = vsel %vm117_vm0, %v1962_v25, 0.0  ;;  %v5944_v20 = vpop.f32.mrf.mxu1 }
 0x40a   :  { %v1764_v6 = vsub.f32 %v8729_v11, %v5914_v34  ;;  %v1972_v37 = vmul.f32 %v1762_v51, %v1762_v51  ;;  %8732 = vst [vmem:[#allocation188_spill] sm:$0xff] %v5939_v10  ;;  %v1766_v41 = vsub.f32 %v5501_v55, %v5914_v34  ;;  %v1765_v31 = vsub.f32 %v5484_v52, %v5914_v34  ;;  %v8737_v52 = vld [vmem:[#allocation21_spill] sm:$0xff] }
 0x40b   :  { %v2183_v28 = vadd.f32 %v2182_v29, %v1968_v22  ;;  %v2188_v14 = vadd.f32 %v1971_v1, %v1970_v39  ;;  %8733 = vst [vmem:[#allocation189_spill] sm:$0xff] %v5944_v20  ;;  %v1973_v51 = vmul.f32 %v1763_v35, %v1763_v35  ;;  %v1613_v39 = vadd.f32 %v1612_v26, %v8735_v21 }
 0x40c   :  { %v1485_v53 = vpop.xlane.xlu0 %1484  ;;  %v2176_v1 = vadd.f32 %v2175_v12, %v2174_v58  ;;  %v1974_v25 = vmul.f32 %v1764_v6, %v1764_v6  ;;  %v1975_v23 = vmul.f32 %v1765_v31, %v1765_v31  ;;  %v8740_v12 = vld [vmem:[#allocation87_spill] sm:$0xff] }
 0x40d   :  { %v2185_v62 = vadd.f32 %v2184_v8, %v2183_v28  ;;  %v5946_v22 = vmul.f32 0.0012755102, %v1485_v53  ;;  %v2189_v29 = vadd.f32 %v2188_v14, %v1972_v37  ;;  %v1606_v8 = vadd.f32 %v1605_v15, %v5828_v36  ;;  %v8738_v37 = vld [vmem:[#allocation23_spill] sm:$0xff] }
 0x40e   :  { %v1614_v55 = vadd.f32 %v1613_v39, %v5925_v9  ;;  %v1976_v53 = vmul.f32 %v1766_v41, %v1766_v41 }
 0x40f   :  { %8734 = vst [vmem:[#allocation190_spill] sm:$0xff] %v5946_v22  ;;  %2186 = vadd.xlane.f32.xlu1 %v2185_v62  ;;  %v2190_v11 = vadd.f32 %v2189_v29, %v1973_v51  ;;  %v1767_v35 = vsub.f32 %v8737_v52, %v5946_v22  ;;  %v1768_v26 = vsub.f32 %v8738_v37, %v5946_v22  ;;  %v8739_v62 = vld [vmem:[#allocation85_spill] sm:$0xff]  ;;  %v5967_v41 = vpop.f32.mrf.mxu0  ;;  %v8745_v52 = vld [vmem:[#allocation88_spill] sm:$0xff] }
 0x410   :  { %v5952_v28 = vpop.f32.mrf.mxu3  ;;  %v1607_v58 = vadd.f32 %v1606_v8, %v5838_v16  ;;  %v1621_v6 = vadd.f32 %v8740_v12, %v8739_v62  ;;  %v2193_v29 = vsel %vm117_vm0, %v1976_v53, 0.0  ;;  %8742 = vst [vmem:[#allocation193_spill] sm:$0xff] %v5967_v41  ;;  %v1615_v39 = vadd.f32 %v1614_v55, %v5864_v57  ;;  %v5970_v8 = vpop.f32.mrf.mxu2 }
 0x411   :  { %8736 = vst [vmem:[#allocation191_spill] sm:$0xff] %v5952_v28  ;;  %2177 = vadd.xlane.f32.xlu0 %v2176_v1  ;;  %v2191_v13 = vadd.f32 %v2190_v11, %v1974_v25  ;;  %v1608_v11 = vsel %vm117_vm0, %v5832_v40, 0.0  ;;  %v1977_v1 = vmul.f32 %v1767_v35, %v1767_v35  ;;  %v1978_v25 = vmul.f32 %v1768_v26, %v1768_v26  ;;  %v5978_v37 = vpop.f32.mrf.mxu1  ;;  %v8747_v35 = vld [vmem:[#allocation24_spill] sm:$0xff] }
 0x412   :  { %8743 = vst [vmem:[#allocation194_spill] sm:$0xff] %v5970_v8  ;;  %v1769_v26 = vsub.f32 %v8747_v35, %v5946_v22 }
 0x413   :  { %v2192_v15 = vadd.f32 %v2191_v13, %v1975_v23  ;;  %v1609_v23 = vadd.f32 %v1608_v11, %v1607_v58  ;;  %8744 = vst [vmem:[#allocation195_spill] sm:$0xff] %v5978_v37 }
 0x414   :  { %v1494_v14 = vpop.xlane.xlu0 %1493 }
 0x415   :  { %v5962_v51 = vmul.f32 0.0012755102, %v1494_v14  ;;  %v2194_v31 = vadd.f32 %v2193_v29, %v2192_v15  ;;  %v1622_v15 = vadd.f32 %v1621_v6, %v8745_v52  ;;  %v2197_v6 = vadd.f32 %v1978_v25, %v1977_v1 }
 0x417   :  { %8741 = vst [vmem:[#allocation192_spill] sm:$0xff] %v5962_v51  ;;  %v1774_v13 = vsub.f32 %v5132_v4, %v5962_v51  ;;  %v1775_v14 = vsub.f32 %v5136_v32, %v5962_v51  ;;  %v1776_v53 = vsub.f32 %v5146_v43, %v5962_v51  ;;  %2195 = vadd.xlane.f32.xlu2 %v2194_v31 }
 0x418   :  { %v5981_v55 = vpop.f32.mrf.mxu3  ;;  %v1777_v58 = vsub.f32 %v5599_v61, %v5962_v51  ;;  %v1623_v32 = vadd.f32 %v1622_v15, %v5952_v28  ;;  %v1616_v43 = vadd.f32 %v1615_v39, %v5873_v49  ;;  %v1778_v4 = vsub.f32 %v5529_v48, %v5962_v51 }
 0x419   :  { %8746 = vst [vmem:[#allocation196_spill] sm:$0xff] %v5981_v55  ;;  %1610 = vadd.xlane.f32.xlu0 %v1609_v23  ;;  %v1984_v29 = vmul.f32 %v1774_v13, %v1774_v13  ;;  %v1985_v11 = vmul.f32 %v1775_v14, %v1775_v14  ;;  %v1986_v31 = vmul.f32 %v1776_v53, %v1776_v53  ;;  %v8748_v13 = vld [vmem:[#allocation125_spill] sm:$0xff]  ;;  %v1617_v39 = vsel %vm117_vm0, %v5869_v19, 0.0 }
 0x41a   :  { %v1779_v35 = vsub.f32 %v5532_v63, %v5962_v51  ;;  %v1780_v23 = vsub.f32 %v5549_v46, %v5962_v51  ;;  %v1770_v14 = vsub.f32 %v8748_v13, %v5946_v22  ;;  %v1979_v61 = vmul.f32 %v1769_v26, %v1769_v26  ;;  %v8750_v51 = vld [vmem:[#allocation31_spill] sm:$0xff]  ;;  %v6008_v26 = vpop.f32.mrf.mxu0 }
 0x41b   :  { %v2206_v34 = vadd.f32 %v1985_v11, %v1984_v29  ;;  %v1987_v48 = vmul.f32 %v1777_v58, %v1777_v58  ;;  %v1618_v25 = vadd.f32 %v1617_v39, %v1616_v43  ;;  %v1988_v53 = vmul.f32 %v1778_v4, %v1778_v4  ;;  %8751 = vst [vmem:[#allocation198_spill] sm:$0xff] %v6008_v26  ;;  %v8753_v4 = vld [vmem:[#allocation114_spill] sm:$0xff] }
 0x41c   :  { %v1503_v52 = vpop.xlane.xlu1 %1502  ;;  %v1624_v29 = vadd.f32 %v1623_v32, %v5897_v54  ;;  %v2198_v11 = vadd.f32 %v2197_v6, %v1979_v61  ;;  %v1990_v43 = vmul.f32 %v1780_v23, %v1780_v23  ;;  %v1771_v32 = vsub.f32 %v8753_v4, %v5946_v22 }
 0x41d   :  { %v5997_v15 = vmul.f32 0.0012755102, %v1503_v52  ;;  %v2207_v1 = vadd.f32 %v2206_v34, %v1986_v31  ;;  %v1989_v34 = vmul.f32 %v1779_v35, %v1779_v35  ;;  %v1980_v61 = vmul.f32 %v1770_v14, %v1770_v14  ;;  %v8758_v14 = vld [vmem:[#allocation122_spill] sm:$0xff] }
 0x41e   :  { %v1625_v35 = vadd.f32 %v1624_v29, %v5906_v17 }
 0x41f   :  { %8749 = vst [vmem:[#allocation197_spill] sm:$0xff] %v5997_v15  ;;  %v2208_v63 = vadd.f32 %v2207_v1, %v1987_v48  ;;  %v1781_v46 = vsub.f32 %v5148_v47, %v5997_v15  ;;  %v1782_v13 = vsub.f32 %v8750_v51, %v5997_v15  ;;  %v1783_v52 = vsub.f32 %v5162_v59, %v5997_v15  ;;  %v6014_v48 = vpop.f32.mrf.mxu2  ;;  %v8755_v1 = vld [vmem:[#allocation89_spill] sm:$0xff]  ;;  %v8756_v59 = vld [vmem:[#allocation91_spill] sm:$0xff]  ;;  %v6020_v47 = vpop.f32.mrf.mxu1 }
 0x420   :  { %v6010_v28 = vpop.f32.mrf.mxu3  ;;  %8754 = vst [vmem:[#allocation200_spill] sm:$0xff] %v6014_v48  ;;  %v1784_v6 = vsub.f32 %v5623_v50, %v5997_v15  ;;  %v1630_v51 = vadd.f32 %v8756_v59, %v8755_v1  ;;  %v2199_v23 = vadd.f32 %v2198_v11, %v1980_v61  ;;  %v1785_v4 = vsub.f32 %v8758_v14, %v5997_v15  ;;  %v8760_v61 = vld [vmem:[#allocation92_spill] sm:$0xff] }
 0x421   :  { %8752 = vst [vmem:[#allocation199_spill] sm:$0xff] %v6010_v28  ;;  %1619 = vadd.xlane.f32.xlu0 %v1618_v25  ;;  %v2209_v58 = vadd.f32 %v2208_v63, %v1988_v53  ;;  %v1991_v31 = vmul.f32 %v1781_v46, %v1781_v46  ;;  %v1992_v39 = vmul.f32 %v1782_v13, %v1782_v13  ;;  %v2211_v53 = vsel %vm117_vm0, %v1990_v43, 0.0  ;;  %v8759_v13 = vld [vmem:[#allocation115_spill] sm:$0xff]  ;;  %v8761_v43 = vld [vmem:[#allocation116_spill] sm:$0xff] }
 0x422   :  { %8757 = vst [vmem:[#allocation201_spill] sm:$0xff] %v6020_v47  ;;  %v1993_v12 = vmul.f32 %v1783_v52, %v1783_v52  ;;  %v1787_v46 = vsub.f32 %v5573_v42, %v5997_v15  ;;  %v1772_v50 = vsub.f32 %v8759_v13, %v5946_v22  ;;  %v1981_v59 = vmul.f32 %v1771_v32, %v1771_v32 }
 0x423   :  { %v2210_v54 = vadd.f32 %v2209_v58, %v1989_v34  ;;  %v2215_v25 = vadd.f32 %v1992_v39, %v1991_v31  ;;  %v1786_v29 = vsub.f32 %v5556_v56, %v5997_v15  ;;  %v1994_v11 = vmul.f32 %v1784_v6, %v1784_v6 }
 0x424   :  { %v1512_v63 = vpop.xlane.xlu0 %1511  ;;  %v1631_v58 = vadd.f32 %v1630_v51, %v8760_v61  ;;  %v1626_v52 = vsel %vm117_vm0, %v5902_v44, 0.0  ;;  %v1773_v31 = vsub.f32 %v8761_v43, %v5946_v22  ;;  %v1995_v42 = vmul.f32 %v1785_v4, %v1785_v4  ;;  %v8824_v61 = vld [vmem:[#allocation144_spill] sm:$0xff] }
 0x425   :  { %v2212_v1 = vadd.f32 %v2211_v53, %v2210_v54  ;;  %v2216_v34 = vadd.f32 %v2215_v25, %v1993_v12  ;;  %v1627_v39 = vadd.f32 %v1626_v52, %v1625_v35  ;;  %v2200_v13 = vadd.f32 %v2199_v23, %v1981_v59  ;;  %v6040_v25 = vpop.f32.mrf.mxu0 }
 0x426   :  { %v1997_v54 = vmul.f32 %v1787_v46, %v1787_v46  ;;  %v1632_v53 = vadd.f32 %v1631_v58, %v5981_v55  ;;  %v1996_v12 = vmul.f32 %v1786_v29, %v1786_v29  ;;  %v1982_v51 = vmul.f32 %v1772_v50, %v1772_v50  ;;  %8763 = vst [vmem:[#allocation203_spill] sm:$0xff] %v6040_v25  ;;  %v8767_v29 = vld [vmem:[#allocation22_spill] sm:$0xff] }
 0x427   :  { %2213 = vadd.xlane.f32.xlu1 %v2212_v1  ;;  %v2217_v14 = vadd.f32 %v2216_v34, %v1994_v11  ;;  %v1983_v56 = vmul.f32 %v1773_v31, %v1773_v31  ;;  %v6042_v15 = vpop.f32.mrf.mxu2  ;;  %v6044_v35 = vpop.f32.mrf.mxu1  ;;  %v8770_v31 = vld [vmem:[#allocation40_spill] sm:$0xff] }
 0x428   :  { %v6037_v32 = vpop.f32.mrf.mxu3  ;;  %8764 = vst [vmem:[#allocation204_spill] sm:$0xff] %v6042_v15  ;;  %v2201_v1 = vadd.f32 %v2200_v13, %v1982_v51  ;;  %v2220_v59 = vsel %vm117_vm0, %v1997_v54, 0.0  ;;  %v1633_v11 = vadd.f32 %v1632_v53, %v5932_v18 }
 0x429   :  { %8762 = vst [vmem:[#allocation202_spill] sm:$0xff] %v6037_v32  ;;  %1628 = vadd.xlane.f32.xlu0 %v1627_v39  ;;  %v2218_v6 = vadd.f32 %v2217_v14, %v1995_v42  ;;  %v8768_v42 = vld [vmem:[#allocation50_spill] sm:$0xff]  ;;  %v6052_v14 = vmul.f32 0.0012755102, %v1512_v63  ;;  %v2202_v34 = vsel %vm117_vm0, %v1983_v56, 0.0  ;;  %v8773_v56 = vld [vmem:[#allocation141_spill] sm:$0xff] }
 0x42a   :  { %8765 = vst [vmem:[#allocation205_spill] sm:$0xff] %v6044_v35  ;;  %v1639_v50 = vadd.f32 %v8768_v42, %v8767_v29  ;;  %v2203_v58 = vadd.f32 %v2202_v34, %v2201_v1  ;;  %v8771_v39 = vld [vmem:[#allocation78_spill] sm:$0xff]  ;;  %v1634_v63 = vadd.f32 %v1633_v11, %v5944_v20 }
 0x42b   :  { %v2219_v43 = vadd.f32 %v2218_v6, %v1996_v12  ;;  %8769 = vst [vmem:[#allocation207_spill] sm:$0xff] %v6052_v14  ;;  %v8778_v11 = vld [vmem:[#allocation54_spill] sm:$0xff] }
 0x42c   :  { %v1521_v4 = vpop.xlane.xlu0 %1520  ;;  %v1640_v54 = vadd.f32 %v1639_v50, %v8771_v39  ;;  %v8776_v50 = vld [vmem:[#allocation35_spill] sm:$0xff] }
 0x42d   :  { %v6047_v23 = vmul.f32 0.0012755102, %v1521_v4  ;;  %v2221_v46 = vadd.f32 %v2220_v59, %v2219_v43  ;;  %v8774_v4 = vld [vmem:[#allocation130_spill] sm:$0xff]  ;;  %v6076_v39 = vpop.f32.mrf.mxu0 }
 0x42e   :  { %v1641_v1 = vadd.f32 %v1640_v54, %v6010_v28  ;;  %8779 = vst [vmem:[#allocation209_spill] sm:$0xff] %v6076_v39  ;;  %v8780_v54 = vld [vmem:[#allocation131_spill] sm:$0xff] }
 0x42f   :  { %8766 = vst [vmem:[#allocation206_spill] sm:$0xff] %v6047_v23  ;;  %2222 = vadd.xlane.f32.xlu2 %v2221_v46  ;;  %v1795_v13 = vsub.f32 %v5180_v2, %v6047_v23  ;;  %v1796_v52 = vsub.f32 %v5184_v60, %v6047_v23  ;;  %v1797_v43 = vsub.f32 %v8770_v31, %v6047_v23  ;;  %v8775_v46 = vld [vmem:[#allocation33_spill] sm:$0xff]  ;;  %v8777_v2 = vld [vmem:[#allocation26_spill] sm:$0xff]  ;;  %v6084_v28 = vpop.f32.mrf.mxu2 }
 0x430   :  { %v6062_v53 = vpop.f32.mrf.mxu3  ;;  %v1798_v12 = vsub.f32 %v8773_v56, %v6047_v23  ;;  %v1799_v59 = vsub.f32 %v8774_v4, %v6047_v23  ;;  %v1788_v34 = vsub.f32 %v8775_v46, %v6052_v14  ;;  %v1789_v31 = vsub.f32 %v8776_v50, %v6052_v14  ;;  %v8781_v56 = vld [vmem:[#allocation132_spill] sm:$0xff] }
 0x431   :  { %8772 = vst [vmem:[#allocation208_spill] sm:$0xff] %v6062_v53  ;;  %2204 = vadd.xlane.f32.xlu0 %v2203_v58  ;;  %v2005_v6 = vmul.f32 %v1795_v13, %v1795_v13  ;;  %v2006_v51 = vmul.f32 %v1796_v52, %v1796_v52  ;;  %v2007_v60 = vmul.f32 %v1797_v43, %v1797_v43  ;;  %v1635_v52 = vsel %vm117_vm0, %v5939_v10, 0.0 }
 0x432   :  { %v1648_v22 = vadd.f32 %v8778_v11, %v8777_v2  ;;  %v1800_v4 = vsub.f32 %v8780_v54, %v6047_v23  ;;  %v1801_v46 = vsub.f32 %v8781_v56, %v6047_v23  ;;  %v1636_v43 = vadd.f32 %v1635_v52, %v1634_v63  ;;  %v6088_v11 = vpop.f32.mrf.mxu1  ;;  %v8783_v54 = vld [vmem:[#allocation41_spill] sm:$0xff]  ;;  %v8784_v56 = vld [vmem:[#allocation43_spill] sm:$0xff]  ;;  %v8786_v63 = vld [vmem:[#allocation82_spill] sm:$0xff] }
 0x433   :  { %v2233_v58 = vadd.f32 %v2006_v51, %v2005_v6  ;;  %v2008_v6 = vmul.f32 %v1798_v12, %v1798_v12  ;;  %v2009_v2 = vmul.f32 %v1799_v59, %v1799_v59  ;;  %v1642_v42 = vadd.f32 %v1641_v1, %v5967_v41  ;;  %v8788_v1 = vld [vmem:[#allocation36_spill] sm:$0xff]  ;;  %v8789_v52 = vld [vmem:[#allocation145_spill] sm:$0xff] }
 0x434   :  { %v1530_v13 = vpop.xlane.xlu0 %1529  ;;  %v1998_v29 = vmul.f32 %v1788_v34, %v1788_v34  ;;  %v1999_v10 = vmul.f32 %v1789_v31, %v1789_v31  ;;  %v1649_v12 = vadd.f32 %v1648_v22, %v8786_v63  ;;  %v2011_v59 = vmul.f32 %v1801_v46, %v1801_v46  ;;  %v8790_v63 = vld [vmem:[#allocation134_spill] sm:$0xff] }
 0x435   :  { %v6086_v50 = vmul.f32 0.0012755102, %v1530_v13  ;;  %v2234_v51 = vadd.f32 %v2233_v58, %v2007_v60  ;;  %v8785_v13 = vld [vmem:[#allocation44_spill] sm:$0xff]  ;;  %v2010_v58 = vmul.f32 %v1800_v4, %v1800_v4  ;;  %v1790_v34 = vsub.f32 %v8788_v1, %v6052_v14 }
 0x436   :  { %v2224_v41 = vadd.f32 %v1999_v10, %v1998_v29  ;;  %v8793_v10 = vld [vmem:[#allocation135_spill] sm:$0xff] }
 0x437   :  { %8782 = vst [vmem:[#allocation210_spill] sm:$0xff] %v6086_v50  ;;  %v2235_v20 = vadd.f32 %v2234_v51, %v2008_v6  ;;  %v1802_v44 = vsub.f32 %v8783_v54, %v6086_v50  ;;  %v1803_v23 = vsub.f32 %v8784_v56, %v6086_v50  ;;  %v1804_v18 = vsub.f32 %v8785_v13, %v6086_v50 }
 0x438   :  { %v6098_v60 = vpop.f32.mrf.mxu3  ;;  %v1805_v6 = vsub.f32 %v8789_v52, %v6086_v50  ;;  %v1650_v56 = vadd.f32 %v1649_v12, %v6037_v32  ;;  %v1643_v13 = vadd.f32 %v1642_v42, %v5978_v37  ;;  %v1806_v4 = vsub.f32 %v8790_v63, %v6086_v50 }
 0x439   :  { %8787 = vst [vmem:[#allocation211_spill] sm:$0xff] %v6098_v60  ;;  %1637 = vadd.xlane.f32.xlu0 %v1636_v43  ;;  %v2236_v31 = vadd.f32 %v2235_v20, %v2009_v2  ;;  %v2012_v51 = vmul.f32 %v1802_v44, %v1802_v44  ;;  %v2013_v54 = vmul.f32 %v1803_v23, %v1803_v23  ;;  %v2238_v2 = vsel %vm117_vm0, %v2011_v59, 0.0  ;;  %v8791_v20 = vld [vmem:[#allocation136_spill] sm:$0xff]  ;;  %v8792_v44 = vld [vmem:[#allocation137_spill] sm:$0xff]  ;;  %v6121_v59 = vpop.f32.mrf.mxu2 }
 0x43a   :  { %v2014_v46 = vmul.f32 %v1804_v18, %v1804_v18  ;;  %v1808_v43 = vsub.f32 %v8791_v20, %v6086_v50  ;;  %v1791_v23 = vsub.f32 %v8792_v44, %v6052_v14  ;;  %v2000_v12 = vmul.f32 %v1790_v34, %v1790_v34  ;;  %8795 = vst [vmem:[#allocation213_spill] sm:$0xff] %v6121_v59 }
 0x43b   :  { %v2237_v22 = vadd.f32 %v2236_v31, %v2010_v58  ;;  %v2242_v17 = vadd.f32 %v2013_v54, %v2012_v51  ;;  %v1807_v29 = vsub.f32 %v8793_v10, %v6086_v50  ;;  %v2015_v42 = vmul.f32 %v1805_v6, %v1805_v6  ;;  %v6117_v31 = vpop.f32.mrf.mxu0  ;;  %v8810_v50 = vld [vmem:[#allocation66_spill] sm:$0xff] }
 0x43c   :  { %v6108_v55 = vpop.xlane.xlu0 %1538  ;;  %8794 = vst [vmem:[#allocation212_spill] sm:$0xff] %v6117_v31  ;;  %v1644_v18 = vsel %vm117_vm0, %v5970_v8, 0.0  ;;  %v2225_v54 = vadd.f32 %v2224_v41, %v2000_v12  ;;  %v2016_v20 = vmul.f32 %v1806_v4, %v1806_v4  ;;  %v1651_v34 = vadd.f32 %v1650_v56, %v6008_v26  ;;  %v8799_v56 = vld [vmem:[#allocation127_spill] sm:$0xff]  ;;  %v8821_v8 = vld [vmem:[#allocation93_spill] sm:$0xff] }
 0x43d   :  { %v2239_v52 = vadd.f32 %v2238_v2, %v2237_v22  ;;  %v2243_v58 = vadd.f32 %v2242_v17, %v2014_v46  ;;  %v1645_v51 = vadd.f32 %v1644_v18, %v1643_v13  ;;  %v6124_v22 = vpop.f32.mrf.mxu1  ;;  %v2018_v6 = vmul.f32 %v1808_v43, %v1808_v43  ;;  %v8798_v17 = vld [vmem:[#allocation126_spill] sm:$0xff] }
 0x43e   :  { %8796 = vst [vmem:[#allocation214_spill] sm:$0xff] %v6124_v22  ;;  %v1792_v46 = vsub.f32 %v8798_v17, %v6052_v14  ;;  %v2001_v10 = vmul.f32 %v1791_v23, %v1791_v23  ;;  %v2017_v44 = vmul.f32 %v1807_v29, %v1807_v29  ;;  %v1652_v13 = vadd.f32 %v1651_v34, %v6020_v47  ;;  %v8801_v17 = vld [vmem:[#allocation128_spill] sm:$0xff]  ;;  %v8803_v29 = vld [vmem:[#allocation58_spill] sm:$0xff] }
 0x43f   :  { %2240 = vadd.xlane.f32.xlu1 %v2239_v52  ;;  %v2244_v63 = vadd.f32 %v2243_v58, %v2015_v42  ;;  %v2247_v4 = vsel %vm117_vm0, %v2018_v6, 0.0  ;;  %v1793_v42 = vsub.f32 %v8799_v56, %v6052_v14  ;;  %v1794_v23 = vsub.f32 %v8801_v17, %v6052_v14  ;;  %v8805_v6 = vld [vmem:[#allocation51_spill] sm:$0xff]  ;;  %v8809_v56 = vld [vmem:[#allocation38_spill] sm:$0xff] }
 0x440   :  { %v6126_v2 = vpop.f32.mrf.mxu3  ;;  %v2226_v12 = vadd.f32 %v2225_v54, %v2001_v10  ;;  %v2002_v58 = vmul.f32 %v1792_v46, %v1792_v46  ;;  %v8804_v54 = vld [vmem:[#allocation49_spill] sm:$0xff]  ;;  %v1675_v14 = vadd.f32 %v8810_v50, %v8809_v56  ;;  %v8811_v47 = vld [vmem:[#allocation86_spill] sm:$0xff] }
 0x441   :  { %8797 = vst [vmem:[#allocation215_spill] sm:$0xff] %v6126_v2  ;;  %1646 = vadd.xlane.f32.xlu0 %v1645_v51  ;;  %v2245_v41 = vadd.f32 %v2244_v63, %v2016_v20  ;;  %v8802_v51 = vld [vmem:[#allocation30_spill] sm:$0xff]  ;;  %v1653_v20 = vsel %vm117_vm0, %v6014_v48, 0.0 }
 0x442   :  { %v1657_v63 = vadd.f32 %v8803_v29, %v8802_v51  ;;  %v1654_v10 = vadd.f32 %v1653_v20, %v1652_v13  ;;  %v2004_v20 = vmul.f32 %v1794_v23, %v1794_v23  ;;  %v8817_v50 = vld [vmem:[#allocation46_spill] sm:$0xff]  ;;  %v1676_v37 = vadd.f32 %v1675_v14, %v8821_v8 }
 0x443   :  { %v2246_v1 = vadd.f32 %v2245_v41, %v2017_v44  ;;  %v2227_v44 = vadd.f32 %v2226_v12, %v2002_v58  ;;  %v6153_v12 = vpop.f32.mrf.mxu0  ;;  %v2003_v58 = vmul.f32 %v1793_v42, %v1793_v42  ;;  %v8820_v29 = vld [vmem:[#allocation90_spill] sm:$0xff] }
 0x444   :  { %v1548_v52 = vpop.xlane.xlu0 %1547  ;;  %v1658_v48 = vadd.f32 %v1657_v63, %v8811_v47  ;;  %8812 = vst [vmem:[#allocation217_spill] sm:$0xff] %v6153_v12  ;;  %v8818_v63 = vld [vmem:[#allocation74_spill] sm:$0xff] }
 0x445   :  { %v6134_v18 = vmul.f32 0.0012755102, %v1548_v52  ;;  %v2248_v43 = vadd.f32 %v2247_v4, %v2246_v1  ;;  %v8806_v1 = vld [vmem:[#allocation52_spill] sm:$0xff]  ;;  %v8807_v52 = vld [vmem:[#allocation34_spill] sm:$0xff]  ;;  %v1693_v56 = vadd.f32 %v8818_v63, %v8817_v50  ;;  %v2228_v32 = vadd.f32 %v2227_v44, %v2003_v58 }
 0x446   :  { %v8808_v4 = vld [vmem:[#allocation62_spill] sm:$0xff]  ;;  %v2229_v44 = vsel %vm117_vm0, %v2004_v20, 0.0 }
 0x447   :  { %8800 = vst [vmem:[#allocation216_spill] sm:$0xff] %v6134_v18  ;;  %2249 = vadd.xlane.f32.xlu2 %v2248_v43  ;;  %v1816_v34 = vsub.f32 %v8804_v54, %v6134_v18  ;;  %v1817_v46 = vsub.f32 %v8805_v6, %v6134_v18  ;;  %v1818_v41 = vsub.f32 %v8806_v1, %v6134_v18  ;;  %v6157_v43 = vpop.f32.mrf.mxu2  ;;  %v8815_v6 = vld [vmem:[#allocation152_spill] sm:$0xff]  ;;  %v8819_v47 = vld [vmem:[#allocation142_spill] sm:$0xff] }
 0x448   :  { %v1666_v17 = vadd.f32 %v8808_v4, %v8807_v52  ;;  %v6155_v13 = vpop.f32.mrf.mxu3  ;;  %8814 = vst [vmem:[#allocation219_spill] sm:$0xff] %v6157_v43  ;;  %v1819_v1 = vsub.f32 %v8815_v6, %v6134_v18  ;;  %v1659_v4 = vadd.f32 %v1658_v48, %v6062_v53  ;;  %v6162_v52 = vpop.f32.mrf.mxu1  ;;  %v1820_v42 = vsub.f32 %v8819_v47, %v6134_v18  ;;  %v8823_v48 = vld [vmem:[#allocation143_spill] sm:$0xff] }
 0x449   :  { %8813 = vst [vmem:[#allocation218_spill] sm:$0xff] %v6155_v13  ;;  %1655 = vadd.xlane.f32.xlu0 %v1654_v10  ;;  %v2026_v54 = vmul.f32 %v1816_v34, %v1816_v34  ;;  %v2027_v26 = vmul.f32 %v1817_v46, %v1817_v46  ;;  %v2028_v10 = vmul.f32 %v1818_v41, %v1818_v41  ;;  %v8822_v34 = vld [vmem:[#allocation101_spill] sm:$0xff] }
 0x44a   :  { %8816 = vst [vmem:[#allocation220_spill] sm:$0xff] %v6162_v52  ;;  %v1667_v51 = vadd.f32 %v1666_v17, %v8820_v29  ;;  %v1694_v46 = vadd.f32 %v1693_v56, %v8822_v34  ;;  %v1821_v53 = vsub.f32 %v8823_v48, %v6134_v18  ;;  %v1822_v62 = vsub.f32 %v8824_v61, %v6134_v18  ;;  %v8827_v41 = vld [vmem:[#allocation53_spill] sm:$0xff]  ;;  %v8828_v34 = vld [vmem:[#allocation55_spill] sm:$0xff] }
 0x44b   :  { %v2260_v23 = vadd.f32 %v2027_v26, %v2026_v54  ;;  %v2029_v58 = vmul.f32 %v1819_v1, %v1819_v1  ;;  %v6179_v17 = vmul.f32 0.0012755102, %v6108_v55  ;;  %v2230_v26 = vadd.f32 %v2229_v44, %v2228_v32  ;;  %v8831_v32 = vld [vmem:[#allocation156_spill] sm:$0xff] }
 0x44c   :  { %v1557_v6 = vpop.xlane.xlu0 %1556  ;;  %v2030_v14 = vmul.f32 %v1820_v42, %v1820_v42  ;;  %v1660_v54 = vadd.f32 %v1659_v4, %v6040_v25  ;;  %v1668_v1 = vadd.f32 %v1667_v51, %v6098_v60  ;;  %v2031_v55 = vmul.f32 %v1821_v53, %v1821_v53 }
 0x44d   :  { %v6175_v63 = vmul.f32 0.0012755102, %v1557_v6  ;;  %v2261_v47 = vadd.f32 %v2260_v23, %v2028_v10  ;;  %8826 = vst [vmem:[#allocation222_spill] sm:$0xff] %v6179_v17  ;;  %v8829_v6 = vld [vmem:[#allocation56_spill] sm:$0xff]  ;;  %v2032_v10 = vmul.f32 %v1822_v62, %v1822_v62  ;;  %v8835_v62 = vld [vmem:[#allocation47_spill] sm:$0xff] }
 0x44e   :  { %v1810_v50 = vsub.f32 %v8835_v62, %v6179_v17 }
 0x44f   :  { %8825 = vst [vmem:[#allocation221_spill] sm:$0xff] %v6175_v63  ;;  %v2262_v56 = vadd.f32 %v2261_v47, %v2029_v58  ;;  %v1823_v48 = vsub.f32 %v8827_v41, %v6175_v63  ;;  %v1824_v61 = vsub.f32 %v8828_v34, %v6175_v63  ;;  %v1825_v18 = vsub.f32 %v8829_v6, %v6175_v63  ;;  %v6194_v58 = vpop.f32.mrf.mxu0  ;;  %v8833_v6 = vld [vmem:[#allocation146_spill] sm:$0xff]  ;;  %v8834_v41 = vld [vmem:[#allocation45_spill] sm:$0xff] }
 0x450   :  { %v6189_v20 = vpop.f32.mrf.mxu3  ;;  %v1826_v42 = vsub.f32 %v8831_v32, %v6175_v63  ;;  %8832 = vst [vmem:[#allocation224_spill] sm:$0xff] %v6194_v58  ;;  %v1661_v34 = vadd.f32 %v1660_v54, %v6044_v35  ;;  %v1827_v51 = vsub.f32 %v8833_v6, %v6175_v63  ;;  %v1809_v53 = vsub.f32 %v8834_v41, %v6179_v17  ;;  %v6203_v32 = vpop.f32.mrf.mxu2 }
 0x451   :  { %8830 = vst [vmem:[#allocation223_spill] sm:$0xff] %v6189_v20  ;;  %v1695_v47 = vadd.f32 %v1694_v46, %v6189_v20  ;;  %2231 = vadd.xlane.f32.xlu0 %v2230_v26  ;;  %v2263_v4 = vadd.f32 %v2262_v56, %v2030_v14  ;;  %v2033_v23 = vmul.f32 %v1823_v48, %v1823_v48  ;;  %v6206_v14 = vpop.f32.mrf.mxu1  ;;  %v2265_v54 = vsel %vm117_vm0, %v2032_v10, 0.0  ;;  %v8838_v20 = vld [vmem:[#allocation147_spill] sm:$0xff] }
 0x452   :  { %v2034_v44 = vmul.f32 %v1824_v61, %v1824_v61  ;;  %8836 = vst [vmem:[#allocation225_spill] sm:$0xff] %v6203_v32  ;;  %v2035_v48 = vmul.f32 %v1825_v18, %v1825_v18  ;;  %v1662_v6 = vsel %vm117_vm0, %v6042_v15, 0.0  ;;  %v1669_v41 = vadd.f32 %v1668_v1, %v6076_v39 }
 0x453   :  { %v1696_v46 = vadd.f32 %v1695_v47, %v6194_v58  ;;  %v2264_v26 = vadd.f32 %v2263_v4, %v2031_v55  ;;  %8837 = vst [vmem:[#allocation226_spill] sm:$0xff] %v6206_v14  ;;  %v1828_v62 = vsub.f32 %v8838_v20, %v6175_v63  ;;  %v2036_v47 = vmul.f32 %v1826_v42, %v1826_v42  ;;  %v8839_v4 = vld [vmem:[#allocation5_spill] sm:$0xff] }
 0x454   :  { %v2269_v61 = vadd.f32 %v2034_v44, %v2033_v23  ;;  %v1566_v56 = vpop.xlane.xlu0 %1565  ;;  %v1698_v18 = vsel %vm117_vm0, %v6203_v32, 0.0  ;;  %v1829_v23 = vsub.f32 %v8839_v4, %v6175_v63  ;;  %v2019_v10 = vmul.f32 %v1809_v53, %v1809_v53  ;;  %v8841_v53 = vld [vmem:[#allocation42_spill] sm:$0xff] }
 0x455   :  { %v2266_v8 = vadd.f32 %v2265_v54, %v2264_v26  ;;  %v1697_v60 = vadd.f32 %v1696_v46, %v6206_v14  ;;  %v2020_v44 = vmul.f32 %v1810_v50, %v1810_v50  ;;  %v1663_v58 = vadd.f32 %v1662_v6, %v1661_v34  ;;  %v8840_v26 = vld [vmem:[#allocation48_spill] sm:$0xff]  ;;  %v8842_v50 = vld [vmem:[#allocation70_spill] sm:$0xff] }
 0x456   :  { %v2270_v55 = vadd.f32 %v2269_v61, %v2035_v48  ;;  %v2037_v1 = vmul.f32 %v1827_v51, %v1827_v51  ;;  %v1677_v20 = vadd.f32 %v1676_v37, %v6126_v2  ;;  %v1811_v46 = vsub.f32 %v8840_v26, %v6179_v17  ;;  %v8843_v51 = vld [vmem:[#allocation148_spill] sm:$0xff] }
 0x457   :  { %2267 = vadd.xlane.f32.xlu1 %v2266_v8  ;;  %v1699_v29 = vadd.f32 %v1698_v18, %v1697_v60  ;;  %v1670_v42 = vadd.f32 %v1669_v41, %v6088_v11  ;;  %v2038_v48 = vmul.f32 %v1828_v62, %v1828_v62  ;;  %v2039_v54 = vmul.f32 %v1829_v23, %v1829_v23  ;;  %v8845_v23 = vld [vmem:[#allocation138_spill] sm:$0xff] }
 0x458   :  { %v2271_v39 = vadd.f32 %v2270_v55, %v2036_v47  ;;  %v2251_v4 = vadd.f32 %v2020_v44, %v2019_v10  ;;  %v1684_v8 = vadd.f32 %v8842_v50, %v8841_v53  ;;  %v1671_v6 = vsel %vm117_vm0, %v6084_v28, 0.0  ;;  %v8844_v47 = vld [vmem:[#allocation97_spill] sm:$0xff] }
 0x459   :  { %1664 = vadd.xlane.f32.xlu0 %v1663_v58  ;;  %1700 = vadd.xlane.f32.xlu2 %v1699_v29  ;;  %v1678_v37 = vadd.f32 %v1677_v20, %v6117_v31  ;;  %v1812_v58 = vsub.f32 %v8843_v51, %v6179_v17  ;;  %v2021_v29 = vmul.f32 %v1811_v46, %v1811_v46  ;;  %v6233_v55 = vmul.f32 0.0012755102, %v1566_v56  ;;  %v8846_v20 = vld [vmem:[#allocation61_spill] sm:$0xff]  ;;  %v8849_v56 = vld [vmem:[#allocation139_spill] sm:$0xff] }
 0x45a   :  { %v2272_v61 = vadd.f32 %v2271_v39, %v2037_v1  ;;  %v1685_v41 = vadd.f32 %v1684_v8, %v8844_v47  ;;  %v1672_v39 = vadd.f32 %v1671_v6, %v1670_v42  ;;  %v2274_v18 = vsel %vm117_vm0, %v2039_v54, 0.0  ;;  %v8848_v8 = vld [vmem:[#allocation64_spill] sm:$0xff] }
 0x45b   :  { %v1813_v10 = vsub.f32 %v8845_v23, %v6179_v17  ;;  %v2252_v44 = vadd.f32 %v2251_v4, %v2021_v29  ;;  %v1679_v42 = vadd.f32 %v1678_v37, %v6124_v22  ;;  %v1814_v6 = vsub.f32 %v8849_v56, %v6179_v17  ;;  %v8850_v54 = vld [vmem:[#allocation140_spill] sm:$0xff]  ;;  %v8853_v37 = vld [vmem:[#allocation57_spill] sm:$0xff]  ;;  %v8854_v56 = vld [vmem:[#allocation59_spill] sm:$0xff] }
 0x45c   :  { %v2273_v34 = vadd.f32 %v2272_v61, %v2038_v48  ;;  %v1575_v60 = vpop.xlane.xlu0 %1574  ;;  %v8847_v61 = vld [vmem:[#allocation63_spill] sm:$0xff]  ;;  %v1815_v51 = vsub.f32 %v8850_v54, %v6179_v17  ;;  %v2022_v23 = vmul.f32 %v1812_v58, %v1812_v58  ;;  %v8851_v4 = vld [vmem:[#allocation164_spill] sm:$0xff]  ;;  %v1830_v26 = vsub.f32 %v8853_v37, %v6233_v55 }
 0x45d   :  { %v6231_v62 = vmul.f32 0.0012755102, %v1575_v60  ;;  %v1831_v63 = vsub.f32 %v8854_v56, %v6233_v55  ;;  %v1680_v58 = vsel %vm117_vm0, %v6121_v59, 0.0  ;;  %v2023_v54 = vmul.f32 %v1813_v10, %v1813_v10  ;;  %v8857_v10 = vld [vmem:[#allocation65_spill] sm:$0xff] }
 0x45e   :  { %v2275_v1 = vadd.f32 %v2274_v18, %v2273_v34  ;;  %v1681_v37 = vadd.f32 %v1680_v58, %v1679_v42  ;;  %v2040_v59 = vmul.f32 %v1830_v26, %v1830_v26 }
 0x45f   :  { %v1837_v48 = vsub.f32 %v8846_v20, %v6231_v62  ;;  %v1838_v46 = vsub.f32 %v8847_v61, %v6231_v62  ;;  %v1839_v60 = vsub.f32 %v8848_v8, %v6231_v62  ;;  %v1840_v34 = vsub.f32 %v8851_v4, %v6231_v62  ;;  %v8852_v61 = vld [vmem:[#allocation153_spill] sm:$0xff]  ;;  %v8856_v4 = vld [vmem:[#allocation155_spill] sm:$0xff] }
 0x460   :  { %v1841_v20 = vsub.f32 %v8852_v61, %v6231_v62  ;;  %v2253_v8 = vadd.f32 %v2252_v44, %v2022_v23  ;;  %v1843_v61 = vsub.f32 %v8856_v4, %v6231_v62  ;;  %v2024_v23 = vmul.f32 %v1814_v6, %v1814_v6  ;;  %v8859_v4 = vld [vmem:[#allocation68_spill] sm:$0xff] }
 0x461   :  { %1673 = vadd.xlane.f32.xlu0 %v1672_v39  ;;  %2276 = vadd.xlane.f32.xlu2 %v2275_v1  ;;  %v2047_v29 = vmul.f32 %v1837_v48, %v1837_v48  ;;  %v2048_v18 = vmul.f32 %v1838_v46, %v1838_v46  ;;  %v2049_v39 = vmul.f32 %v1839_v60, %v1839_v60  ;;  %v8855_v48 = vld [vmem:[#allocation154_spill] sm:$0xff] }
 0x462   :  { %v1842_v46 = vsub.f32 %v8855_v48, %v6231_v62  ;;  %v2025_v44 = vmul.f32 %v1815_v51, %v1815_v51  ;;  %v2050_v14 = vmul.f32 %v1840_v34, %v1840_v34  ;;  %v2051_v22 = vmul.f32 %v1841_v20, %v1841_v20  ;;  %v8858_v48 = vld [vmem:[#allocation67_spill] sm:$0xff]  ;;  %v8860_v34 = vld [vmem:[#allocation60_spill] sm:$0xff] }
 0x463   :  { %v2287_v1 = vadd.f32 %v2048_v18, %v2047_v29  ;;  %v2254_v31 = vadd.f32 %v2253_v8, %v2023_v54  ;;  %v2041_v60 = vmul.f32 %v1831_v63, %v1831_v63  ;;  %v1832_v20 = vsub.f32 %v8860_v34, %v6233_v55  ;;  %v8861_v63 = vld [vmem:[#allocation169_spill] sm:$0xff] }
 0x464   :  { %v1584_v17 = vpop.xlane.xlu0 %1583  ;;  %v2052_v51 = vmul.f32 %v1842_v46, %v1842_v46  ;;  %v2256_v42 = vsel %vm117_vm0, %v2025_v44, 0.0  ;;  %v1686_v54 = vadd.f32 %v1685_v41, %v6155_v13  ;;  %v8863_v44 = vld [vmem:[#allocation157_spill] sm:$0xff] }
 0x465   :  { %v6263_v32 = vmul.f32 0.0012755102, %v1584_v17  ;;  %v2288_v56 = vadd.f32 %v2287_v1, %v2049_v39  ;;  %v2053_v17 = vmul.f32 %v1843_v61, %v1843_v61  ;;  %v2255_v58 = vadd.f32 %v2254_v31, %v2024_v23  ;;  %v8862_v39 = vld [vmem:[#allocation160_spill] sm:$0xff] }
 0x466   :  { %v1833_v1 = vsub.f32 %v8862_v39, %v6233_v55  ;;  %v2278_v46 = vadd.f32 %v2041_v60, %v2040_v59  ;;  %v2042_v31 = vmul.f32 %v1832_v20, %v1832_v20 }
 0x467   :  { %v2289_v29 = vadd.f32 %v2288_v56, %v2050_v14  ;;  %v1844_v18 = vsub.f32 %v8857_v10, %v6263_v32  ;;  %v1845_v2 = vsub.f32 %v8858_v48, %v6263_v32  ;;  %v1846_v6 = vsub.f32 %v8859_v4, %v6263_v32 }
 0x468   :  { %v1847_v14 = vsub.f32 %v8861_v63, %v6263_v32  ;;  %v1848_v4 = vsub.f32 %v8863_v44, %v6263_v32  ;;  %v2257_v60 = vadd.f32 %v2256_v42, %v2255_v58 }
 0x469   :  { %1682 = vadd.xlane.f32.xlu0 %v1681_v37  ;;  %v2290_v26 = vadd.f32 %v2289_v29, %v2051_v22  ;;  %v2054_v8 = vmul.f32 %v1844_v18, %v1844_v18  ;;  %v2055_v56 = vmul.f32 %v1845_v2, %v1845_v2  ;;  %v2056_v48 = vmul.f32 %v1846_v6, %v1846_v6  ;;  %v8864_v29 = vld [vmem:[#allocation158_spill] sm:$0xff]  ;;  %v8865_v2 = vld [vmem:[#allocation159_spill] sm:$0xff] }
 0x46a   :  { %v2292_v22 = vsel %vm117_vm0, %v2053_v17, 0.0  ;;  %v1849_v18 = vsub.f32 %v8864_v29, %v6263_v32  ;;  %v1850_v41 = vsub.f32 %v8865_v2, %v6263_v32  ;;  %v2057_v39 = vmul.f32 %v1847_v14, %v1847_v14  ;;  %v8866_v29 = vld [vmem:[#allocation149_spill] sm:$0xff] }
 0x46b   :  { %v2291_v61 = vadd.f32 %v2290_v26, %v2052_v51  ;;  %v2296_v10 = vadd.f32 %v2055_v56, %v2054_v8  ;;  %v1687_v51 = vadd.f32 %v1686_v54, %v6153_v12  ;;  %v2058_v6 = vmul.f32 %v1848_v4, %v1848_v4 }
 0x46c   :  { %v2160_v37 = vpop.xlane.xlu0 %2159  ;;  %v2279_v17 = vadd.f32 %v2278_v46, %v2042_v31  ;;  %v2060_v56 = vmul.f32 %v1850_v41, %v1850_v41  ;;  %v1834_v44 = vsub.f32 %v8866_v29, %v6233_v55  ;;  %v2059_v20 = vmul.f32 %v1849_v18, %v1849_v18  ;;  %v8868_v41 = vld [vmem:[#allocation151_spill] sm:$0xff]  ;;  %v8912_v29 = vld [vmem:[#allocation185_spill] sm:$0xff] }
 0x46d   :  { %v2422_v23 = vmul.f32 0.0012755102, %v2160_v37  ;;  %v2293_v63 = vadd.f32 %v2292_v22, %v2291_v61  ;;  %v2297_v59 = vadd.f32 %v2296_v10, %v2056_v48  ;;  %v2043_v14 = vmul.f32 %v1833_v1, %v1833_v1 }
 0x46e   :  { %v1688_v42 = vadd.f32 %v1687_v51, %v6162_v52  ;;  %v2301_v4 = vsel %vm117_vm0, %v2060_v56, 0.0  ;;  %v1836_v18 = vsub.f32 %v8868_v41, %v6233_v55  ;;  %v2044_v31 = vmul.f32 %v1834_v44, %v1834_v44 }
 0x46f   :  { %v6287_v26 = vadd.f32 0.001, %v2422_v23  ;;  %2294 = vadd.xlane.f32.xlu1 %v2293_v63  ;;  %v2298_v8 = vadd.f32 %v2297_v59, %v2057_v39  ;;  %v2280_v54 = vadd.f32 %v2279_v17, %v2043_v14  ;;  %v8867_v39 = vld [vmem:[#allocation150_spill] sm:$0xff]  ;;  %v1689_v23 = vsel %vm117_vm0, %v6157_v43, 0.0  ;;  %v8870_v17 = vld [vmem:[#allocation71_spill] sm:$0xff] }
 0x470   :  { %v1835_v46 = vsub.f32 %v8867_v39, %v6233_v55 }
 0x471   :  { %4110 = vrsqrt.f32 %v6287_v26  ;;  %2258 = vadd.xlane.f32.xlu0 %v2257_v60  ;;  %v2299_v61 = vadd.f32 %v2298_v8, %v2058_v6  ;;  %v1690_v60 = vadd.f32 %v1689_v23, %v1688_v42  ;;  %v2281_v51 = vadd.f32 %v2280_v54, %v2044_v31  ;;  %v8869_v6 = vld [vmem:[#allocation69_spill] sm:$0xff] }
 0x472   :  { %v2045_v14 = vmul.f32 %v1835_v46, %v1835_v46  ;;  %vm2518_vm3 = vweird.f32 %v6287_v26 }
 0x473   :  { %v2169_v48 = vpop.xlane.xlu2 %2168  ;;  %v2300_v10 = vadd.f32 %v2299_v61, %v2059_v20  ;;  %v8871_v61 = vld [vmem:[#allocation72_spill] sm:$0xff] }
 0x474   :  { %v2423_v58 = vmul.f32 0.0012755102, %v2169_v48  ;;  %v1593_v63 = vpop.xlane.xlu0 %1592  ;;  %v2046_v48 = vmul.f32 %v1836_v18, %v1836_v18 }
 0x475   :  { %v6296_v37 = vmul.f32 0.0012755102, %v1593_v63  ;;  %v2302_v22 = vadd.f32 %v2301_v4, %v2300_v10  ;;  %v2282_v63 = vadd.f32 %v2281_v51, %v2045_v14 }
 0x476   :  { %v2483_v1 = vadd.f32 0.001, %v2423_v58 }
 0x477   :  { %v4111_v59 = vpop.eup %4110  ;;  %2303 = vadd.xlane.f32.xlu2 %v2302_v22  ;;  %v1851_v8 = vsub.f32 %v8869_v6, %v6296_v37  ;;  %v1852_v56 = vsub.f32 %v8870_v17, %v6296_v37  ;;  %v1853_v44 = vsub.f32 %v8871_v61, %v6296_v37  ;;  %v1854_v42 = vsub.f32 %v5840_v33, %v6296_v37  ;;  %v8910_v6 = vld [vmem:[#allocation8_spill] sm:$0xff] }
 0x478   :  { %v2513_v20 = vmul.f32 %v4111_v59, %v6287_v26  ;;  %4112 = vrsqrt.f32 %v2483_v1  ;;  %v1855_v31 = vsub.f32 %v5774_v24, %v6296_v37  ;;  %v2283_v17 = vsel %vm117_vm0, %v2046_v48, 0.0 }
 0x479   :  { %1691 = vadd.xlane.f32.xlu0 %v1690_v60  ;;  %v2061_v10 = vmul.f32 %v1851_v8, %v1851_v8  ;;  %v2062_v54 = vmul.f32 %v1852_v56, %v1852_v56  ;;  %v2063_v23 = vmul.f32 %v1853_v44, %v1853_v44  ;;  %v1856_v46 = vsub.f32 %v5779_v38, %v6296_v37 }
 0x47a   :  { %v2514_v58 = vmul.f32 %v4111_v59, %v2513_v20  ;;  %v1857_v8 = vsub.f32 %v5784_v3, %v6296_v37  ;;  %v2064_v20 = vmul.f32 %v1854_v42, %v1854_v42  ;;  %vm2519_vm2 = vweird.f32 %v4111_v59  ;;  %v2452_v42 = vld [vmem:[%s8154_s5] sm:$0xff] }
 0x47b   :  { %v2305_v2 = vadd.f32 %v2062_v54, %v2061_v10  ;;  %v2284_v14 = vadd.f32 %v2283_v17, %v2282_v63  ;;  %v2065_v33 = vmul.f32 %v1855_v31, %v1855_v31  ;;  %vm2520_vm4 = vmor %vm2518_vm3, %vm2519_vm2  ;;  %v2066_v48 = vmul.f32 %v1856_v46, %v1856_v46 }
 0x47c   :  { %v2515_v4 = vmul.f32 0.5, %v2514_v58  ;;  %v1602_v22 = vpop.xlane.xlu0 %1601  ;;  %v2067_v10 = vmul.f32 %v1857_v8, %v1857_v8  ;;  %vm2528_vm6 = vweird.f32 %v2483_v1 }
 0x47d   :  { %v2306_v56 = vadd.f32 %v2305_v2, %v2063_v23 }
 0x47e   :  { %v4113_v18 = vpop.eup %4112  ;;  %v2516_v60 = vsub.f32 1.5, %v2515_v4  ;;  %v2310_v26 = vsel %vm117_vm0, %v2067_v10, 0.0 }
 0x47f   :  { %v2523_v51 = vmul.f32 %v4113_v18, %v2483_v1  ;;  %v2307_v24 = vadd.f32 %v2306_v56, %v2064_v20  ;;  %vm2529_vm5 = vweird.f32 %v4113_v18 }
 0x480   :  { %v2517_v58 = vmul.f32 %v4111_v59, %v2516_v60  ;;  %vm2530_vm7 = vmor %vm2528_vm6, %vm2529_vm5 }
 0x481   :  { %v2524_v44 = vmul.f32 %v4113_v18, %v2523_v51  ;;  %2285 = vadd.xlane.f32.xlu0 %v2284_v14  ;;  %v2308_v54 = vadd.f32 %v2307_v24, %v2065_v33  ;;  %v2453_v24 = vld [vmem:[%s8154_s5 + $0x8] sm:$0xff]  ;;  %v6329_v51 = vmul.f32 0.0012755102, %v1602_v22  ;;  %v2842_v22 = vld [vmem:[%s8155_s6] sm:$0xff] }
 0x482   :  { %v2521_v2 = vsel %vm2520_vm4, %v4111_v59, %v2517_v58 }
 0x483   :  { %v2525_v4 = vmul.f32 0.5, %v2524_v44  ;;  %v2309_v3 = vadd.f32 %v2308_v54, %v2066_v48  ;;  %v2812_v31 = vmul.f32 %v2521_v2, %v2452_v42  ;;  %v1858_v44 = vsub.f32 %v8702_v45, %v6329_v51  ;;  %v8872_v48 = vld [vmem:[#allocation75_spill] sm:$0xff] }
 0x484   :  { %v2178_v23 = vpop.xlane.xlu0 %2177  ;;  %v1859_v10 = vsub.f32 %v8872_v48, %v6329_v51 }
 0x485   :  { %v2526_v17 = vsub.f32 1.5, %v2525_v4  ;;  %v2424_v63 = vmul.f32 0.0012755102, %v2178_v23  ;;  %v2311_v20 = vadd.f32 %v2310_v26, %v2309_v3  ;;  %v2068_v2 = vmul.f32 %v1858_v44, %v1858_v44 }
 0x486   :  { %v2069_v23 = vmul.f32 %v1859_v10, %v1859_v10  ;;  %v2454_v10 = vld [vmem:[%s8154_s5 + $0x10] sm:$0xff] }
 0x487   :  { %v2484_v60 = vadd.f32 0.001, %v2424_v63  ;;  %v2527_v56 = vmul.f32 %v4113_v18, %v2526_v17  ;;  %v8875_v17 = vld [vmem:[#allocation76_spill] sm:$0xff] }
 0x488   :  { %2934 = vperm.xlu1 %4097, %v2812_v31   ;;  %v1860_v63 = vsub.f32 %v8875_v17, %v6329_v51 }
 0x489   :  { %4114 = vrsqrt.f32 %v2484_v60  ;;  %2312 = vadd.xlane.f32.xlu0 %v2311_v20  ;;  %v2531_v33 = vsel %vm2530_vm7, %v4113_v18, %v2527_v56  ;;  %v8874_v18 = vld [vmem:[#allocation166_spill] sm:$0xff]  ;;  %vm2538_vm9 = vweird.f32 %v2484_v60 }
 0x48a   :  { %v6326_v46 = vmul.f32 %v2531_v33, %v2453_v24  ;;  %v2872_v4 = vmul.f32 %v2812_v31, %v8874_v18  ;;  %v2314_v33 = vadd.f32 %v2069_v23, %v2068_v2 }
 0x48c   :  { %v1611_v59 = vpop.xlane.xlu0 %1610  ;;  %v2902_v56 = vsub.f32 %v2842_v22, %v2872_v4 }
 0x48d   :  { %v6335_v54 = vmul.f32 0.0012755102, %v1611_v59  ;;  %v8876_v59 = vld [vmem:[#allocation177_spill] sm:$0xff] }
 0x48f   :  { %v4115_v8 = vpop.eup %4114  ;;  %2939 = vperm.xlu2 %4098, %v6326_v46   ;;  %8873 = vst [vmem:[#allocation227_spill] sm:$0xff] %v6335_v54  ;;  %v1865_v26 = vsub.f32 %v8722_v7, %v6335_v54  ;;  %v1866_v20 = vsub.f32 %v8723_v0, %v6335_v54  ;;  %v1867_v22 = vsub.f32 %v8726_v5, %v6335_v54  ;;  %v8892_v7 = vld [vmem:[#allocation180_spill] sm:$0xff] }
 0x490   :  { %v2533_v3 = vmul.f32 %v4115_v8, %v2484_v60  ;;  %vm2539_vm8 = vweird.f32 %v4115_v8  ;;  %v1870_v48 = vsub.f32 %v5838_v16, %v6335_v54  ;;  %v2844_v16 = vld [vmem:[%s8155_s6 + $0x10] sm:$0xff] }
 0x491   :  { %v2076_v44 = vmul.f32 %v1866_v20, %v1866_v20  ;;  %vm2540_vm10 = vmor %vm2538_vm9, %vm2539_vm8  ;;  %v2077_v20 = vmul.f32 %v1867_v22, %v1867_v22 }
 0x492   :  { %v2534_v14 = vmul.f32 %v4115_v8, %v2533_v3  ;;  %v1861_v3 = vsub.f32 %v8876_v59, %v6329_v51 }
 0x494   :  { %v2535_v1 = vmul.f32 0.5, %v2534_v14  ;;  %v1620_v58 = vpop.xlane.xlu0 %1619  ;;  %v2070_v14 = vmul.f32 %v1860_v63, %v1860_v63  ;;  %v2071_v23 = vmul.f32 %v1861_v3, %v1861_v3 }
 0x496   :  { %v2536_v42 = vsub.f32 1.5, %v2535_v1  ;;  %v2075_v1 = vmul.f32 %v1865_v26, %v1865_v26  ;;  %v2315_v4 = vadd.f32 %v2314_v33, %v2070_v14  ;;  %v1868_v26 = vsub.f32 %v5891_v27, %v6335_v54  ;;  %v8891_v27 = vld [vmem:[#allocation92_spill] sm:$0xff] }
 0x498   :  { %v2537_v31 = vmul.f32 %v4115_v8, %v2536_v42  ;;  %v8877_v42 = vld [vmem:[#allocation165_spill] sm:$0xff]  ;;  %v2316_v63 = vadd.f32 %v2315_v4, %v2071_v23 }
 0x499   :  { %v1862_v2 = vsub.f32 %v8877_v42, %v6329_v51  ;;  %v8879_v42 = vld [vmem:[#allocation168_spill] sm:$0xff] }
 0x49a   :  { %v2541_v18 = vsel %vm2540_vm10, %v4115_v8, %v2537_v31  ;;  %v8878_v8 = vld [vmem:[#allocation167_spill] sm:$0xff]  ;;  %v1864_v3 = vsub.f32 %v8879_v42, %v6329_v51 }
 0x49b   :  { %v6358_v59 = vmul.f32 %v2541_v18, %v2454_v10  ;;  %v1863_v31 = vsub.f32 %v8878_v8, %v6329_v51  ;;  %v2072_v33 = vmul.f32 %v1862_v2, %v1862_v2  ;;  %v2078_v10 = vmul.f32 %v1868_v26, %v1868_v26 }
 0x49c   :  { %v6347_v24 = vpop.xlane.xlu0 %1628  ;;  %v2074_v23 = vmul.f32 %v1864_v3, %v1864_v3  ;;  %v6373_v8 = vmul.f32 0.0012755102, %v1620_v58  ;;  %v1871_v2 = vsub.f32 %v5832_v40, %v6335_v54  ;;  %v2187_v58 = vpop.xlane.xlu1 %2186 }
 0x49d   :  { %3294 = vperm.xlu0 %4099, %v2902_v56   ;;  %v2323_v56 = vadd.f32 %v2076_v44, %v2075_v1  ;;  %v2317_v1 = vadd.f32 %v2316_v63, %v2072_v33  ;;  %v1869_v44 = vsub.f32 %v5828_v36, %v6335_v54  ;;  %v2073_v18 = vmul.f32 %v1863_v31, %v1863_v31 }
 0x49e   :  { %v2319_v63 = vsel %vm117_vm0, %v2074_v23, 0.0  ;;  %v2080_v33 = vmul.f32 %v1870_v48, %v1870_v48  ;;  %v2081_v26 = vmul.f32 %v1871_v2, %v1871_v2  ;;  %v1872_v31 = vsub.f32 %v8730_v30, %v6373_v8 }
 0x49f   :  { %v2324_v14 = vadd.f32 %v2323_v56, %v2077_v20  ;;  %v2318_v22 = vadd.f32 %v2317_v1, %v2073_v18  ;;  %v2079_v45 = vmul.f32 %v1869_v44, %v1869_v44  ;;  %v1874_v48 = vsub.f32 %v8735_v21, %v6373_v8  ;;  %v8904_v21 = vld [vmem:[#allocation199_spill] sm:$0xff] }
 0x4a0   :  { %v2082_v18 = vmul.f32 %v1872_v31, %v1872_v31  ;;  %v2425_v23 = vmul.f32 0.0012755102, %v2187_v58  ;;  %v1875_v2 = vsub.f32 %v5925_v9, %v6373_v8 }
 0x4a1   :  { %v2325_v4 = vadd.f32 %v2324_v14, %v2078_v10  ;;  %v2320_v20 = vadd.f32 %v2319_v63, %v2318_v22  ;;  %v8880_v14 = vld [vmem:[#allocation83_spill] sm:$0xff]  ;;  %v2328_v10 = vsel %vm117_vm0, %v2081_v26, 0.0  ;;  %v2084_v63 = vmul.f32 %v1874_v48, %v1874_v48 }
 0x4a2   :  { %v1873_v3 = vsub.f32 %v8880_v14, %v6373_v8  ;;  %v1876_v26 = vsub.f32 %v5864_v57, %v6373_v8  ;;  %v2085_v31 = vmul.f32 %v1875_v2, %v1875_v2 }
 0x4a3   :  { %v2326_v56 = vadd.f32 %v2325_v4, %v2079_v45 }
 0x4a4   :  { %v6360_v60 = vpop.xlane.xlu0 %2204  ;;  %v2083_v45 = vmul.f32 %v1873_v3, %v1873_v3  ;;  %v2086_v58 = vmul.f32 %v1876_v26, %v1876_v26  ;;  %v8882_v26 = vld [vmem:[#allocation175_spill] sm:$0xff] }
 0x4a5   :  { %2944 = vperm.xlu0 %4099, %v6358_v59   ;;  %v2327_v1 = vadd.f32 %v2326_v56, %v2080_v33  ;;  %v2874_v40 = vmul.f32 %v6358_v59, %v8882_v26 }
 0x4a6   :  { %v2332_v22 = vadd.f32 %v2083_v45, %v2082_v18  ;;  %v1878_v18 = vsub.f32 %v5869_v19, %v6373_v8  ;;  %v8881_v45 = vld [vmem:[#allocation170_spill] sm:$0xff] }
 0x4a7   :  { %v2329_v4 = vadd.f32 %v2328_v10, %v2327_v1  ;;  %v1877_v1 = vsub.f32 %v5873_v49, %v6373_v8  ;;  %v2904_v36 = vsub.f32 %v2844_v16, %v2874_v40  ;;  %v8887_v16 = vld [vmem:[#allocation89_spill] sm:$0xff]  ;;  %v8893_v19 = vld [vmem:[#allocation182_spill] sm:$0xff] }
 0x4a8   :  { %v2333_v33 = vadd.f32 %v2332_v22, %v2084_v63  ;;  %v2843_v22 = vld [vmem:[%s8155_s6 + $0x8] sm:$0xff]  ;;  %v2088_v63 = vmul.f32 %v1878_v18, %v1878_v18  ;;  %v6413_v18 = vmul.f32 0.0012755102, %v6347_v24 }
 0x4a9   :  { %v2087_v2 = vmul.f32 %v1877_v1, %v1877_v1 }
 0x4aa   :  { %v2334_v3 = vadd.f32 %v2333_v33, %v2085_v31  ;;  %8883 = vst [vmem:[#allocation166_spill] sm:$0xff] %v6413_v18 }
 0x4ac   :  { %v1638_v17 = vpop.xlane.xlu0 %1637  ;;  %v2335_v48 = vadd.f32 %v2334_v3, %v2086_v58  ;;  %v2337_v3 = vsel %vm117_vm0, %v2088_v63, 0.0 }
 0x4ae   :  { %v2336_v42 = vadd.f32 %v2335_v48, %v2087_v2  ;;  %v6417_v48 = vmul.f32 0.0012755102, %v1638_v17  ;;  %v2455_v17 = vld [vmem:[%s8154_s5 + $0x18] sm:$0xff] }
 0x4b0   :  { %8884 = vst [vmem:[#allocation170_spill] sm:$0xff] %v6417_v48  ;;  %v1886_v24 = vsub.f32 %v8887_v16, %v6417_v48  ;;  %v1888_v5 = vsub.f32 %v8891_v27, %v6417_v48 }
 0x4b2   :  { %2321 = vadd.xlane.f32.xlu1 %v2320_v20  ;;  %v2485_v20 = vadd.f32 0.001, %v2425_v23 }
 0x4b4   :  { %v6382_v44 = vpop.xlane.xlu0 %1646  ;;  %4116 = vrsqrt.f32 %v2485_v20  ;;  %vm2548_vm12 = vweird.f32 %v2485_v20 }
 0x4b8   :  { %2330 = vadd.xlane.f32.xlu2 %v2329_v4  ;;  %v2873_v4 = vmul.f32 %v6326_v46, %v8881_v45  ;;  %v2338_v45 = vadd.f32 %v2337_v3, %v2336_v42 }
 0x4ba   :  { %v4117_v23 = vpop.eup %4116  ;;  %v2903_v31 = vsub.f32 %v2843_v22, %v2873_v4  ;;  %v8885_v22 = vld [vmem:[#allocation85_spill] sm:$0xff] }
 0x4bb   :  { %v2543_v33 = vmul.f32 %v4117_v23, %v2485_v20  ;;  %v1879_v2 = vsub.f32 %v8885_v22, %v6413_v18  ;;  %vm2549_vm11 = vweird.f32 %v4117_v23  ;;  %v8890_v22 = vld [vmem:[#allocation191_spill] sm:$0xff] }
 0x4bc   :  { %v6389_v56 = vpop.xlane.xlu0 %1655  ;;  %vm2550_vm13 = vmor %vm2548_vm12, %vm2549_vm11  ;;  %v1882_v16 = vsub.f32 %v8890_v22, %v6413_v18 }
 0x4bd   :  { %v2544_v58 = vmul.f32 %v4117_v23, %v2543_v33  ;;  %v2089_v40 = vmul.f32 %v1879_v2, %v1879_v2  ;;  %v8888_v33 = vld [vmem:[#allocation91_spill] sm:$0xff] }
 0x4be   :  { %v1887_v26 = vsub.f32 %v8888_v33, %v6417_v48 }
 0x4bf   :  { %v2545_v1 = vmul.f32 0.5, %v2544_v58  ;;  %v8889_v58 = vld [vmem:[#allocation88_spill] sm:$0xff] }
 0x4c0   :  { %v2097_v2 = vmul.f32 %v1887_v26, %v1887_v26 }
 0x4c1   :  { %v2546_v4 = vsub.f32 1.5, %v2545_v1 }
 0x4c3   :  { %v2547_v42 = vmul.f32 %v4117_v23, %v2546_v4  ;;  %v2096_v4 = vmul.f32 %v1886_v24, %v1886_v24  ;;  %v8894_v24 = vld [vmem:[#allocation196_spill] sm:$0xff] }
 0x4c4   :  { %v6395_v10 = vpop.xlane.xlu0 %2231  ;;  %v1889_v26 = vsub.f32 %v8894_v24, %v6417_v48  ;;  %v8897_v24 = vld [vmem:[#allocation183_spill] sm:$0xff] }
 0x4c5   :  { %v2551_v3 = vsel %vm2550_vm13, %v4117_v23, %v2547_v42  ;;  %v2350_v42 = vadd.f32 %v2097_v2, %v2096_v4  ;;  %v1885_v27 = vsub.f32 %v8897_v24, %v6413_v18 }
 0x4c6   :  { %v2099_v22 = vmul.f32 %v1889_v26, %v1889_v26 }
 0x4cb   :  { %3299 = vperm.xlu1 %4097, %v2903_v31   ;;  %v8886_v31 = vld [vmem:[#allocation87_spill] sm:$0xff] }
 0x4cc   :  { %v6409_v46 = vpop.xlane.xlu0 %1664  ;;  %v1880_v63 = vsub.f32 %v8886_v31, %v6413_v18  ;;  %v2815_v31 = vmul.f32 %v2551_v3, %v2455_v17  ;;  %v2098_v17 = vmul.f32 %v1888_v5, %v1888_v5  ;;  %v2845_v3 = vld [vmem:[%s8155_s6 + $0x18] sm:$0xff] }
 0x4cf   :  { %2339 = vadd.xlane.f32.xlu0 %v2338_v45  ;;  %v1881_v45 = vsub.f32 %v8889_v58, %v6413_v18  ;;  %v2875_v58 = vmul.f32 %v2815_v31, %v8892_v7  ;;  %v8895_v7 = vld [vmem:[#allocation184_spill] sm:$0xff] }
 0x4d0   :  { %3304 = vperm.xlu2 %4098, %v2904_v36   ;;  %v2090_v36 = vmul.f32 %v1880_v63, %v1880_v63  ;;  %v2196_v63 = vpop.xlane.xlu2 %2195 }
 0x4d1   :  { %v2091_v33 = vmul.f32 %v1881_v45, %v1881_v45  ;;  %v2426_v0 = vmul.f32 0.0012755102, %v2196_v63  ;;  %v2427_v63 = vmul.f32 0.0012755102, %v6360_v60 }
 0x4d2   :  { %v2341_v20 = vadd.f32 %v2090_v36, %v2089_v40  ;;  %v1883_v40 = vsub.f32 %v8893_v19, %v6413_v18  ;;  %v2092_v36 = vmul.f32 %v1882_v16, %v1882_v16  ;;  %v2905_v16 = vsub.f32 %v2845_v3, %v2875_v58  ;;  %v8896_v19 = vld [vmem:[#allocation187_spill] sm:$0xff] }
 0x4d3   :  { %v6446_v45 = vadd.f32 0.001, %v2426_v0  ;;  %v1890_v5 = vsub.f32 %v8896_v19, %v6417_v48  ;;  %v2214_v0 = vpop.xlane.xlu1 %2213  ;;  %v6458_v60 = vadd.f32 0.001, %v2427_v63  ;;  %v2095_v3 = vmul.f32 %v1885_v27, %v1885_v27 }
 0x4d4   :  { %v6415_v59 = vpop.xlane.xlu0 %1673  ;;  %v2342_v23 = vadd.f32 %v2341_v20, %v2091_v33  ;;  %v2351_v20 = vadd.f32 %v2350_v42, %v2098_v17  ;;  %v2093_v2 = vmul.f32 %v1883_v40, %v1883_v40  ;;  %v8898_v17 = vld [vmem:[#allocation189_spill] sm:$0xff] }
 0x4d5   :  { %4118 = vrsqrt.f32 %v6446_v45  ;;  %v1891_v58 = vsub.f32 %v8898_v17, %v6417_v48  ;;  %v2100_v40 = vmul.f32 %v1890_v5, %v1890_v5  ;;  %v2346_v63 = vsel %vm117_vm0, %v2095_v3, 0.0 }
 0x4d6   :  { %v2343_v33 = vadd.f32 %v2342_v23, %v2092_v36  ;;  %v2352_v42 = vadd.f32 %v2351_v20, %v2099_v22  ;;  %4120 = vrsqrt.f32 %v6458_v60  ;;  %v6469_v22 = vmul.f32 0.0012755102, %v6382_v44  ;;  %v8902_v44 = vld [vmem:[#allocation50_spill] sm:$0xff] }
 0x4d7   :  { %v2101_v57 = vmul.f32 %v1891_v58, %v1891_v58  ;;  %v8901_v58 = vld [vmem:[#allocation22_spill] sm:$0xff]  ;;  %vm2558_vm15 = vweird.f32 %v6446_v45  ;;  %vm2568_vm3 = vweird.f32 %v6458_v60 }
 0x4d8   :  { %v2344_v23 = vadd.f32 %v2343_v33, %v2093_v2  ;;  %v2353_v19 = vadd.f32 %v2352_v42, %v2100_v40  ;;  %8900 = vst [vmem:[#allocation175_spill] sm:$0xff] %v6469_v22  ;;  %v6477_v42 = vpop.xlane.xlu2 %2222  ;;  %v1893_v40 = vsub.f32 %v8901_v58, %v6469_v22  ;;  %v1894_v3 = vsub.f32 %v8902_v44, %v6469_v22 }
 0x4db   :  { %v4119_v49 = vpop.eup %4118  ;;  %v6466_v33 = vpop.xlane.xlu1 %2240 }
 0x4dc   :  { %v6432_v1 = vpop.xlane.xlu0 %1682  ;;  %v2553_v2 = vmul.f32 %v4119_v49, %v6446_v45  ;;  %v6474_v5 = vpop.eup %4120  ;;  %vm2559_vm14 = vweird.f32 %v4119_v49 }
 0x4dd   :  { %vm2560_vm1 = vmor %vm2558_vm15, %vm2559_vm14  ;;  %vm2569_vm2 = vweird.f32 %v6474_v5 }
 0x4de   :  { %vm2570_vm4 = vmor %vm2568_vm3, %vm2569_vm2 }
 0x4e0   :  { %v6492_v58 = vpop.xlane.xlu2 %2249 }
 0x4e3   :  { %2949 = vperm.xlu0 %4099, %v2815_v31   ;;  %v1884_v31 = vsub.f32 %v8895_v7, %v6413_v18  ;;  %v8899_v7 = vld [vmem:[#allocation188_spill] sm:$0xff] }
 0x4e4   :  { %v6451_v4 = vpop.xlane.xlu0 %2258  ;;  %v1892_v26 = vsub.f32 %v8899_v7, %v6417_v48 }
 0x4e5   :  { %v2094_v36 = vmul.f32 %v1884_v31, %v1884_v31  ;;  %v2354_v31 = vadd.f32 %v2353_v19, %v2101_v57  ;;  %v2563_v19 = vmul.f32 %v6474_v5, %v6458_v60  ;;  %v6485_v57 = vpop.xlane.xlu1 %2267  ;;  %v8909_v60 = vld [vmem:[#allocation7_spill] sm:$0xff] }
 0x4e7   :  { %v2345_v24 = vadd.f32 %v2344_v23, %v2094_v36  ;;  %v2564_v7 = vmul.f32 %v6474_v5, %v2563_v19 }
 0x4e9   :  { %v2347_v27 = vadd.f32 %v2346_v63, %v2345_v24  ;;  %v2103_v24 = vmul.f32 %v1893_v40, %v1893_v40  ;;  %v2104_v63 = vmul.f32 %v1894_v3, %v1894_v3  ;;  %v1896_v40 = vsub.f32 %v8904_v21, %v6469_v22 }
 0x4eb   :  { %3309 = vperm.xlu0 %4099, %v2905_v16   ;;  %v2102_v16 = vmul.f32 %v1892_v26, %v1892_v26  ;;  %v2554_v26 = vmul.f32 %v4119_v49, %v2553_v2  ;;  %v2359_v2 = vadd.f32 %v2104_v63, %v2103_v24  ;;  %v2106_v24 = vmul.f32 %v1896_v40, %v1896_v40 }
 0x4ec   :  { %v6471_v20 = vpop.xlane.xlu0 %1691 }
 0x4ed   :  { %v2355_v23 = vsel %vm117_vm0, %v2102_v16, 0.0  ;;  %v2428_v16 = vmul.f32 0.0012755102, %v2214_v0 }
 0x4ee   :  { %v2356_v36 = vadd.f32 %v2355_v23, %v2354_v31  ;;  %v8903_v23 = vld [vmem:[#allocation78_spill] sm:$0xff] }
 0x4ef   :  { %v1895_v17 = vsub.f32 %v8903_v23, %v6469_v22  ;;  %v6494_v9 = vadd.f32 0.001, %v2428_v16  ;;  %v8905_v23 = vld [vmem:[#allocation193_spill] sm:$0xff] }
 0x4f0   :  { %v1897_v30 = vsub.f32 %v8905_v23, %v6469_v22 }
 0x4f1   :  { %v2105_v3 = vmul.f32 %v1895_v17, %v1895_v17  ;;  %4122 = vrsqrt.f32 %v6494_v9  ;;  %vm2578_vm6 = vweird.f32 %v6494_v9 }
 0x4f2   :  { %v2107_v40 = vmul.f32 %v1897_v30, %v1897_v30 }
 0x4f3   :  { %v2360_v0 = vadd.f32 %v2359_v2, %v2105_v3  ;;  %v8906_v2 = vld [vmem:[#allocation195_spill] sm:$0xff]  ;;  %v8907_v3 = vld [vmem:[#allocation194_spill] sm:$0xff] }
 0x4f4   :  { %v6488_v31 = vpop.xlane.xlu0 %2285 }
 0x4f5   :  { %2348 = vadd.xlane.f32.xlu1 %v2347_v27  ;;  %v2555_v27 = vmul.f32 0.5, %v2554_v26  ;;  %v6498_v26 = vpop.xlane.xlu1 %2294  ;;  %v2361_v17 = vadd.f32 %v2360_v0, %v2106_v24  ;;  %v1899_v0 = vsub.f32 %v8907_v3, %v6469_v22 }
 0x4f7   :  { %v2556_v44 = vsub.f32 1.5, %v2555_v27  ;;  %v2456_v27 = vld [vmem:[%s8154_s5 + $0x20] sm:$0xff]  ;;  %v6515_v45 = vpop.eup %4122  ;;  %v2362_v21 = vadd.f32 %v2361_v17, %v2107_v40  ;;  %v2109_v41 = vmul.f32 %v1899_v0, %v1899_v0  ;;  %v8915_v0 = vld [vmem:[#allocation96_spill] sm:$0xff] }
 0x4f8   :  { %v2573_v30 = vmul.f32 %v6515_v45, %v6494_v9  ;;  %vm2579_vm5 = vweird.f32 %v6515_v45  ;;  %v8921_v9 = vld [vmem:[#allocation58_spill] sm:$0xff] }
 0x4f9   :  { %2357 = vadd.xlane.f32.xlu2 %v2356_v36  ;;  %v2565_v36 = vmul.f32 0.5, %v2564_v7  ;;  %v2557_v14 = vmul.f32 %v4119_v49, %v2556_v44  ;;  %v6504_v7 = vpop.xlane.xlu2 %1700  ;;  %vm2580_vm7 = vmor %vm2578_vm6, %vm2579_vm5 }
 0x4fb   :  { %v2566_v19 = vsub.f32 1.5, %v2565_v36  ;;  %v2561_v16 = vsel %vm2560_vm1, %v4119_v49, %v2557_v14  ;;  %v1898_v36 = vsub.f32 %v8906_v2, %v6469_v22  ;;  %v2457_v49 = vld [vmem:[%s8154_s5 + $0x28] sm:$0xff]  ;;  %v8908_v2 = vld [vmem:[#allocation6_spill] sm:$0xff] }
 0x4fc   :  { %v6506_v63 = vpop.xlane.xlu0 %2312  ;;  %v2816_v23 = vmul.f32 %v2561_v16, %v2456_v27  ;;  %v8911_v27 = vld [vmem:[#allocation105_spill] sm:$0xff] }
 0x4fd   :  { %v2567_v44 = vmul.f32 %v6474_v5, %v2566_v19  ;;  %v2935_v24 = vpop.permute.xlu1 %2934  ;;  %v2108_v19 = vmul.f32 %v1898_v36, %v1898_v36 }
 0x4fe   :  { %v3082_v38 = vmul.f32 %v2935_v24, %v8908_v2  ;;  %v3083_v61 = vmul.f32 %v2935_v24, %v8909_v60  ;;  %v3084_v3 = vmul.f32 %v2935_v24, %v8910_v6  ;;  %v3085_v17 = vmul.f32 %v2935_v24, %v8911_v27  ;;  %v8914_v2 = vld [vmem:[#allocation95_spill] sm:$0xff] }
 0x4ff   :  { %v2571_v14 = vsel %vm2570_vm4, %v6474_v5, %v2567_v44  ;;  %v2363_v39 = vadd.f32 %v2362_v21, %v2108_v19  ;;  %v2876_v34 = vmul.f32 %v2816_v23, %v8912_v29  ;;  %v8913_v5 = vld [vmem:[#allocation94_spill] sm:$0xff]  ;;  %v3087_v60 = vmul.f32 %v2935_v24, %v8914_v2  ;;  %v2846_v6 = vld [vmem:[%s8155_s6 + $0x20] sm:$0xff] }
 0x500   :  { %v2817_v40 = vmul.f32 %v2571_v14, %v2457_v49  ;;  %v3086_v44 = vmul.f32 %v2935_v24, %v8913_v5  ;;  %v3088_v49 = vmul.f32 %v2935_v24, %v8915_v0  ;;  %v2574_v29 = vmul.f32 %v6515_v45, %v2573_v30 }
 0x501   :  { %v6532_v22 = vpop.xlane.xlu2 %2276  ;;  %v2906_v24 = vsub.f32 %v2846_v6, %v2876_v34  ;;  %v6574_v30 = vmul.f32 0.0012755102, %v6409_v46 }
 0x50e   :  { %2954 = vperm.xlu1 %4097, %v2816_v23  }
 0x50f   :  { %v3295_v16 = vpop.permute.xlu0 %3294 }
 0x510   :  { %v3442_v18 = vadd.f32 %v3295_v16, %v3082_v38  ;;  %v3443_v48 = vadd.f32 %v3295_v16, %v3083_v61  ;;  %v3444_v36 = vadd.f32 %v3295_v16, %v3084_v3  ;;  %v3445_v54 = vadd.f32 %v3295_v16, %v3085_v17  ;;  %v8916_v3 = vld [vmem:[#allocation190_spill] sm:$0xff] }
 0x511   :  { %2959 = vperm.xlu2 %4098, %v2817_v40   ;;  %v3446_v21 = vadd.f32 %v3295_v16, %v3086_v44  ;;  %v2364_v38 = vsel %vm117_vm0, %v2109_v41, 0.0  ;;  %v3447_v61 = vadd.f32 %v3295_v16, %v3087_v60  ;;  %v2877_v14 = vmul.f32 %v2817_v40, %v8916_v3  ;;  %v2847_v41 = vld [vmem:[%s8155_s6 + $0x28] sm:$0xff]  ;;  %v8918_v17 = vld [vmem:[#allocation26_spill] sm:$0xff] }
 0x512   :  { %3652 = vst [vmem:[%s8156_s7] sm:$0xff] %v3442_v18  ;;  %v2365_v23 = vadd.f32 %v2364_v38, %v2363_v39  ;;  %v3448_v19 = vadd.f32 %v3295_v16, %v3088_v49  ;;  %v2575_v39 = vmul.f32 0.5, %v2574_v29  ;;  %v6567_v18 = vpop.xlane.xlu2 %2303  ;;  %v8919_v40 = vld [vmem:[#allocation54_spill] sm:$0xff]  ;;  %v1908_v60 = vsub.f32 %v8921_v9, %v6574_v30 }
 0x513   :  { %3653 = vst [vmem:[%s8156_s7 + $0x8] sm:$0xff] %v3443_v48  ;;  %v2907_v34 = vsub.f32 %v2847_v41, %v2877_v14  ;;  %v6570_v48 = vmul.f32 0.0012755102, %v6389_v56  ;;  %v2458_v56 = vld [vmem:[%s8154_s5 + $0x30] sm:$0xff]  ;;  %v8923_v3 = vld [vmem:[#allocation86_spill] sm:$0xff] }
 0x514   :  { %3654 = vst [vmem:[%s8156_s7 + $0x10] sm:$0xff] %v3444_v36  ;;  %v8920_v36 = vld [vmem:[#allocation30_spill] sm:$0xff]  ;;  %v1909_v14 = vsub.f32 %v8923_v3, %v6574_v30  ;;  %v2848_v41 = vld [vmem:[%s8155_s6 + $0x30] sm:$0xff] }
 0x515   :  { %3655 = vst [vmem:[%s8156_s7 + $0x18] sm:$0xff] %v3445_v54  ;;  %2366 = vadd.xlane.f32.xlu0 %v2365_v23  ;;  %v2576_v54 = vsub.f32 1.5, %v2575_v39  ;;  %v1900_v16 = vsub.f32 %v8918_v17, %v6570_v48  ;;  %v1901_v5 = vsub.f32 %v8919_v40, %v6570_v48  ;;  %v1907_v2 = vsub.f32 %v8920_v36, %v6574_v30  ;;  %v8925_v39 = vld [vmem:[#allocation202_spill] sm:$0xff] }
 0x516   :  { %3656 = vst [vmem:[%s8156_s7 + $0x20] sm:$0xff] %v3446_v21  ;;  %3314 = vperm.xlu1 %4097, %v2906_v24   ;;  %v8922_v21 = vld [vmem:[#allocation82_spill] sm:$0xff] }
 0x517   :  { %3657 = vst [vmem:[%s8156_s7 + $0x28] sm:$0xff] %v3447_v61  ;;  %v2577_v27 = vmul.f32 %v6515_v45, %v2576_v54  ;;  %v2110_v6 = vmul.f32 %v1900_v16, %v1900_v16  ;;  %v2111_v0 = vmul.f32 %v1901_v5, %v1901_v5  ;;  %v1902_v38 = vsub.f32 %v8922_v21, %v6570_v48  ;;  %v8934_v3 = vld [vmem:[#allocation102_spill] sm:$0xff] }
 0x518   :  { %3658 = vst.msk [vmem:[%s8156_s7 + $0x30] sm:$0xff] %vm117_vm0, %v3448_v19  ;;  %v2117_v29 = vmul.f32 %v1907_v2, %v1907_v2  ;;  %v2118_v61 = vmul.f32 %v1908_v60, %v1908_v60  ;;  %v2429_v16 = vmul.f32 0.0012755102, %v6477_v42  ;;  %v2119_v2 = vmul.f32 %v1909_v14, %v1909_v14 }
 0x519   :  { %3319 = vperm.xlu2 %4098, %v2907_v34   ;;  %8917 = vst [vmem:[#allocation180_spill] sm:$0xff] %v6570_v48  ;;  %v2581_v46 = vsel %vm2580_vm7, %v6515_v45, %v2577_v27  ;;  %v2368_v23 = vadd.f32 %v2111_v0, %v2110_v6  ;;  %v8924_v45 = vld [vmem:[#allocation192_spill] sm:$0xff]  ;;  %v1903_v34 = vsub.f32 %v8925_v39, %v6570_v48  ;;  %v2430_v6 = vmul.f32 0.0012755102, %v6395_v10  ;;  %v2945_v0 = vpop.permute.xlu0 %2944  ;;  %v8931_v10 = vld [vmem:[#allocation13_spill] sm:$0xff]  ;;  %v8932_v39 = vld [vmem:[#allocation14_spill] sm:$0xff] }
 0x51a   :  { %v6582_v44 = vpop.permute.xlu2 %2939  ;;  %v2818_v49 = vmul.f32 %v2581_v46, %v2458_v56  ;;  %v2112_v54 = vmul.f32 %v1902_v38, %v1902_v38  ;;  %v2377_v27 = vadd.f32 %v2118_v61, %v2117_v29  ;;  %v8926_v56 = vld [vmem:[#allocation208_spill] sm:$0xff]  ;;  %v6610_v17 = vadd.f32 0.001, %v2429_v16  ;;  %v8928_v38 = vld [vmem:[#allocation201_spill] sm:$0xff] }
 0x51b   :  { %v1910_v46 = vsub.f32 %v8926_v56, %v6574_v30  ;;  %v2113_v21 = vmul.f32 %v1903_v34, %v1903_v34  ;;  %v1905_v42 = vsub.f32 %v8928_v38, %v6570_v48  ;;  %v8929_v29 = vld [vmem:[#allocation200_spill] sm:$0xff]  ;;  %v3098_v56 = vmul.f32 %v2945_v0, %v8932_v39  ;;  %v8933_v16 = vld [vmem:[#allocation113_spill] sm:$0xff] }
 0x51c   :  { %v2878_v19 = vmul.f32 %v2818_v49, %v8924_v45  ;;  %v2369_v5 = vadd.f32 %v2368_v23, %v2112_v54  ;;  %v2378_v40 = vadd.f32 %v2377_v27, %v2119_v2  ;;  %v1906_v61 = vsub.f32 %v8929_v29, %v6570_v48 }
 0x51d   :  { %v2120_v14 = vmul.f32 %v1910_v46, %v1910_v46  ;;  %v3097_v54 = vmul.f32 %v2945_v0, %v8931_v10  ;;  %v1911_v34 = vsub.f32 %v6040_v25, %v6574_v30  ;;  %v6621_v27 = vadd.f32 0.001, %v2430_v6  ;;  %v8936_v6 = vld [vmem:[#allocation104_spill] sm:$0xff] }
 0x51e   :  { %v2908_v60 = vsub.f32 %v2848_v41, %v2878_v19  ;;  %v2370_v23 = vadd.f32 %v2369_v5, %v2113_v21  ;;  %v8930_v19 = vld [vmem:[#allocation12_spill] sm:$0xff]  ;;  %v3099_v2 = vmul.f32 %v2945_v0, %v8933_v16  ;;  %v3100_v29 = vmul.f32 %v2945_v0, %v8934_v3 }
 0x51f   :  { %v3096_v41 = vmul.f32 %v2945_v0, %v8930_v19  ;;  %4124 = vrsqrt.f32 %v6610_v17  ;;  %v8935_v19 = vld [vmem:[#allocation103_spill] sm:$0xff]  ;;  %v3102_v36 = vmul.f32 %v2945_v0, %v8936_v6  ;;  %v2121_v3 = vmul.f32 %v1911_v34, %v1911_v34  ;;  %v8938_v34 = vld [vmem:[#allocation10_spill] sm:$0xff] }
 0x520   :  { %v3101_v10 = vmul.f32 %v2945_v0, %v8935_v19  ;;  %4126 = vrsqrt.f32 %v6621_v27  ;;  %vm2588_vm10 = vweird.f32 %v6610_v17  ;;  %vm2598_vm12 = vweird.f32 %v6621_v27 }
 0x525   :  { %v6627_v39 = vpop.xlane.xlu1 %2321 }
 0x529   :  { %2964 = vperm.xlu0 %4099, %v2818_v49   ;;  %v8927_v49 = vld [vmem:[#allocation198_spill] sm:$0xff] }
 0x52a   :  { %v1904_v45 = vsub.f32 %v8927_v49, %v6570_v48  ;;  %v2379_v49 = vadd.f32 %v2378_v40, %v2120_v14  ;;  %v1912_v40 = vsub.f32 %v6044_v35, %v6574_v30  ;;  %v2116_v14 = vmul.f32 %v1906_v61, %v1906_v61 }
 0x52b   :  { %v6597_v24 = vpop.xlane.xlu2 %2330 }
 0x52c   :  { %v2114_v38 = vmul.f32 %v1904_v45, %v1904_v45  ;;  %v2115_v45 = vmul.f32 %v1905_v42, %v1905_v42  ;;  %v2122_v61 = vmul.f32 %v1912_v40, %v1912_v40 }
 0x52e   :  { %v2371_v25 = vadd.f32 %v2370_v23, %v2114_v38  ;;  %v1913_v38 = vsub.f32 %v6042_v15, %v6574_v30  ;;  %v6645_v23 = vmul.f32 0.0012755102, %v6415_v59 }
 0x530   :  { %v2372_v42 = vadd.f32 %v2371_v25, %v2115_v45  ;;  %v2123_v59 = vmul.f32 %v1913_v38, %v1913_v38  ;;  %v3090_v25 = vmul.f32 %v6582_v44, %v8938_v34 }
 0x531   :  { %3324 = vperm.xlu0 %4099, %v2908_v60  }
 0x533   :  { %v3305_v60 = vpop.permute.xlu2 %3304 }
 0x534   :  { %v3456_v21 = vadd.f32 %v3305_v60, %v3096_v41  ;;  %v3457_v5 = vadd.f32 %v3305_v60, %v3097_v54  ;;  %v3458_v46 = vadd.f32 %v3305_v60, %v3098_v56  ;;  %v3459_v9 = vadd.f32 %v3305_v60, %v3099_v2  ;;  %v6653_v41 = vpop.eup %4124  ;;  %v8940_v2 = vld [vmem:[#allocation109_spill] sm:$0xff] }
 0x535   :  { %v3460_v48 = vadd.f32 %v3305_v60, %v3100_v29  ;;  %v3461_v56 = vadd.f32 %v3305_v60, %v3101_v10  ;;  %v3462_v0 = vadd.f32 %v3305_v60, %v3102_v36  ;;  %v2380_v29 = vadd.f32 %v2379_v49, %v2121_v3  ;;  %v8937_v49 = vld [vmem:[#allocation9_spill] sm:$0xff]  ;;  %v8942_v10 = vld [vmem:[#allocation62_spill] sm:$0xff]  ;;  %v6675_v40 = vpop.eup %4126 }
 0x536   :  { %3666 = vst [vmem:[%s8156_s7 + $0x70] sm:$0xff] %v3456_v21  ;;  %v2373_v36 = vsel %vm117_vm0, %v2116_v14, 0.0  ;;  %v3089_v54 = vmul.f32 %v6582_v44, %v8937_v49  ;;  %v3092_v60 = vmul.f32 %v6582_v44, %v8940_v2  ;;  %v1915_v6 = vsub.f32 %v8942_v10, %v6645_v23  ;;  %v8943_v3 = vld [vmem:[#allocation98_spill] sm:$0xff]  ;;  %v8945_v49 = vld [vmem:[#allocation100_spill] sm:$0xff] }
 0x537   :  { %3667 = vst [vmem:[%s8156_s7 + $0x78] sm:$0xff] %v3457_v5  ;;  %v2374_v5 = vadd.f32 %v2373_v36, %v2372_v42  ;;  %v2382_v36 = vsel %vm117_vm0, %v2123_v59, 0.0  ;;  %v3095_v34 = vmul.f32 %v6582_v44, %v8945_v49  ;;  %vm2589_vm8 = vweird.f32 %v6653_v41 }
 0x538   :  { %3668 = vst [vmem:[%s8156_s7 + $0x80] sm:$0xff] %v3458_v46  ;;  %v8941_v46 = vld [vmem:[#allocation34_spill] sm:$0xff]  ;;  %v2125_v59 = vmul.f32 %v1915_v6, %v1915_v6  ;;  %v8947_v6 = vld [vmem:[#allocation211_spill] sm:$0xff]  ;;  %vm2599_vm9 = vweird.f32 %v6675_v40  ;;  %vm2590_vm11 = vmor %vm2588_vm10, %vm2589_vm8 }
 0x539   :  { %3669 = vst [vmem:[%s8156_s7 + $0x88] sm:$0xff] %v3459_v9  ;;  %v8939_v9 = vld [vmem:[#allocation11_spill] sm:$0xff]  ;;  %v1914_v19 = vsub.f32 %v8941_v46, %v6645_v23  ;;  %vm2600_vm13 = vmor %vm2598_vm12, %vm2599_vm9 }
 0x53a   :  { %3670 = vst [vmem:[%s8156_s7 + $0x90] sm:$0xff] %v3460_v48  ;;  %v3091_v16 = vmul.f32 %v6582_v44, %v8939_v9  ;;  %v2381_v48 = vadd.f32 %v2380_v29, %v2122_v61  ;;  %v8944_v29 = vld [vmem:[#allocation99_spill] sm:$0xff] }
 0x53b   :  { %3671 = vst [vmem:[%s8156_s7 + $0x98] sm:$0xff] %v3461_v56  ;;  %v3093_v56 = vmul.f32 %v6582_v44, %v8943_v3  ;;  %v3094_v42 = vmul.f32 %v6582_v44, %v8944_v29  ;;  %v2124_v2 = vmul.f32 %v1914_v19, %v1914_v19  ;;  %v8946_v44 = vld [vmem:[#allocation90_spill] sm:$0xff]  ;;  %v2431_v3 = vmul.f32 0.0012755102, %v6466_v33  ;;  %v8948_v29 = vld [vmem:[#allocation209_spill] sm:$0xff] }
 0x53c   :  { %3672 = vst.msk [vmem:[%s8156_s7 + $0xa0] sm:$0xff] %vm117_vm0, %v3462_v0  ;;  %v2583_v0 = vmul.f32 %v6653_v41, %v6610_v17  ;;  %v2460_v17 = vld [vmem:[%s8154_s5 + $0x40] sm:$0xff] }
 0x53d   :  { %v3300_v21 = vpop.permute.xlu1 %3299  ;;  %v2386_v19 = vadd.f32 %v2125_v59, %v2124_v2  ;;  %v1920_v2 = vsub.f32 %v6084_v28, %v6645_v23 }
 0x53e   :  { %v3449_v45 = vadd.f32 %v3300_v21, %v3089_v54  ;;  %v3450_v14 = vadd.f32 %v3300_v21, %v3090_v25  ;;  %v3451_v38 = vadd.f32 %v3300_v21, %v3091_v16  ;;  %v3452_v61 = vadd.f32 %v3300_v21, %v3092_v60 }
 0x53f   :  { %v3453_v9 = vadd.f32 %v3300_v21, %v3093_v56  ;;  %v2383_v54 = vadd.f32 %v2382_v36, %v2381_v48  ;;  %v2593_v25 = vmul.f32 %v6675_v40, %v6621_v27  ;;  %v3454_v16 = vadd.f32 %v3300_v21, %v3094_v42 }
 0x540   :  { %3659 = vst [vmem:[%s8156_s7 + $0x38] sm:$0xff] %v3449_v45  ;;  %2375 = vadd.xlane.f32.xlu1 %v2374_v5  ;;  %v3455_v60 = vadd.f32 %v3300_v21, %v3095_v34  ;;  %v1916_v48 = vsub.f32 %v8946_v44, %v6645_v23  ;;  %v2584_v5 = vmul.f32 %v6653_v41, %v2583_v0 }
 0x541   :  { %3660 = vst [vmem:[%s8156_s7 + $0x40] sm:$0xff] %v3450_v14  ;;  %v2594_v21 = vmul.f32 %v6675_v40, %v2593_v25  ;;  %v1917_v56 = vsub.f32 %v8947_v6, %v6645_v23  ;;  %v6717_v14 = vadd.f32 0.001, %v2431_v3  ;;  %v1918_v42 = vsub.f32 %v8948_v29, %v6645_v23  ;;  %v2459_v3 = vld [vmem:[%s8154_s5 + $0x38] sm:$0xff] }
 0x542   :  { %3661 = vst [vmem:[%s8156_s7 + $0x48] sm:$0xff] %v3451_v38  ;;  %2384 = vadd.xlane.f32.xlu2 %v2383_v54  ;;  %v2126_v33 = vmul.f32 %v1916_v48, %v1916_v48  ;;  %v2585_v45 = vmul.f32 0.5, %v2584_v5  ;;  %v6722_v34 = vpop.xlane.xlu0 %2339  ;;  %v1919_v54 = vsub.f32 %v6088_v11, %v6645_v23 }
 0x543   :  { %3662 = vst [vmem:[%s8156_s7 + $0x50] sm:$0xff] %v3452_v61  ;;  %v2595_v38 = vmul.f32 0.5, %v2594_v21  ;;  %v2127_v61 = vmul.f32 %v1917_v56, %v1917_v56  ;;  %4128 = vrsqrt.f32 %v6717_v14  ;;  %v2128_v25 = vmul.f32 %v1918_v42, %v1918_v42 }
 0x544   :  { %3663 = vst [vmem:[%s8156_s7 + $0x58] sm:$0xff] %v3453_v9  ;;  %v2387_v0 = vadd.f32 %v2386_v19, %v2126_v33  ;;  %v2586_v36 = vsub.f32 1.5, %v2585_v45  ;;  %v2129_v5 = vmul.f32 %v1919_v54, %v1919_v54  ;;  %v2130_v19 = vmul.f32 %v1920_v2, %v1920_v2  ;;  %v8952_v2 = vld [vmem:[#allocation17_spill] sm:$0xff] }
 0x545   :  { %3664 = vst [vmem:[%s8156_s7 + $0x60] sm:$0xff] %v3454_v16  ;;  %v2596_v49 = vsub.f32 1.5, %v2595_v38  ;;  %vm2608_vm15 = vweird.f32 %v6717_v14 }
 0x546   :  { %3665 = vst.msk [vmem:[%s8156_s7 + $0x68] sm:$0xff] %vm117_vm0, %v3455_v60  ;;  %v2388_v9 = vadd.f32 %v2387_v0, %v2127_v61  ;;  %v2587_v16 = vmul.f32 %v6653_v41, %v2586_v36  ;;  %v2391_v42 = vsel %vm117_vm0, %v2130_v19, 0.0  ;;  %v8949_v36 = vld [vmem:[#allocation197_spill] sm:$0xff] }
 0x547   :  { %v2597_v59 = vmul.f32 %v6675_v40, %v2596_v49 }
 0x548   :  { %v2389_v60 = vadd.f32 %v2388_v9, %v2128_v25  ;;  %v2591_v21 = vsel %vm2590_vm11, %v6653_v41, %v2587_v16  ;;  %v8950_v9 = vld [vmem:[#allocation15_spill] sm:$0xff]  ;;  %v8951_v25 = vld [vmem:[#allocation16_spill] sm:$0xff] }
 0x549   :  { %v6732_v48 = vpop.eup %4128  ;;  %v2601_v45 = vsel %vm2600_vm13, %v6675_v40, %v2597_v59  ;;  %v2819_v38 = vmul.f32 %v2591_v21, %v2459_v3  ;;  %v2849_v40 = vld [vmem:[%s8155_s6 + $0x38] sm:$0xff]  ;;  %v8953_v59 = vld [vmem:[#allocation207_spill] sm:$0xff]  ;;  %v8954_v3 = vld [vmem:[#allocation117_spill] sm:$0xff] }
 0x54a   :  { %v2603_v56 = vmul.f32 %v6732_v48, %v6717_v14  ;;  %v2390_v27 = vadd.f32 %v2389_v60, %v2129_v5  ;;  %v2820_v0 = vmul.f32 %v2601_v45, %v2460_v17  ;;  %v8955_v17 = vld [vmem:[#allocation106_spill] sm:$0xff]  ;;  %vm2609_vm14 = vweird.f32 %v6732_v48 }
 0x54b   :  { %v2879_v49 = vmul.f32 %v2819_v38, %v8949_v36  ;;  %vm2610_vm1 = vmor %vm2608_vm15, %vm2609_vm14  ;;  %v8959_v14 = vld [vmem:[#allocation66_spill] sm:$0xff] }
 0x54c   :  { %v2604_v61 = vmul.f32 %v6732_v48, %v2603_v56  ;;  %v2392_v41 = vadd.f32 %v2391_v42, %v2390_v27  ;;  %v2880_v60 = vmul.f32 %v2820_v0, %v8953_v59  ;;  %v2850_v56 = vld [vmem:[%s8155_s6 + $0x40] sm:$0xff] }
 0x54e   :  { %v2605_v5 = vmul.f32 0.5, %v2604_v61  ;;  %v2910_v61 = vsub.f32 %v2850_v56, %v2880_v60 }
 0x555   :  { %v2950_v33 = vpop.permute.xlu0 %2949 }
 0x556   :  { %v3103_v54 = vmul.f32 %v2950_v33, %v8950_v9  ;;  %v3104_v16 = vmul.f32 %v2950_v33, %v8951_v25  ;;  %v3105_v15 = vmul.f32 %v2950_v33, %v8952_v2  ;;  %v3106_v21 = vmul.f32 %v2950_v33, %v8954_v3  ;;  %v8957_v2 = vld [vmem:[#allocation108_spill] sm:$0xff] }
 0x557   :  { %v3107_v45 = vmul.f32 %v2950_v33, %v8955_v17  ;;  %v2909_v25 = vsub.f32 %v2849_v40, %v2879_v49  ;;  %v3109_v35 = vmul.f32 %v2950_v33, %v8957_v2  ;;  %v6792_v49 = vmul.f32 0.0012755102, %v6471_v20 }
 0x559   :  { %2969 = vperm.xlu1 %4097, %v2819_v38   ;;  %v1929_v20 = vsub.f32 %v8842_v50, %v6792_v49 }
 0x55a   :  { %2974 = vperm.xlu2 %4098, %v2820_v0  }
 0x55b   :  { %2393 = vadd.xlane.f32.xlu0 %v2392_v41  ;;  %v8956_v41 = vld [vmem:[#allocation107_spill] sm:$0xff] }
 0x55c   :  { %v3108_v36 = vmul.f32 %v2950_v33, %v8956_v41  ;;  %v2851_v41 = vld [vmem:[%s8155_s6 + $0x48] sm:$0xff] }
 0x55d   :  { %v3310_v19 = vpop.permute.xlu0 %3309 }
 0x55e   :  { %v3463_v27 = vadd.f32 %v3310_v19, %v3103_v54  ;;  %v3464_v38 = vadd.f32 %v3310_v19, %v3104_v16  ;;  %v3465_v42 = vadd.f32 %v3310_v19, %v3105_v15  ;;  %v3466_v9 = vadd.f32 %v3310_v19, %v3106_v21  ;;  %v2461_v16 = vld [vmem:[%s8154_s5 + $0x48] sm:$0xff] }
 0x55f   :  { %v3467_v0 = vadd.f32 %v3310_v19, %v3107_v45  ;;  %v3468_v59 = vadd.f32 %v3310_v19, %v3108_v36  ;;  %v2606_v54 = vsub.f32 1.5, %v2605_v5  ;;  %v3469_v15 = vadd.f32 %v3310_v19, %v3109_v35  ;;  %v8958_v5 = vld [vmem:[#allocation38_spill] sm:$0xff]  ;;  %v8961_v36 = vld [vmem:[#allocation93_spill] sm:$0xff] }
 0x560   :  { %3673 = vst [vmem:[%s8156_s7 + $0xa8] sm:$0xff] %v3463_v27  ;;  %v6789_v35 = vmul.f32 0.0012755102, %v6432_v1  ;;  %v1928_v1 = vsub.f32 %v8841_v53, %v6792_v49  ;;  %v2432_v27 = vmul.f32 0.0012755102, %v6492_v58  ;;  %v8962_v58 = vld [vmem:[#allocation215_spill] sm:$0xff] }
 0x561   :  { %3674 = vst [vmem:[%s8156_s7 + $0xb0] sm:$0xff] %v3464_v38  ;;  %3329 = vperm.xlu1 %4097, %v2909_v25   ;;  %v2607_v33 = vmul.f32 %v6732_v48, %v2606_v54  ;;  %v8960_v38 = vld [vmem:[#allocation206_spill] sm:$0xff]  ;;  %v1930_v25 = vsub.f32 %v8844_v47, %v6792_v49 }
 0x562   :  { %3675 = vst [vmem:[%s8156_s7 + $0xb8] sm:$0xff] %v3465_v42  ;;  %3334 = vperm.xlu2 %4098, %v2910_v61   ;;  %v1921_v3 = vsub.f32 %v8958_v5, %v6789_v35  ;;  %v1922_v21 = vsub.f32 %v8959_v14, %v6789_v35  ;;  %v2138_v45 = vmul.f32 %v1928_v1, %v1928_v1  ;;  %v2433_v1 = vmul.f32 0.0012755102, %v6451_v4 }
 0x563   :  { %3676 = vst [vmem:[%s8156_s7 + $0xc0] sm:$0xff] %v3466_v9  ;;  %v2611_v40 = vsel %vm2610_vm1, %v6732_v48, %v2607_v33  ;;  %v2139_v48 = vmul.f32 %v1929_v20, %v1929_v20  ;;  %v1923_v9 = vsub.f32 %v8961_v36, %v6789_v35 }
 0x564   :  { %3677 = vst [vmem:[%s8156_s7 + $0xc8] sm:$0xff] %v3467_v0  ;;  %v2821_v19 = vmul.f32 %v2611_v40, %v2461_v16  ;;  %v2131_v56 = vmul.f32 %v1921_v3, %v1921_v3  ;;  %v2132_v17 = vmul.f32 %v1922_v21, %v1922_v21  ;;  %v1931_v16 = vsub.f32 %v6155_v13, %v6792_v49  ;;  %v8963_v3 = vld [vmem:[#allocation212_spill] sm:$0xff]  ;;  %v8969_v13 = vld [vmem:[#allocation125_spill] sm:$0xff] }
 0x565   :  { %3678 = vst [vmem:[%s8156_s7 + $0xd0] sm:$0xff] %v3468_v59  ;;  %v2404_v61 = vadd.f32 %v2139_v48, %v2138_v45  ;;  %v6817_v59 = vadd.f32 0.001, %v2432_v27  ;;  %v2133_v33 = vmul.f32 %v1923_v9, %v1923_v9  ;;  %v2140_v40 = vmul.f32 %v1930_v25, %v1930_v25  ;;  %v8964_v45 = vld [vmem:[#allocation214_spill] sm:$0xff]  ;;  %v8965_v27 = vld [vmem:[#allocation213_spill] sm:$0xff] }
 0x566   :  { %3679 = vst.msk [vmem:[%s8156_s7 + $0xd8] sm:$0xff] %vm117_vm0, %v3469_v15  ;;  %v2881_v42 = vmul.f32 %v2821_v19, %v8960_v38  ;;  %v2395_v0 = vadd.f32 %v2132_v17, %v2131_v56  ;;  %v1924_v15 = vsub.f32 %v8962_v58, %v6789_v35  ;;  %v1925_v21 = vsub.f32 %v8963_v3, %v6789_v35  ;;  %v8966_v9 = vld [vmem:[#allocation21_spill] sm:$0xff] }
 0x567   :  { %v2405_v56 = vadd.f32 %v2404_v61, %v2140_v40  ;;  %4130 = vrsqrt.f32 %v6817_v59  ;;  %v6830_v17 = vmul.f32 0.0012755102, %v6504_v7  ;;  %v1926_v48 = vsub.f32 %v8964_v45, %v6789_v35 }
 0x568   :  { %v2911_v54 = vsub.f32 %v2851_v41, %v2881_v42  ;;  %v6826_v20 = vpop.xlane.xlu1 %2348  ;;  %v1927_v38 = vsub.f32 %v8965_v27, %v6789_v35  ;;  %v2134_v42 = vmul.f32 %v1924_v15, %v1924_v15  ;;  %v1932_v41 = vsub.f32 %v6153_v12, %v6792_v49  ;;  %v8970_v27 = vld [vmem:[#allocation114_spill] sm:$0xff] }
 0x569   :  { %v2141_v4 = vmul.f32 %v1931_v16, %v1931_v16  ;;  %v2135_v40 = vmul.f32 %v1925_v21, %v1925_v21  ;;  %v6841_v7 = vadd.f32 0.001, %v2433_v1  ;;  %v8971_v16 = vld [vmem:[#allocation115_spill] sm:$0xff]  ;;  %v8972_v1 = vld [vmem:[#allocation116_spill] sm:$0xff]  ;;  %vm2618_vm4 = vweird.f32 %v6817_v59 }
 0x56b   :  { %v2406_v45 = vadd.f32 %v2405_v56, %v2141_v4  ;;  %4132 = vrsqrt.f32 %v6841_v7  ;;  %vm2628_vm6 = vweird.f32 %v6841_v7 }
 0x56c   :  { %v6798_v60 = vpop.xlane.xlu2 %2357 }
 0x56d   :  { %v6848_v21 = vpop.eup %4130 }
 0x56e   :  { %vm2619_vm2 = vweird.f32 %v6848_v21 }
 0x56f   :  { %2979 = vperm.xlu0 %4099, %v2821_v19   ;;  %v2396_v19 = vadd.f32 %v2395_v0, %v2133_v33  ;;  %v8967_v0 = vld [vmem:[#allocation23_spill] sm:$0xff]  ;;  %vm6974_vm5 = vmor %vm2618_vm4, %vm2619_vm2 }
 0x571   :  { %v2397_v53 = vadd.f32 %v2396_v19, %v2134_v42  ;;  %v1934_v19 = vsub.f32 %v6157_v43, %v6792_v49 }
 0x574   :  { %v2960_v2 = vpop.permute.xlu2 %2959 }
 0x575   :  { %v3117_v25 = vmul.f32 %v2960_v2, %v8966_v9  ;;  %v3118_v61 = vmul.f32 %v2960_v2, %v8967_v0  ;;  %v3120_v47 = vmul.f32 %v2960_v2, %v8969_v13  ;;  %v3121_v15 = vmul.f32 %v2960_v2, %v8970_v27 }
 0x576   :  { %v3122_v36 = vmul.f32 %v2960_v2, %v8971_v16  ;;  %v1933_v0 = vsub.f32 %v6162_v52, %v6792_v49  ;;  %v3123_v14 = vmul.f32 %v2960_v2, %v8972_v1  ;;  %v2398_v27 = vadd.f32 %v2397_v53, %v2135_v40  ;;  %v8977_v1 = vld [vmem:[#allocation19_spill] sm:$0xff] }
 0x577   :  { %3339 = vperm.xlu0 %4099, %v2911_v54   ;;  %v8968_v54 = vld [vmem:[#allocation24_spill] sm:$0xff] }
 0x578   :  { %v3119_v33 = vmul.f32 %v2960_v2, %v8968_v54  ;;  %v2142_v54 = vmul.f32 %v1932_v41, %v1932_v41  ;;  %v2434_v41 = vmul.f32 0.0012755102, %v6485_v57  ;;  %v2143_v53 = vmul.f32 %v1933_v0, %v1933_v0  ;;  %v8976_v0 = vld [vmem:[#allocation18_spill] sm:$0xff] }
 0x57a   :  { %v2407_v42 = vadd.f32 %v2406_v45, %v2142_v54  ;;  %v8974_v45 = vld [vmem:[#allocation74_spill] sm:$0xff] }
 0x57b   :  { %v1936_v57 = vsub.f32 %v8974_v45, %v6830_v17  ;;  %v8982_v45 = vld [vmem:[#allocation112_spill] sm:$0xff] }
 0x57c   :  { %v3320_v50 = vpop.permute.xlu2 %3319 }
 0x57d   :  { %v3477_v3 = vadd.f32 %v3320_v50, %v3117_v25  ;;  %v3478_v58 = vadd.f32 %v3320_v50, %v3118_v61  ;;  %v3479_v12 = vadd.f32 %v3320_v50, %v3119_v33  ;;  %v3480_v9 = vadd.f32 %v3320_v50, %v3120_v47  ;;  %v8975_v33 = vld [vmem:[#allocation101_spill] sm:$0xff] }
 0x57e   :  { %v3481_v13 = vadd.f32 %v3320_v50, %v3121_v15  ;;  %v3482_v56 = vadd.f32 %v3320_v50, %v3122_v36  ;;  %v3483_v2 = vadd.f32 %v3320_v50, %v3123_v14  ;;  %v2136_v36 = vmul.f32 %v1926_v48, %v1926_v48 }
 0x57f   :  { %3687 = vst [vmem:[%s8156_s7 + $0x118] sm:$0xff] %v3477_v3  ;;  %v8973_v3 = vld [vmem:[#allocation46_spill] sm:$0xff]  ;;  %v2144_v50 = vmul.f32 %v1934_v19, %v1934_v19  ;;  %v2408_v14 = vadd.f32 %v2407_v42, %v2143_v53  ;;  %v2613_v25 = vmul.f32 %v6848_v21, %v6817_v59  ;;  %v6879_v48 = vadd.f32 0.001, %v2434_v41  ;;  %v8978_v19 = vld [vmem:[#allocation20_spill] sm:$0xff]  ;;  %v8979_v42 = vld [vmem:[#allocation121_spill] sm:$0xff] }
 0x580   :  { %3688 = vst [vmem:[%s8156_s7 + $0x120] sm:$0xff] %v3478_v58  ;;  %v2955_v47 = vpop.permute.xlu1 %2954  ;;  %v1935_v4 = vsub.f32 %v8973_v3, %v6830_v17  ;;  %v2137_v58 = vmul.f32 %v1927_v38, %v1927_v38  ;;  %v2435_v38 = vmul.f32 0.0012755102, %v6532_v22  ;;  %v1937_v40 = vsub.f32 %v8975_v33, %v6830_v17  ;;  %v8980_v53 = vld [vmem:[#allocation110_spill] sm:$0xff] }
 0x581   :  { %3689 = vst [vmem:[%s8156_s7 + $0x128] sm:$0xff] %v3479_v12  ;;  %v2399_v12 = vadd.f32 %v2398_v27, %v2136_v36  ;;  %v2146_v16 = vmul.f32 %v1936_v57, %v1936_v57  ;;  %v3110_v54 = vmul.f32 %v2955_v47, %v8976_v0  ;;  %v3112_v22 = vmul.f32 %v2955_v47, %v8978_v19 }
 0x582   :  { %3690 = vst [vmem:[%s8156_s7 + $0x130] sm:$0xff] %v3480_v9  ;;  %v2400_v61 = vsel %vm117_vm0, %v2137_v58, 0.0  ;;  %v2145_v15 = vmul.f32 %v1935_v4, %v1935_v4  ;;  %v6889_v9 = vpop.eup %4132  ;;  %v2436_v27 = vmul.f32 0.0012755102, %v6488_v31  ;;  %v3113_v41 = vmul.f32 %v2955_v47, %v8979_v42 }
 0x583   :  { %3691 = vst [vmem:[%s8156_s7 + $0x138] sm:$0xff] %v3481_v13  ;;  %v3111_v13 = vmul.f32 %v2955_v47, %v8977_v1  ;;  %v2401_v36 = vadd.f32 %v2400_v61, %v2399_v12  ;;  %v3114_v4 = vmul.f32 %v2955_v47, %v8980_v53  ;;  %v6898_v33 = vadd.f32 0.001, %v2435_v38  ;;  %v8981_v1 = vld [vmem:[#allocation111_spill] sm:$0xff]  ;;  %v8985_v53 = vld [vmem:[#allocation226_spill] sm:$0xff] }
 0x584   :  { %3692 = vst [vmem:[%s8156_s7 + $0x140] sm:$0xff] %v3482_v56  ;;  %v2409_v56 = vsel %vm117_vm0, %v2144_v50, 0.0  ;;  %v2623_v0 = vmul.f32 %v6889_v9, %v6841_v7  ;;  %v3115_v19 = vmul.f32 %v2955_v47, %v8981_v1  ;;  %v3116_v31 = vmul.f32 %v2955_v47, %v8982_v45  ;;  %v8983_v47 = vld [vmem:[#allocation223_spill] sm:$0xff]  ;;  %v2462_v7 = vld [vmem:[%s8154_s5 + $0x50] sm:$0xff] }
 0x585   :  { %3693 = vst.msk [vmem:[%s8156_s7 + $0x148] sm:$0xff] %vm117_vm0, %v3483_v2  ;;  %v2410_v58 = vadd.f32 %v2409_v56, %v2408_v14  ;;  %v2413_v12 = vadd.f32 %v2146_v16, %v2145_v15  ;;  %v2614_v14 = vmul.f32 %v6848_v21, %v2613_v25  ;;  %v6911_v61 = vadd.f32 0.001, %v2436_v27 }
 0x586   :  { %v1938_v45 = vsub.f32 %v8983_v47, %v6830_v17  ;;  %4134 = vrsqrt.f32 %v6898_v33  ;;  %v2624_v25 = vmul.f32 %v6889_v9, %v2623_v0  ;;  %v2437_v15 = vmul.f32 0.0012755102, %v6498_v26  ;;  %v8996_v47 = vld [vmem:[#allocation120_spill] sm:$0xff] }
 0x587   :  { %4136 = vrsqrt.f32 %v6879_v48  ;;  %v2439_v56 = vmul.f32 0.0012755102, %v6506_v63  ;;  %vm2629_vm3 = vweird.f32 %v6889_v9  ;;  %vm2658_vm11 = vweird.f32 %v6911_v61 }
 0x588   :  { %v3315_v2 = vpop.permute.xlu1 %3314  ;;  %4138 = vrsqrt.f32 %v6911_v61  ;;  %v6939_v27 = vpop.xlane.xlu0 %2366  ;;  %vm2630_vm7 = vmor %vm2628_vm6, %vm2629_vm3  ;;  %vm2648_vm12 = vweird.f32 %v6898_v33  ;;  %vm2638_vm14 = vweird.f32 %v6879_v48 }
 0x589   :  { %v3470_v57 = vadd.f32 %v3315_v2, %v3110_v54  ;;  %v3471_v43 = vadd.f32 %v3315_v2, %v3111_v13  ;;  %v3472_v52 = vadd.f32 %v3315_v2, %v3112_v22  ;;  %v3473_v50 = vadd.f32 %v3315_v2, %v3113_v41 }
 0x58a   :  { %v3474_v3 = vadd.f32 %v3315_v2, %v3114_v4  ;;  %v3475_v38 = vadd.f32 %v3315_v2, %v3115_v19  ;;  %v3476_v54 = vadd.f32 %v3315_v2, %v3116_v31  ;;  %v2147_v13 = vmul.f32 %v1937_v40, %v1937_v40  ;;  %v8984_v40 = vld [vmem:[#allocation224_spill] sm:$0xff] }
 0x58b   :  { %3680 = vst [vmem:[%s8156_s7 + $0xe0] sm:$0xff] %v3470_v57  ;;  %2402 = vadd.xlane.f32.xlu1 %v2401_v36  ;;  %2411 = vadd.xlane.f32.xlu2 %v2410_v58  ;;  %v1939_v16 = vsub.f32 %v8984_v40, %v6830_v17  ;;  %v2148_v22 = vmul.f32 %v1938_v45, %v1938_v45  ;;  %v6943_v2 = vadd.f32 0.001, %v2437_v15  ;;  %v2438_v58 = vmul.f32 0.0012755102, %v6567_v18  ;;  %v8986_v57 = vld [vmem:[#allocation225_spill] sm:$0xff] }
 0x58c   :  { %3681 = vst [vmem:[%s8156_s7 + $0xe8] sm:$0xff] %v3471_v43  ;;  %v2414_v43 = vadd.f32 %v2413_v12, %v2147_v13  ;;  %v6941_v42 = vpop.eup %4134  ;;  %v1940_v4 = vsub.f32 %v8985_v53, %v6830_v17  ;;  %v1941_v0 = vsub.f32 %v8986_v57, %v6830_v17  ;;  %v6952_v19 = vadd.f32 0.001, %v2439_v56  ;;  %v8991_v57 = vld [vmem:[#allocation28_spill] sm:$0xff] }
 0x58d   :  { %3682 = vst [vmem:[%s8156_s7 + $0xf0] sm:$0xff] %v3472_v52  ;;  %v2615_v52 = vmul.f32 0.5, %v2614_v14  ;;  %v6945_v36 = vpop.eup %4136  ;;  %v2149_v1 = vmul.f32 %v1939_v16, %v1939_v16  ;;  %v2643_v31 = vmul.f32 %v6941_v42, %v6898_v33  ;;  %4140 = vrsqrt.f32 %v6943_v2 }
 0x58e   :  { %3683 = vst [vmem:[%s8156_s7 + $0xf8] sm:$0xff] %v3473_v50  ;;  %v2415_v26 = vadd.f32 %v2414_v43, %v2148_v22  ;;  %v6954_v50 = vpop.eup %4138  ;;  %v2633_v18 = vmul.f32 %v6945_v36, %v6879_v48  ;;  %v6962_v14 = vadd.f32 0.001, %v2438_v58  ;;  %4142 = vrsqrt.f32 %v6952_v19  ;;  %v2465_v48 = vld [vmem:[%s8154_s5 + $0x68] sm:$0xff] }
 0x58f   :  { %3684 = vst [vmem:[%s8156_s7 + $0x100] sm:$0xff] %v3474_v3  ;;  %v2625_v3 = vmul.f32 0.5, %v2624_v25  ;;  %v2616_v41 = vsub.f32 1.5, %v2615_v52  ;;  %v2653_v13 = vmul.f32 %v6954_v50, %v6911_v61  ;;  %v2644_v43 = vmul.f32 %v6941_v42, %v2643_v31  ;;  %v2466_v61 = vld [vmem:[%s8154_s5 + $0x70] sm:$0xff] }
 0x590   :  { %3685 = vst [vmem:[%s8156_s7 + $0x108] sm:$0xff] %v3475_v38  ;;  %v2416_v12 = vadd.f32 %v2415_v26, %v2149_v1  ;;  %v2150_v38 = vmul.f32 %v1940_v4, %v1940_v4  ;;  %v2634_v22 = vmul.f32 %v6945_v36, %v2633_v18  ;;  %4144 = vrsqrt.f32 %v6962_v14  ;;  %v2463_v26 = vld [vmem:[%s8154_s5 + $0x58] sm:$0xff] }
 0x591   :  { %3686 = vst.msk [vmem:[%s8156_s7 + $0x110] sm:$0xff] %vm117_vm0, %v3476_v54  ;;  %v2626_v63 = vsub.f32 1.5, %v2625_v3  ;;  %v2151_v54 = vmul.f32 %v1941_v0, %v1941_v0  ;;  %v2617_v45 = vmul.f32 %v6848_v21, %v2616_v41  ;;  %v2654_v59 = vmul.f32 %v6954_v50, %v2653_v13  ;;  %v8990_v13 = vld [vmem:[#allocation27_spill] sm:$0xff] }
 0x592   :  { %v2417_v15 = vadd.f32 %v2416_v12, %v2150_v38  ;;  %v2645_v4 = vmul.f32 0.5, %v2644_v43  ;;  %v8989_v38 = vld [vmem:[#allocation25_spill] sm:$0xff]  ;;  %vm2639_vm8 = vweird.f32 %v6945_v36  ;;  %vm2649_vm9 = vweird.f32 %v6941_v42 }
 0x593   :  { %v2627_v25 = vmul.f32 %v6889_v9, %v2626_v63  ;;  %v2418_v3 = vsel %vm117_vm0, %v2151_v54, 0.0  ;;  %v6981_v56 = vpop.eup %4140  ;;  %v2621_v58 = vsel %vm6974_vm5, %v6848_v21, %v2617_v45  ;;  %v2635_v63 = vmul.f32 0.5, %v2634_v22  ;;  %v8992_v43 = vld [vmem:[#allocation129_spill] sm:$0xff]  ;;  %vm2650_vm15 = vmor %vm2648_vm12, %vm2649_vm9 }
 0x594   :  { %v2419_v0 = vadd.f32 %v2418_v3, %v2417_v15  ;;  %v6995_v1 = vpop.eup %4142  ;;  %v2663_v31 = vmul.f32 %v6981_v56, %v6943_v2  ;;  %v2822_v18 = vmul.f32 %v2621_v58, %v2462_v7  ;;  %v2646_v16 = vsub.f32 1.5, %v2645_v4  ;;  %v8994_v4 = vld [vmem:[#allocation119_spill] sm:$0xff]  ;;  %vm7080_vm1 = vmor %vm2638_vm14, %vm2639_vm8 }
 0x595   :  { %v2631_v41 = vsel %vm2630_vm7, %v6889_v9, %v2627_v25  ;;  %v2655_v9 = vmul.f32 0.5, %v2654_v59  ;;  %v2683_v21 = vmul.f32 %v6995_v1, %v6952_v19  ;;  %v2440_v45 = vmul.f32 0.0012755102, %v6627_v39 }
 0x596   :  { %v2823_v12 = vmul.f32 %v2631_v41, %v2463_v26  ;;  %v7006_v3 = vpop.eup %4144  ;;  %v8993_v26 = vld [vmem:[#allocation118_spill] sm:$0xff]  ;;  %vm2659_vm10 = vweird.f32 %v6954_v50  ;;  %vm2669_vm2 = vweird.f32 %v6981_v56  ;;  %vm2689_vm3 = vweird.f32 %v6995_v1 }
 0x597   :  { %v2656_v39 = vsub.f32 1.5, %v2655_v9  ;;  %vm7065_vm13 = vmor %vm2658_vm11, %vm2659_vm10  ;;  %vm2668_vm4 = vweird.f32 %v6943_v2  ;;  %vm2688_vm6 = vweird.f32 %v6952_v19  ;;  %v9004_v2 = vld [vmem:[#allocation221_spill] sm:$0xff]  ;;  %vm2679_vm7 = vweird.f32 %v7006_v3  ;;  %v2855_v19 = vld [vmem:[%s8155_s6 + $0x68] sm:$0xff] }
 0x598   :  { %vm7116_vm5 = vmor %vm2668_vm4, %vm2669_vm2  ;;  %vm2678_vm9 = vweird.f32 %v6962_v14 }
 0x599   :  { %vm7129_vm8 = vmor %vm2688_vm6, %vm2689_vm3 }
 0x59a   :  { %vm7167_vm10 = vmor %vm2678_vm9, %vm2679_vm7 }
 0x59b   :  { %v2965_v52 = vpop.permute.xlu0 %2964 }
 0x59c   :  { %v3124_v54 = vmul.f32 %v2965_v52, %v8989_v38  ;;  %v3125_v25 = vmul.f32 %v2965_v52, %v8990_v13  ;;  %v3126_v53 = vmul.f32 %v2965_v52, %v8991_v57  ;;  %v3127_v15 = vmul.f32 %v2965_v52, %v8992_v43  ;;  %v8995_v13 = vld [vmem:[#allocation222_spill] sm:$0xff] }
 0x59d   :  { %v3128_v59 = vmul.f32 %v2965_v52, %v8993_v26  ;;  %v2664_v57 = vmul.f32 %v6981_v56, %v2663_v31  ;;  %v2883_v40 = vmul.f32 %v2823_v12, %v8995_v13  ;;  %v3130_v43 = vmul.f32 %v2965_v52, %v8996_v47  ;;  %v2852_v47 = vld [vmem:[%s8155_s6 + $0x50] sm:$0xff] }
 0x59e   :  { %v2673_v31 = vmul.f32 %v7006_v3, %v6962_v14  ;;  %v2684_v26 = vmul.f32 %v6995_v1, %v2683_v21  ;;  %v2468_v14 = vld [vmem:[%s8154_s5 + $0x80] sm:$0xff] }
 0x5a0   :  { %v2674_v21 = vmul.f32 %v7006_v3, %v2673_v31 }
 0x5a1   :  { %2420 = vadd.xlane.f32.xlu0 %v2419_v0  ;;  %v3129_v0 = vmul.f32 %v2965_v52, %v8994_v4  ;;  %v2636_v52 = vsub.f32 1.5, %v2635_v63  ;;  %v2657_v63 = vmul.f32 %v6954_v50, %v2656_v39 }
 0x5a2   :  { %v2675_v4 = vmul.f32 0.5, %v2674_v21 }
 0x5a3   :  { %v3325_v22 = vpop.permute.xlu0 %3324  ;;  %2989 = vperm.xlu2 %4098, %v2823_v12   ;;  %v2441_v12 = vmul.f32 0.0012755102, %v6597_v24 }
 0x5a4   :  { %v3484_v41 = vadd.f32 %v3325_v22, %v3124_v54  ;;  %v3485_v7 = vadd.f32 %v3325_v22, %v3125_v25  ;;  %v3486_v58 = vadd.f32 %v3325_v22, %v3126_v53  ;;  %2984 = vperm.xlu1 %4097, %v2822_v18   ;;  %v3487_v38 = vadd.f32 %v3325_v22, %v3127_v15  ;;  %v2853_v53 = vld [vmem:[%s8155_s6 + $0x58] sm:$0xff] }
 0x5a5   :  { %v3488_v5 = vadd.f32 %v3325_v22, %v3128_v59  ;;  %v8997_v54 = vld [vmem:[#allocation210_spill] sm:$0xff]  ;;  %v7022_v15 = vadd.f32 0.001, %v2440_v45  ;;  %v3489_v9 = vadd.f32 %v3325_v22, %v3129_v0  ;;  %v3490_v59 = vadd.f32 %v3325_v22, %v3130_v43 }
 0x5a6   :  { %3694 = vst [vmem:[%s8156_s7 + $0x150] sm:$0xff] %v3484_v41  ;;  %v2882_v25 = vmul.f32 %v2822_v18, %v8997_v54  ;;  %v2442_v18 = vmul.f32 0.0012755102, %v6722_v34  ;;  %v2913_v24 = vsub.f32 %v2853_v53, %v2883_v40  ;;  %v2665_v45 = vmul.f32 0.5, %v2664_v57 }
 0x5a7   :  { %3695 = vst [vmem:[%s8156_s7 + $0x158] sm:$0xff] %v3485_v7  ;;  %4146 = vrsqrt.f32 %v7022_v15  ;;  %v7048_v22 = vadd.f32 0.001, %v2441_v12  ;;  %v2647_v40 = vmul.f32 %v6941_v42, %v2646_v16  ;;  %v2637_v41 = vmul.f32 %v6945_v36, %v2636_v52 }
 0x5a8   :  { %3696 = vst [vmem:[%s8156_s7 + $0x160] sm:$0xff] %v3486_v58  ;;  %v2912_v34 = vsub.f32 %v2852_v47, %v2882_v25  ;;  %v7056_v7 = vadd.f32 0.001, %v2442_v18  ;;  %v2661_v16 = vsel %vm7065_vm13, %v6954_v50, %v2657_v63  ;;  %v2666_v57 = vsub.f32 1.5, %v2665_v45  ;;  %v2464_v50 = vld [vmem:[%s8154_s5 + $0x60] sm:$0xff]  ;;  %v9007_v45 = vld [vmem:[#allocation216_spill] sm:$0xff] }
 0x5a9   :  { %3697 = vst [vmem:[%s8156_s7 + $0x168] sm:$0xff] %v3487_v38  ;;  %4148 = vrsqrt.f32 %v7048_v22  ;;  %v2651_v0 = vsel %vm2650_vm15, %v6941_v42, %v2647_v40  ;;  %v2641_v13 = vsel %vm7080_vm1, %v6945_v36, %v2637_v41  ;;  %v2826_v43 = vmul.f32 %v2661_v16, %v2466_v61  ;;  %v2854_v41 = vld [vmem:[%s8155_s6 + $0x60] sm:$0xff] }
 0x5aa   :  { %3698 = vst [vmem:[%s8156_s7 + $0x170] sm:$0xff] %v3488_v5  ;;  %v2685_v5 = vmul.f32 0.5, %v2684_v26  ;;  %4150 = vrsqrt.f32 %v7056_v7  ;;  %v2825_v53 = vmul.f32 %v2651_v0, %v2465_v48  ;;  %v2667_v54 = vmul.f32 %v6981_v56, %v2666_v57 }
 0x5ab   :  { %3699 = vst [vmem:[%s8156_s7 + $0x178] sm:$0xff] %v3489_v9  ;;  %3349 = vperm.xlu2 %4098, %v2913_v24   ;;  %v2676_v42 = vsub.f32 1.5, %v2675_v4  ;;  %v2824_v25 = vmul.f32 %v2641_v13, %v2464_v50  ;;  %v2443_v12 = vmul.f32 0.0012755102, %v6826_v20  ;;  %v2444_v47 = vmul.f32 0.0012755102, %v6798_v60 }
 0x5ac   :  { %3700 = vst.msk [vmem:[%s8156_s7 + $0x180] sm:$0xff] %vm117_vm0, %v3490_v59  ;;  %3344 = vperm.xlu1 %4097, %v2912_v34   ;;  %v2686_v38 = vsub.f32 1.5, %v2685_v5  ;;  %v2886_v26 = vmul.f32 %v2826_v43, %v6233_v55  ;;  %v2445_v59 = vmul.f32 0.0012755102, %v6939_v27  ;;  %v2856_v60 = vld [vmem:[%s8155_s6 + $0x70] sm:$0xff]  ;;  %v2885_v24 = vmul.f32 %v2825_v53, %v9004_v2  ;;  %v2467_v34 = vld [vmem:[%s8154_s5 + $0x78] sm:$0xff] }
 0x5ad   :  { %v7096_v39 = vpop.eup %4146  ;;  %v2884_v27 = vmul.f32 %v2824_v25, %v9007_v45  ;;  %v2671_v63 = vsel %vm7116_vm5, %v6981_v56, %v2667_v54  ;;  %v7144_v40 = vadd.f32 0.001, %v2443_v12  ;;  %v2469_v5 = vld [vmem:[%s8154_s5 + $0x88] sm:$0xff]  ;;  %v2677_v61 = vmul.f32 %v7006_v3, %v2676_v42  ;;  %v9010_v45 = vld [vmem:[#allocation33_spill] sm:$0xff] }
 0x5ae   :  { %v2693_v31 = vmul.f32 %v7096_v39, %v7022_v15  ;;  %v2687_v36 = vmul.f32 %v6995_v1, %v2686_v38  ;;  %v7160_v33 = vadd.f32 0.001, %v2444_v47  ;;  %v2916_v57 = vsub.f32 %v2856_v60, %v2886_v26  ;;  %v2859_v47 = vld [vmem:[%s8155_s6 + $0x88] sm:$0xff] }
 0x5af   :  { %v7105_v9 = vpop.eup %4148  ;;  %v7163_v4 = vadd.f32 0.001, %v2445_v59  ;;  %v2915_v48 = vsub.f32 %v2855_v19, %v2885_v24  ;;  %v2827_v0 = vmul.f32 %v2671_v63, %v2467_v34  ;;  %v2914_v38 = vsub.f32 %v2854_v41, %v2884_v27  ;;  %v9011_v34 = vld [vmem:[#allocation35_spill] sm:$0xff] }
 0x5b0   :  { %v7112_v18 = vpop.eup %4150  ;;  %v2694_v21 = vmul.f32 %v7096_v39, %v2693_v31  ;;  %v2691_v58 = vsel %vm7129_vm8, %v6995_v1, %v2687_v36  ;;  %v2703_v56 = vmul.f32 %v7105_v9, %v7048_v22  ;;  %4152 = vrsqrt.f32 %v7144_v40 }
 0x5b1   :  { %v2713_v16 = vmul.f32 %v7112_v18, %v7056_v7  ;;  %v2829_v50 = vmul.f32 %v2691_v58, %v2469_v5  ;;  %4154 = vrsqrt.f32 %v7160_v33  ;;  %vm2698_vm11 = vweird.f32 %v7022_v15  ;;  %v2858_v15 = vld [vmem:[%s8155_s6 + $0x80] sm:$0xff] }
 0x5b2   :  { %v2695_v13 = vmul.f32 0.5, %v2694_v21  ;;  %4156 = vrsqrt.f32 %v7163_v4  ;;  %vm2699_vm12 = vweird.f32 %v7096_v39  ;;  %v9012_v21 = vld [vmem:[#allocation36_spill] sm:$0xff]  ;;  %vm2709_vm14 = vweird.f32 %v7105_v9 }
 0x5b3   :  { %3004 = vperm.xlu2 %4098, %v2826_v43   ;;  %v2681_v43 = vsel %vm7167_vm10, %v7006_v3, %v2677_v61  ;;  %v2714_v54 = vmul.f32 %v7112_v18, %v2713_v16  ;;  %v2889_v12 = vmul.f32 %v2829_v50, %v6296_v37  ;;  %v7189_v3 = vld [vmem:[%s8155_s6 + $0x78] sm:$0xff]  ;;  %v2376_v37 = vpop.xlane.xlu1 %2375  ;;  %vm7217_vm13 = vmor %vm2698_vm11, %vm2699_vm12  ;;  %vm2719_vm15 = vweird.f32 %v7112_v18 }
 0x5b4   :  { %2999 = vperm.xlu1 %4097, %v2825_v53   ;;  %v2704_v53 = vmul.f32 %v7105_v9, %v2703_v56  ;;  %v2828_v31 = vmul.f32 %v2681_v43, %v2468_v14  ;;  %v2696_v36 = vsub.f32 1.5, %v2695_v13  ;;  %v9013_v56 = vld [vmem:[#allocation137_spill] sm:$0xff]  ;;  %v9017_v43 = vld [vmem:[#allocation127_spill] sm:$0xff]  ;;  %vm2708_vm1 = vweird.f32 %v7048_v22 }
 0x5b5   :  { %2994 = vperm.xlu0 %4099, %v2824_v25   ;;  %v7109_v52 = vpop.xlane.xlu2 %2384  ;;  %v7183_v25 = vmul.f32 %v2827_v0, %v6231_v62  ;;  %v2715_v20 = vmul.f32 0.5, %v2714_v54  ;;  %v2919_v2 = vsub.f32 %v2859_v47, %v2889_v12  ;;  %v2446_v47 = vmul.f32 0.0012755102, %v2376_v37  ;;  %vm7259_vm2 = vmor %vm2708_vm1, %vm2709_vm14 }
 0x5b6   :  { %v2705_v26 = vmul.f32 0.5, %v2704_v53  ;;  %v7194_v59 = vpop.eup %4152  ;;  %v2888_v24 = vmul.f32 %v2828_v31, %v6263_v32  ;;  %v2697_v19 = vmul.f32 %v7096_v39, %v2696_v36  ;;  %vm2718_vm3 = vweird.f32 %v7056_v7  ;;  %v2471_v7 = vld [vmem:[%s8154_s5 + $0x98] sm:$0xff] }
 0x5b7   :  { %v2917_v62 = vsub.f32 %v7189_v3, %v7183_v25  ;;  %v7198_v60 = vpop.eup %4154  ;;  %v2716_v58 = vsub.f32 1.5, %v2715_v20  ;;  %v2723_v61 = vmul.f32 %v7194_v59, %v7144_v40  ;;  %v9018_v25 = vld [vmem:[#allocation128_spill] sm:$0xff]  ;;  %v2470_v20 = vld [vmem:[%s8154_s5 + $0x90] sm:$0xff]  ;;  %vm7269_vm4 = vmor %vm2718_vm3, %vm2719_vm15  ;;  %vm2729_vm5 = vweird.f32 %v7194_v59 }
 0x5b8   :  { %v7203_v55 = vpop.eup %4156  ;;  %v2706_v5 = vsub.f32 1.5, %v2705_v26  ;;  %v2733_v14 = vmul.f32 %v7198_v60, %v7160_v33  ;;  %v2701_v3 = vsel %vm7217_vm13, %v7096_v39, %v2697_v19  ;;  %vm2728_vm6 = vweird.f32 %v7144_v40  ;;  %v2861_v40 = vld [vmem:[%s8155_s6 + $0x98] sm:$0xff] }
 0x5b9   :  { %v2724_v36 = vmul.f32 %v7194_v59, %v2723_v61  ;;  %v2717_v39 = vmul.f32 %v7112_v18, %v2716_v58  ;;  %v2830_v22 = vmul.f32 %v2701_v3, %v2470_v20  ;;  %vm2739_vm7 = vweird.f32 %v7198_v60  ;;  %vm7346_vm9 = vmor %vm2728_vm6, %vm2729_vm5 }
 0x5ba   :  { %v2734_v37 = vmul.f32 %v7198_v60, %v2733_v14  ;;  %v9024_v14 = vld [vmem:[#allocation31_spill] sm:$0xff]  ;;  %vm2749_vm8 = vweird.f32 %v7203_v55  ;;  %vm2738_vm10 = vweird.f32 %v7160_v33  ;;  %vm2748_vm12 = vweird.f32 %v7163_v4  ;;  %v9044_v33 = vld [vmem:[#allocation130_spill] sm:$0xff] }
 0x5bb   :  { %3364 = vperm.xlu2 %4098, %v2916_v57   ;;  %v9014_v57 = vld [vmem:[#allocation126_spill] sm:$0xff]  ;;  %v2721_v61 = vsel %vm7269_vm4, %v7112_v18, %v2717_v39  ;;  %v9025_v18 = vld [vmem:[#allocation32_spill] sm:$0xff]  ;;  %vm7356_vm11 = vmor %vm2738_vm10, %vm2739_vm7 }
 0x5bc   :  { %3359 = vperm.xlu1 %4097, %v2915_v48   ;;  %vm7368_vm13 = vmor %vm2748_vm12, %vm2749_vm8 }
 0x5bd   :  { %3354 = vperm.xlu0 %4099, %v2914_v38   ;;  %v2975_v42 = vpop.permute.xlu2 %2974 }
 0x5be   :  { %v3138_v27 = vmul.f32 %v2975_v42, %v9010_v45  ;;  %v3139_v63 = vmul.f32 %v2975_v42, %v9011_v34  ;;  %v3140_v41 = vmul.f32 %v2975_v42, %v9012_v21  ;;  %v3141_v16 = vmul.f32 %v2975_v42, %v9013_v56 }
 0x5bf   :  { %v3142_v48 = vmul.f32 %v2975_v42, %v9014_v57  ;;  %v3143_v53 = vmul.f32 %v2975_v42, %v9017_v43  ;;  %v2447_v45 = vmul.f32 0.0012755102, %v7109_v52  ;;  %v2918_v52 = vsub.f32 %v2858_v15, %v2888_v24 }
 0x5c0   :  { %v7273_v24 = vadd.f32 0.001, %v2446_v47  ;;  %v2735_v56 = vmul.f32 0.5, %v2734_v37  ;;  %v7297_v57 = vmul.f32 %v2830_v22, %v6329_v51 }
 0x5c2   :  { %4158 = vrsqrt.f32 %v7273_v24  ;;  %vm2758_vm3 = vweird.f32 %v7273_v24 }
 0x5c3   :  { %3019 = vperm.xlu2 %4098, %v2829_v50  }
 0x5c4   :  { %3014 = vperm.xlu1 %4097, %v2828_v31   ;;  %v3144_v31 = vmul.f32 %v2975_v42, %v9018_v25  ;;  %v2707_v42 = vmul.f32 %v7105_v9, %v2706_v5  ;;  %v7284_v5 = vadd.f32 0.001, %v2447_v45  ;;  %v9026_v25 = vld [vmem:[#allocation133_spill] sm:$0xff] }
 0x5c5   :  { %3009 = vperm.xlu0 %4099, %v2827_v0   ;;  %v3335_v32 = vpop.permute.xlu2 %3334  ;;  %v2743_v0 = vmul.f32 %v7203_v55, %v7163_v4 }
 0x5c6   :  { %v3498_v1 = vadd.f32 %v3335_v32, %v3138_v27  ;;  %v3499_v38 = vadd.f32 %v3335_v32, %v3139_v63  ;;  %v3500_v50 = vadd.f32 %v3335_v32, %v3140_v41  ;;  %v3501_v54 = vadd.f32 %v3335_v32, %v3141_v16 }
 0x5c7   :  { %v3502_v12 = vadd.f32 %v3335_v32, %v3142_v48  ;;  %v3503_v26 = vadd.f32 %v3335_v32, %v3143_v53  ;;  %v3504_v27 = vadd.f32 %v3335_v32, %v3144_v31  ;;  %v2744_v19 = vmul.f32 %v7203_v55, %v2743_v0 }
 0x5c8   :  { %3708 = vst [vmem:[%s8156_s7 + $0x1c0] sm:$0xff] %v3498_v1  ;;  %v2711_v41 = vsel %vm7259_vm2, %v7105_v9, %v2707_v42  ;;  %4160 = vrsqrt.f32 %v7284_v5  ;;  %v2736_v53 = vsub.f32 1.5, %v2735_v56  ;;  %v7320_v21 = vpop.eup %4158  ;;  %vm2768_vm6 = vweird.f32 %v7284_v5 }
 0x5c9   :  { %3709 = vst [vmem:[%s8156_s7 + $0x1c8] sm:$0xff] %v3499_v38  ;;  %v2745_v16 = vmul.f32 0.5, %v2744_v19  ;;  %v2831_v9 = vmul.f32 %v2711_v41, %v2471_v7  ;;  %v2862_v19 = vld [vmem:[%s8155_s6 + $0xa0] sm:$0xff]  ;;  %v2860_v7 = vld [vmem:[%s8155_s6 + $0x90] sm:$0xff]  ;;  %vm2759_vm14 = vweird.f32 %v7320_v21 }
 0x5ca   :  { %3710 = vst [vmem:[%s8156_s7 + $0x1d0] sm:$0xff] %v3500_v50  ;;  %v9023_v50 = vld [vmem:[#allocation29_spill] sm:$0xff]  ;;  %vm7446_vm5 = vmor %vm2758_vm3, %vm2759_vm14 }
 0x5cb   :  { %3711 = vst [vmem:[%s8156_s7 + $0x1d8] sm:$0xff] %v3501_v54  ;;  %v2970_v34 = vpop.permute.xlu1 %2969  ;;  %3379 = vperm.xlu2 %4098, %v2919_v2   ;;  %v2725_v2 = vmul.f32 0.5, %v2724_v36  ;;  %v2746_v54 = vsub.f32 1.5, %v2745_v16 }
 0x5cc   :  { %3712 = vst [vmem:[%s8156_s7 + $0x1e0] sm:$0xff] %v3502_v12  ;;  %3374 = vperm.xlu1 %4097, %v2918_v52   ;;  %v3131_v13 = vmul.f32 %v2970_v34, %v9023_v50  ;;  %v3132_v0 = vmul.f32 %v2970_v34, %v9024_v14  ;;  %v3133_v43 = vmul.f32 %v2970_v34, %v9025_v18  ;;  %v9027_v12 = vld [vmem:[#allocation122_spill] sm:$0xff]  ;;  %v9030_v52 = vld [vmem:[#allocation227_spill] sm:$0xff] }
 0x5cd   :  { %3713 = vst [vmem:[%s8156_s7 + $0x1e8] sm:$0xff] %v3503_v26  ;;  %3369 = vperm.xlu0 %4099, %v2917_v62   ;;  %v2472_v62 = vld [vmem:[%s8154_s5 + $0xa0] sm:$0xff]  ;;  %v2726_v48 = vsub.f32 1.5, %v2725_v2  ;;  %v3134_v31 = vmul.f32 %v2970_v34, %v9026_v25  ;;  %v3135_v15 = vmul.f32 %v2970_v34, %v9027_v12  ;;  %v2891_v63 = vmul.f32 %v2831_v9, %v9030_v52  ;;  %v2475_v50 = vld [vmem:[%s8154_s5 + $0xb8] sm:$0xff] }
 0x5ce   :  { %3714 = vst.msk [vmem:[%s8156_s7 + $0x1f0] sm:$0xff] %vm117_vm0, %v3504_v27  ;;  %v2394_v58 = vpop.xlane.xlu0 %2393  ;;  %v2832_v38 = vmul.f32 %v2721_v61, %v2472_v62  ;;  %v9028_v26 = vld [vmem:[#allocation123_spill] sm:$0xff]  ;;  %v9029_v27 = vld [vmem:[#allocation124_spill] sm:$0xff]  ;;  %v2747_v41 = vmul.f32 %v7203_v55, %v2746_v54 }
 0x5cf   :  { %v2448_v32 = vmul.f32 0.0012755102, %v2394_v58  ;;  %v3136_v42 = vmul.f32 %v2970_v34, %v9028_v26  ;;  %v3137_v39 = vmul.f32 %v2970_v34, %v9029_v27  ;;  %v7328_v34 = vpop.eup %4160  ;;  %v2737_v58 = vmul.f32 %v7198_v60, %v2736_v53  ;;  %v2863_v27 = vld [vmem:[%s8155_s6 + $0xa8] sm:$0xff] }
 0x5d0   :  { %v2892_v45 = vmul.f32 %v2832_v38, %v6373_v8  ;;  %v2921_v4 = vsub.f32 %v2861_v40, %v2891_v63  ;;  %v9041_v40 = vld [vmem:[#allocation39_spill] sm:$0xff]  ;;  %vm2769_vm1 = vweird.f32 %v7328_v34 }
 0x5d1   :  { %v7300_v1 = vadd.f32 0.001, %v2448_v32  ;;  %v2741_v14 = vsel %vm7356_vm11, %v7198_v60, %v2737_v58  ;;  %vm2770_vm7 = vmor %vm2768_vm6, %vm2769_vm1 }
 0x5d2   :  { %v2922_v56 = vsub.f32 %v2862_v19, %v2892_v45  ;;  %v2864_v45 = vld [vmem:[%s8155_s6 + $0xb0] sm:$0xff] }
 0x5d3   :  { %4162 = vrsqrt.f32 %v7300_v1  ;;  %v3330_v51 = vpop.permute.xlu1 %3329  ;;  %3034 = vperm.xlu2 %4098, %v2832_v38   ;;  %v2763_v38 = vmul.f32 %v7328_v34, %v7284_v5  ;;  %vm2778_vm2 = vweird.f32 %v7300_v1  ;;  %v2477_v5 = vld [vmem:[%s8154_s5 + $0xc8] sm:$0xff] }
 0x5d4   :  { %v3491_v3 = vadd.f32 %v3330_v51, %v3131_v13  ;;  %v3492_v36 = vadd.f32 %v3330_v51, %v3132_v0  ;;  %v3493_v47 = vadd.f32 %v3330_v51, %v3133_v43  ;;  %v3494_v20 = vadd.f32 %v3330_v51, %v3134_v31  ;;  %3029 = vperm.xlu1 %4097, %v2831_v9   ;;  %v2473_v0 = vld [vmem:[%s8154_s5 + $0xa8] sm:$0xff] }
 0x5d5   :  { %3024 = vperm.xlu0 %4099, %v2830_v22   ;;  %v3495_v37 = vadd.f32 %v3330_v51, %v3135_v15  ;;  %v2727_v22 = vmul.f32 %v7194_v59, %v2726_v48  ;;  %v3496_v8 = vadd.f32 %v3330_v51, %v3136_v42  ;;  %v3497_v2 = vadd.f32 %v3330_v51, %v3137_v39  ;;  %v9037_v15 = vld [vmem:[#allocation175_spill] sm:$0xff] }
 0x5d6   :  { %3701 = vst [vmem:[%s8156_s7 + $0x188] sm:$0xff] %v3491_v3  ;;  %v2753_v9 = vmul.f32 %v7320_v21, %v7273_v24  ;;  %v2920_v48 = vsub.f32 %v2860_v7, %v7297_v57  ;;  %v2751_v13 = vsel %vm7368_vm13, %v7203_v55, %v2747_v41  ;;  %v2474_v57 = vld [vmem:[%s8154_s5 + $0xb0] sm:$0xff]  ;;  %v2764_v31 = vmul.f32 %v7328_v34, %v2763_v38  ;;  %v9042_v41 = vld [vmem:[#allocation40_spill] sm:$0xff] }
 0x5d7   :  { %3702 = vst [vmem:[%s8156_s7 + $0x190] sm:$0xff] %v3492_v36  ;;  %v2731_v18 = vsel %vm7346_vm9, %v7194_v59, %v2727_v22  ;;  %v2835_v53 = vmul.f32 %v2751_v13, %v2475_v50  ;;  %v2834_v54 = vmul.f32 %v2741_v14, %v2474_v57  ;;  %v9038_v36 = vld [vmem:[#allocation170_spill] sm:$0xff]  ;;  %v9045_v13 = vld [vmem:[#allocation131_spill] sm:$0xff] }
 0x5d8   :  { %3703 = vst [vmem:[%s8156_s7 + $0x198] sm:$0xff] %v3493_v47  ;;  %v2754_v55 = vmul.f32 %v7320_v21, %v2753_v9  ;;  %v2833_v25 = vmul.f32 %v2731_v18, %v2473_v0  ;;  %v9039_v59 = vld [vmem:[#allocation166_spill] sm:$0xff]  ;;  %v2765_v42 = vmul.f32 0.5, %v2764_v31  ;;  %v9046_v18 = vld [vmem:[#allocation132_spill] sm:$0xff] }
 0x5d9   :  { %v7342_v62 = vpop.eup %4162  ;;  %3704 = vst [vmem:[%s8156_s7 + $0x1a0] sm:$0xff] %v3494_v20  ;;  %v2895_v3 = vmul.f32 %v2835_v53, %v9037_v15  ;;  %v2894_v47 = vmul.f32 %v2834_v54, %v9038_v36  ;;  %v2865_v20 = vld [vmem:[%s8155_s6 + $0xb8] sm:$0xff] }
 0x5da   :  { %v2773_v32 = vmul.f32 %v7342_v62, %v7300_v1  ;;  %3705 = vst [vmem:[%s8156_s7 + $0x1a8] sm:$0xff] %v3495_v37  ;;  %v2755_v12 = vmul.f32 0.5, %v2754_v55  ;;  %v2893_v26 = vmul.f32 %v2833_v25, %v9039_v59  ;;  %v2766_v22 = vsub.f32 1.5, %v2765_v42  ;;  %v2866_v42 = vld [vmem:[%s8155_s6 + $0xc0] sm:$0xff] }
 0x5db   :  { %3706 = vst [vmem:[%s8156_s7 + $0x1b0] sm:$0xff] %v3496_v8  ;;  %3394 = vperm.xlu2 %4098, %v2922_v56   ;;  %v2925_v19 = vsub.f32 %v2865_v20, %v2895_v3  ;;  %v2924_v52 = vsub.f32 %v2864_v45, %v2894_v47  ;;  %v9040_v8 = vld [vmem:[#allocation37_spill] sm:$0xff]  ;;  %vm2779_vm15 = vweird.f32 %v7342_v62  ;;  %v9051_v47 = vld [vmem:[#allocation180_spill] sm:$0xff] }
 0x5dc   :  { %3707 = vst.msk [vmem:[%s8156_s7 + $0x1b8] sm:$0xff] %vm117_vm0, %v3497_v2  ;;  %v2774_v43 = vmul.f32 %v7342_v62, %v2773_v32  ;;  %3389 = vperm.xlu1 %4097, %v2921_v4   ;;  %v2756_v37 = vsub.f32 1.5, %v2755_v12  ;;  %v2923_v63 = vsub.f32 %v2863_v27, %v2893_v26  ;;  %v9043_v56 = vld [vmem:[#allocation141_spill] sm:$0xff]  ;;  %v2767_v0 = vmul.f32 %v7328_v34, %v2766_v22  ;;  %vm7437_vm4 = vmor %vm2778_vm2, %vm2779_vm15  ;;  %v2867_v26 = vld [vmem:[%s8155_s6 + $0xc8] sm:$0xff] }
 0x5dd   :  { %3384 = vperm.xlu0 %4099, %v2920_v48  }
 0x5de   :  { %v2775_v60 = vmul.f32 0.5, %v2774_v43  ;;  %v2757_v50 = vmul.f32 %v7320_v21, %v2756_v37 }
 0x5e0   :  { %v2776_v39 = vsub.f32 1.5, %v2775_v60  ;;  %v2771_v60 = vsel %vm2770_vm7, %v7328_v34, %v2767_v0 }
 0x5e1   :  { %v2980_v51 = vpop.permute.xlu0 %2979  ;;  %v2837_v34 = vmul.f32 %v2771_v60, %v2477_v5 }
 0x5e2   :  { %v3145_v2 = vmul.f32 %v2980_v51, %v9040_v8  ;;  %v3146_v7 = vmul.f32 %v2980_v51, %v9041_v40  ;;  %v3147_v58 = vmul.f32 %v2980_v51, %v9042_v41  ;;  %v2777_v61 = vmul.f32 %v7342_v62, %v2776_v39 }
 0x5e3   :  { %3049 = vperm.xlu2 %4098, %v2835_v53   ;;  %v3148_v16 = vmul.f32 %v2980_v51, %v9043_v56  ;;  %v3149_v9 = vmul.f32 %v2980_v51, %v9044_v33  ;;  %v3150_v57 = vmul.f32 %v2980_v51, %v9045_v13  ;;  %v3151_v43 = vmul.f32 %v2980_v51, %v9046_v18  ;;  %v9053_v56 = vld [vmem:[#allocation47_spill] sm:$0xff] }
 0x5e4   :  { %3044 = vperm.xlu1 %4097, %v2834_v54   ;;  %v2781_v31 = vsel %vm7437_vm4, %v7342_v62, %v2777_v61  ;;  %v2476_v62 = vld [vmem:[%s8154_s5 + $0xc0] sm:$0xff]  ;;  %v2761_v51 = vsel %vm7446_vm5, %v7320_v21, %v2757_v50  ;;  %v2868_v21 = vld [vmem:[%s8155_s6 + $0xd0] sm:$0xff]  ;;  %v2897_v36 = vmul.f32 %v2837_v34, %v6574_v30 }
 0x5e5   :  { %3039 = vperm.xlu0 %4099, %v2833_v25   ;;  %v2478_v25 = vld [vmem:[%s8154_s5 + $0xd0] sm:$0xff]  ;;  %v2836_v15 = vmul.f32 %v2761_v51, %v2476_v62  ;;  %v2479_v62 = vld [vmem:[%s8154_s5 + $0xd8] sm:$0xff] }
 0x5e6   :  { %v2838_v12 = vmul.f32 %v2781_v31, %v2478_v25  ;;  %v2927_v45 = vsub.f32 %v2867_v26, %v2897_v36 }
 0x5e7   :  { %v2896_v59 = vmul.f32 %v2836_v15, %v9051_v47 }
 0x5e8   :  { %v2898_v3 = vmul.f32 %v2838_v12, %v6645_v23 }
 0x5e9   :  { %v3340_v32 = vpop.permute.xlu0 %3339  ;;  %v2926_v23 = vsub.f32 %v2866_v42, %v2896_v59 }
 0x5ea   :  { %v3505_v4 = vadd.f32 %v3340_v32, %v3145_v2  ;;  %v3506_v48 = vadd.f32 %v3340_v32, %v3146_v7  ;;  %v3507_v38 = vadd.f32 %v3340_v32, %v3147_v58  ;;  %v3508_v14 = vadd.f32 %v3340_v32, %v3148_v16  ;;  %v9052_v58 = vld [vmem:[#allocation45_spill] sm:$0xff] }
 0x5eb   :  { %3409 = vperm.xlu2 %4098, %v2925_v19   ;;  %v3509_v55 = vadd.f32 %v3340_v32, %v3149_v9  ;;  %v3510_v54 = vadd.f32 %v3340_v32, %v3150_v57  ;;  %v3511_v24 = vadd.f32 %v3340_v32, %v3151_v43  ;;  %v2928_v20 = vsub.f32 %v2868_v21, %v2898_v3  ;;  %v9054_v32 = vld [vmem:[#allocation48_spill] sm:$0xff] }
 0x5ec   :  { %3715 = vst [vmem:[%s8156_s7 + $0x1f8] sm:$0xff] %v3505_v4  ;;  %3404 = vperm.xlu1 %4097, %v2924_v52   ;;  %v9055_v4 = vld [vmem:[#allocation148_spill] sm:$0xff] }
 0x5ed   :  { %3716 = vst [vmem:[%s8156_s7 + $0x200] sm:$0xff] %v3506_v48  ;;  %3399 = vperm.xlu0 %4099, %v2923_v63  }
 0x5ee   :  { %3717 = vst [vmem:[%s8156_s7 + $0x208] sm:$0xff] %v3507_v38  ;;  %v9056_v38 = vld [vmem:[#allocation138_spill] sm:$0xff] }
 0x5ef   :  { %3718 = vst [vmem:[%s8156_s7 + $0x210] sm:$0xff] %v3508_v14 }
 0x5f0   :  { %3719 = vst [vmem:[%s8156_s7 + $0x218] sm:$0xff] %v3509_v55  ;;  %v9057_v55 = vld [vmem:[#allocation139_spill] sm:$0xff] }
 0x5f1   :  { %3720 = vst [vmem:[%s8156_s7 + $0x220] sm:$0xff] %v3510_v54 }
 0x5f2   :  { %3721 = vst.msk [vmem:[%s8156_s7 + $0x228] sm:$0xff] %vm117_vm0, %v3511_v24  ;;  %v9058_v24 = vld [vmem:[#allocation140_spill] sm:$0xff] }
 0x5f3   :  { %3064 = vperm.xlu2 %4098, %v2838_v12  }
 0x5f4   :  { %3059 = vperm.xlu1 %4097, %v2837_v34   ;;  %v2480_v34 = vld [vmem:[%s8154_s5 + $0xe0] sm:$0xff] }
 0x5f5   :  { %3054 = vperm.xlu0 %4099, %v2836_v15  }
 0x5fb   :  { %3424 = vperm.xlu2 %4098, %v2928_v20  }
 0x5fc   :  { %3419 = vperm.xlu1 %4097, %v2927_v45   ;;  %v2869_v45 = vld [vmem:[%s8155_s6 + $0xd8] sm:$0xff] }
 0x5fd   :  { %3414 = vperm.xlu0 %4099, %v2926_v23  }
 0x5fe   :  { %v2403_v27 = vpop.xlane.xlu1 %2402  ;;  %v2412_v39 = vpop.xlane.xlu2 %2411 }
 0x5ff   :  { %v2449_v37 = vmul.f32 0.0012755102, %v2403_v27  ;;  %v2450_v30 = vmul.f32 0.0012755102, %v2412_v39  ;;  %v2870_v27 = vld [vmem:[%s8155_s6 + $0xe0] sm:$0xff] }
 0x601   :  { %v2509_v19 = vadd.f32 0.001, %v2449_v37  ;;  %v2510_v52 = vadd.f32 0.001, %v2450_v30  ;;  %v9059_v37 = vld [vmem:[#allocation41_spill] sm:$0xff] }
 0x603   :  { %4164 = vrsqrt.f32 %v2509_v19  ;;  %vm2788_vm10 = vweird.f32 %v2509_v19  ;;  %vm2798_vm12 = vweird.f32 %v2510_v52 }
 0x604   :  { %4166 = vrsqrt.f32 %v2510_v52 }
 0x606   :  { %v2990_v63 = vpop.permute.xlu2 %2989 }
 0x607   :  { %v3159_v61 = vmul.f32 %v2990_v63, %v9052_v58  ;;  %v3160_v16 = vmul.f32 %v2990_v63, %v9053_v56  ;;  %v3161_v33 = vmul.f32 %v2990_v63, %v9054_v32  ;;  %v3162_v48 = vmul.f32 %v2990_v63, %v9055_v4 }
 0x608   :  { %v3163_v50 = vmul.f32 %v2990_v63, %v9056_v38  ;;  %v3164_v53 = vmul.f32 %v2990_v63, %v9057_v55  ;;  %v3165_v25 = vmul.f32 %v2990_v63, %v9058_v24  ;;  %v9061_v63 = vld [vmem:[#allocation44_spill] sm:$0xff] }
 0x609   :  { %v4165_v22 = vpop.eup %4164  ;;  %v9065_v38 = vld [vmem:[#allocation136_spill] sm:$0xff] }
 0x60a   :  { %v4167_v8 = vpop.eup %4166  ;;  %v2783_v2 = vmul.f32 %v4165_v22, %v2509_v19  ;;  %vm2789_vm8 = vweird.f32 %v4165_v22  ;;  %v9060_v19 = vld [vmem:[#allocation43_spill] sm:$0xff] }
 0x60b   :  { %v2793_v40 = vmul.f32 %v4167_v8, %v2510_v52  ;;  %vm2799_vm9 = vweird.f32 %v4167_v8  ;;  %vm2790_vm11 = vmor %vm2788_vm10, %vm2789_vm8 }
 0x60c   :  { %v2784_v7 = vmul.f32 %v4165_v22, %v2783_v2  ;;  %vm2800_vm13 = vmor %vm2798_vm12, %vm2799_vm9  ;;  %v9062_v2 = vld [vmem:[#allocation145_spill] sm:$0xff] }
 0x60d   :  { %v2794_v41 = vmul.f32 %v4167_v8, %v2793_v40 }
 0x60e   :  { %v2785_v9 = vmul.f32 0.5, %v2784_v7  ;;  %v3350_v13 = vpop.permute.xlu2 %3349 }
 0x60f   :  { %v2795_v57 = vmul.f32 0.5, %v2794_v41  ;;  %v3519_v14 = vadd.f32 %v3350_v13, %v3159_v61  ;;  %v3520_v0 = vadd.f32 %v3350_v13, %v3160_v16  ;;  %v3521_v18 = vadd.f32 %v3350_v13, %v3161_v33 }
 0x610   :  { %v2786_v43 = vsub.f32 1.5, %v2785_v9  ;;  %v3522_v54 = vadd.f32 %v3350_v13, %v3162_v48  ;;  %v3523_v31 = vadd.f32 %v3350_v13, %v3163_v50  ;;  %v3524_v60 = vadd.f32 %v3350_v13, %v3164_v53  ;;  %v9064_v9 = vld [vmem:[#allocation135_spill] sm:$0xff] }
 0x611   :  { %v2796_v1 = vsub.f32 1.5, %v2795_v57  ;;  %3729 = vst [vmem:[%s8156_s7 + $0x268] sm:$0xff] %v3519_v14  ;;  %v3525_v12 = vadd.f32 %v3350_v13, %v3165_v25  ;;  %v9066_v14 = vld [vmem:[#allocation57_spill] sm:$0xff] }
 0x612   :  { %v2787_v5 = vmul.f32 %v4165_v22, %v2786_v43  ;;  %3730 = vst [vmem:[%s8156_s7 + $0x270] sm:$0xff] %v3520_v0  ;;  %v9067_v43 = vld [vmem:[#allocation59_spill] sm:$0xff] }
 0x613   :  { %v2797_v51 = vmul.f32 %v4167_v8, %v2796_v1  ;;  %3731 = vst [vmem:[%s8156_s7 + $0x278] sm:$0xff] %v3521_v18  ;;  %v9068_v1 = vld [vmem:[#allocation60_spill] sm:$0xff] }
 0x614   :  { %3732 = vst [vmem:[%s8156_s7 + $0x280] sm:$0xff] %v3522_v54  ;;  %v2421_v15 = vpop.xlane.xlu0 %2420  ;;  %v2791_v3 = vsel %vm2790_vm11, %v4165_v22, %v2787_v5 }
 0x615   :  { %3733 = vst [vmem:[%s8156_s7 + $0x288] sm:$0xff] %v3523_v31  ;;  %v2451_v21 = vmul.f32 0.0012755102, %v2421_v15  ;;  %v2839_v36 = vmul.f32 %v2791_v3, %v2479_v62  ;;  %v2801_v47 = vsel %vm2800_vm13, %v4167_v8, %v2797_v51  ;;  %v9069_v31 = vld [vmem:[#allocation160_spill] sm:$0xff]  ;;  %v9070_v51 = vld [vmem:[#allocation149_spill] sm:$0xff]  ;;  %v9071_v3 = vld [vmem:[#allocation150_spill] sm:$0xff] }
 0x616   :  { %3734 = vst [vmem:[%s8156_s7 + $0x290] sm:$0xff] %v3524_v60  ;;  %v2985_v59 = vpop.permute.xlu1 %2984  ;;  %v3005_v26 = vpop.permute.xlu2 %3004  ;;  %v2840_v42 = vmul.f32 %v2801_v47, %v2480_v34 }
 0x617   :  { %3735 = vst.msk [vmem:[%s8156_s7 + $0x298] sm:$0xff] %vm117_vm0, %v3525_v12  ;;  %v7533_v20 = vadd.f32 0.001, %v2451_v21  ;;  %3069 = vperm.xlu0 %4099, %v2839_v36   ;;  %v2899_v23 = vmul.f32 %v2839_v36, %v6789_v35  ;;  %v3152_v30 = vmul.f32 %v2985_v59, %v9059_v37  ;;  %v3153_v52 = vmul.f32 %v2985_v59, %v9060_v19  ;;  %v9063_v35 = vld [vmem:[#allocation134_spill] sm:$0xff] }
 0x618   :  { %3074 = vperm.xlu1 %4097, %v2840_v42   ;;  %v2900_v39 = vmul.f32 %v2840_v42, %v6792_v49  ;;  %v3154_v22 = vmul.f32 %v2985_v59, %v9061_v63  ;;  %v3155_v40 = vmul.f32 %v2985_v59, %v9062_v2  ;;  %v3156_v56 = vmul.f32 %v2985_v59, %v9063_v35 }
 0x619   :  { %4168 = vrsqrt.f32 %v7533_v20  ;;  %v2929_v8 = vsub.f32 %v2869_v45, %v2899_v23  ;;  %v3157_v4 = vmul.f32 %v2985_v59, %v9064_v9  ;;  %v3158_v50 = vmul.f32 %v2985_v59, %v9065_v38  ;;  %v9072_v45 = vld [vmem:[#allocation151_spill] sm:$0xff]  ;;  %v9079_v9 = vld [vmem:[#allocation5_spill] sm:$0xff] }
 0x61a   :  { %v2930_v58 = vsub.f32 %v2870_v27, %v2900_v39  ;;  %v3180_v0 = vmul.f32 %v3005_v26, %v9066_v14  ;;  %v3181_v55 = vmul.f32 %v3005_v26, %v9067_v43  ;;  %v3182_v24 = vmul.f32 %v3005_v26, %v9068_v1 }
 0x61b   :  { %v3183_v5 = vmul.f32 %v3005_v26, %v9069_v31  ;;  %v3184_v12 = vmul.f32 %v3005_v26, %v9070_v51  ;;  %v3185_v21 = vmul.f32 %v3005_v26, %v9071_v3  ;;  %v3186_v23 = vmul.f32 %v3005_v26, %v9072_v45  ;;  %v2481_v26 = vld [vmem:[%s8154_s5 + $0xe8] sm:$0xff]  ;;  %v9087_v45 = vld [vmem:[#allocation49_spill] sm:$0xff] }
 0x61c   :  { %vm2808_vm15 = vweird.f32 %v7533_v20 }
 0x61e   :  { %v3345_v7 = vpop.permute.xlu1 %3344  ;;  %v3365_v41 = vpop.permute.xlu2 %3364 }
 0x61f   :  { %v4169_v61 = vpop.eup %4168  ;;  %v3512_v16 = vadd.f32 %v3345_v7, %v3152_v30  ;;  %v3513_v32 = vadd.f32 %v3345_v7, %v3153_v52  ;;  %v3514_v33 = vadd.f32 %v3345_v7, %v3154_v22  ;;  %3429 = vperm.xlu0 %4099, %v2929_v8   ;;  %v3515_v48 = vadd.f32 %v3345_v7, %v3155_v40  ;;  %v9074_v52 = vld [vmem:[#allocation55_spill] sm:$0xff]  ;;  %v9075_v22 = vld [vmem:[#allocation56_spill] sm:$0xff] }
 0x620   :  { %v2803_v49 = vmul.f32 %v4169_v61, %v7533_v20  ;;  %3434 = vperm.xlu1 %4097, %v2930_v58   ;;  %v3516_v13 = vadd.f32 %v3345_v7, %v3156_v56  ;;  %v3517_v18 = vadd.f32 %v3345_v7, %v3157_v4  ;;  %v3518_v53 = vadd.f32 %v3345_v7, %v3158_v50  ;;  %v9073_v20 = vld [vmem:[#allocation53_spill] sm:$0xff]  ;;  %v9076_v40 = vld [vmem:[#allocation156_spill] sm:$0xff]  ;;  %v9077_v58 = vld [vmem:[#allocation146_spill] sm:$0xff] }
 0x621   :  { %3722 = vst [vmem:[%s8156_s7 + $0x230] sm:$0xff] %v3512_v16  ;;  %v3540_v25 = vadd.f32 %v3365_v41, %v3180_v0  ;;  %v3541_v60 = vadd.f32 %v3365_v41, %v3181_v55  ;;  %v3542_v34 = vadd.f32 %v3365_v41, %v3182_v24  ;;  %v3543_v36 = vadd.f32 %v3365_v41, %v3183_v5  ;;  %v9081_v0 = vld [vmem:[#allocation71_spill] sm:$0xff]  ;;  %v2871_v55 = vld [vmem:[%s8155_s6 + $0xe8] sm:$0xff] }
 0x622   :  { %v2804_v57 = vmul.f32 %v4169_v61, %v2803_v49  ;;  %3723 = vst [vmem:[%s8156_s7 + $0x238] sm:$0xff] %v3513_v32  ;;  %vm2809_vm14 = vweird.f32 %v4169_v61  ;;  %v3544_v27 = vadd.f32 %v3365_v41, %v3184_v12  ;;  %v3545_v39 = vadd.f32 %v3365_v41, %v3185_v21  ;;  %v9078_v32 = vld [vmem:[#allocation147_spill] sm:$0xff] }
 0x623   :  { %3724 = vst [vmem:[%s8156_s7 + $0x240] sm:$0xff] %v3514_v33  ;;  %v3546_v37 = vadd.f32 %v3365_v41, %v3186_v23  ;;  %vm2810_vm1 = vmor %vm2808_vm15, %vm2809_vm14  ;;  %v9086_v21 = vld [vmem:[#allocation163_spill] sm:$0xff] }
 0x624   :  { %v2805_v54 = vmul.f32 0.5, %v2804_v57  ;;  %3725 = vst [vmem:[%s8156_s7 + $0x248] sm:$0xff] %v3515_v48 }
 0x625   :  { %3726 = vst [vmem:[%s8156_s7 + $0x250] sm:$0xff] %v3516_v13  ;;  %v9080_v13 = vld [vmem:[#allocation69_spill] sm:$0xff] }
 0x626   :  { %v2806_v62 = vsub.f32 1.5, %v2805_v54  ;;  %3727 = vst [vmem:[%s8156_s7 + $0x258] sm:$0xff] %v3517_v18  ;;  %v3000_v15 = vpop.permute.xlu1 %2999  ;;  %v3020_v47 = vpop.permute.xlu2 %3019 }
 0x627   :  { %3728 = vst.msk [vmem:[%s8156_s7 + $0x260] sm:$0xff] %vm117_vm0, %v3518_v53  ;;  %v7580_v59 = vpop.permute.xlu0 %2994  ;;  %v3173_v19 = vmul.f32 %v3000_v15, %v9073_v20  ;;  %v3174_v63 = vmul.f32 %v3000_v15, %v9074_v52  ;;  %v3175_v8 = vmul.f32 %v3000_v15, %v9075_v22  ;;  %v3176_v7 = vmul.f32 %v3000_v15, %v9076_v40  ;;  %v9082_v53 = vld [vmem:[#allocation72_spill] sm:$0xff] }
 0x628   :  { %v2807_v42 = vmul.f32 %v4169_v61, %v2806_v62  ;;  %3750 = vst [vmem:[%s8156_s7 + $0x310] sm:$0xff] %v3540_v25  ;;  %v3178_v33 = vmul.f32 %v3000_v15, %v9078_v32  ;;  %v3179_v4 = vmul.f32 %v3000_v15, %v9079_v9  ;;  %v3201_v57 = vmul.f32 %v3020_v47, %v9080_v13  ;;  %v9083_v25 = vld [vmem:[#allocation174_spill] sm:$0xff]  ;;  %v9090_v52 = vld [vmem:[#allocation152_spill] sm:$0xff] }
 0x629   :  { %3751 = vst [vmem:[%s8156_s7 + $0x318] sm:$0xff] %v3541_v60  ;;  %v3202_v18 = vmul.f32 %v3020_v47, %v9081_v0  ;;  %v3203_v54 = vmul.f32 %v3020_v47, %v9082_v53  ;;  %v3204_v31 = vmul.f32 %v3020_v47, %v9083_v25  ;;  %v9084_v60 = vld [vmem:[#allocation161_spill] sm:$0xff]  ;;  %v3166_v23 = vmul.f32 %v7580_v59, %v9087_v45  ;;  %v9099_v53 = vld [vmem:[#allocation158_spill] sm:$0xff]  ;;  %v9100_v25 = vld [vmem:[#allocation159_spill] sm:$0xff] }
 0x62a   :  { %3752 = vst [vmem:[%s8156_s7 + $0x320] sm:$0xff] %v3542_v34  ;;  %v2811_v30 = vsel %vm2810_vm1, %v4169_v61, %v2807_v42  ;;  %v3177_v61 = vmul.f32 %v3000_v15, %v9077_v58  ;;  %v3205_v62 = vmul.f32 %v3020_v47, %v9084_v60  ;;  %v9085_v15 = vld [vmem:[#allocation162_spill] sm:$0xff] }
 0x62b   :  { %3753 = vst [vmem:[%s8156_s7 + $0x328] sm:$0xff] %v3543_v36  ;;  %v2841_v2 = vmul.f32 %v2811_v30, %v2481_v26  ;;  %v3206_v3 = vmul.f32 %v3020_v47, %v9085_v15  ;;  %v3207_v36 = vmul.f32 %v3020_v47, %v9086_v21  ;;  %v9089_v47 = vld [vmem:[#allocation52_spill] sm:$0xff]  ;;  %v9102_v15 = vld [vmem:[#allocation83_spill] sm:$0xff] }
 0x62c   :  { %3754 = vst [vmem:[%s8156_s7 + $0x330] sm:$0xff] %v3544_v27  ;;  %v3168_v30 = vmul.f32 %v7580_v59, %v9089_v47  ;;  %v9106_v47 = vld [vmem:[#allocation179_spill] sm:$0xff] }
 0x62d   :  { %3755 = vst [vmem:[%s8156_s7 + $0x338] sm:$0xff] %v3545_v39  ;;  %3079 = vperm.xlu2 %4098, %v2841_v2   ;;  %v2901_v24 = vmul.f32 %v2841_v2, %v6830_v17  ;;  %v9088_v39 = vld [vmem:[#allocation51_spill] sm:$0xff]  ;;  %v9091_v2 = vld [vmem:[#allocation142_spill] sm:$0xff] }
 0x62e   :  { %3756 = vst.msk [vmem:[%s8156_s7 + $0x340] sm:$0xff] %vm117_vm0, %v3546_v37  ;;  %v3360_v41 = vpop.permute.xlu1 %3359  ;;  %v3380_v38 = vpop.permute.xlu2 %3379  ;;  %v3167_v37 = vmul.f32 %v7580_v59, %v9088_v39  ;;  %v3170_v40 = vmul.f32 %v7580_v59, %v9091_v2  ;;  %v9105_v39 = vld [vmem:[#allocation176_spill] sm:$0xff]  ;;  %v9108_v2 = vld [vmem:[#allocation61_spill] sm:$0xff] }
 0x62f   :  { %v3533_v35 = vadd.f32 %v3360_v41, %v3173_v19  ;;  %v3534_v56 = vadd.f32 %v3360_v41, %v3174_v63  ;;  %v3535_v16 = vadd.f32 %v3360_v41, %v3175_v8  ;;  %v3536_v49 = vadd.f32 %v3360_v41, %v3176_v7  ;;  %v3355_v50 = vpop.permute.xlu0 %3354 }
 0x630   :  { %v3537_v48 = vadd.f32 %v3360_v41, %v3177_v61  ;;  %v3538_v14 = vadd.f32 %v3360_v41, %v3178_v33  ;;  %v3539_v43 = vadd.f32 %v3360_v41, %v3179_v4  ;;  %v3561_v1 = vadd.f32 %v3380_v38, %v3201_v57  ;;  %v9092_v41 = vld [vmem:[#allocation143_spill] sm:$0xff] }
 0x631   :  { %3743 = vst [vmem:[%s8156_s7 + $0x2d8] sm:$0xff] %v3533_v35  ;;  %v3562_v5 = vadd.f32 %v3380_v38, %v3202_v18  ;;  %v3563_v51 = vadd.f32 %v3380_v38, %v3203_v54  ;;  %v2931_v12 = vsub.f32 %v2871_v55, %v2901_v24  ;;  %v3564_v17 = vadd.f32 %v3380_v38, %v3204_v31  ;;  %v9093_v35 = vld [vmem:[#allocation144_spill] sm:$0xff]  ;;  %v9098_v18 = vld [vmem:[#allocation157_spill] sm:$0xff] }
 0x632   :  { %3744 = vst [vmem:[%s8156_s7 + $0x2e0] sm:$0xff] %v3534_v56  ;;  %v3565_v42 = vadd.f32 %v3380_v38, %v3205_v62  ;;  %v3566_v27 = vadd.f32 %v3380_v38, %v3206_v3  ;;  %v3567_v26 = vadd.f32 %v3380_v38, %v3207_v36  ;;  %v3526_v20 = vadd.f32 %v3355_v50, %v3166_v23  ;;  %v9096_v38 = vld [vmem:[#allocation68_spill] sm:$0xff]  ;;  %v9101_v62 = vld [vmem:[#allocation81_spill] sm:$0xff] }
 0x633   :  { %3745 = vst [vmem:[%s8156_s7 + $0x2e8] sm:$0xff] %v3535_v16  ;;  %v3169_v63 = vmul.f32 %v7580_v59, %v9090_v52  ;;  %v3527_v22 = vadd.f32 %v3355_v50, %v3167_v37  ;;  %v3528_v7 = vadd.f32 %v3355_v50, %v3168_v30  ;;  %v3171_v58 = vmul.f32 %v7580_v59, %v9092_v41  ;;  %v9107_v52 = vld [vmem:[#allocation178_spill] sm:$0xff]  ;;  %v9109_v41 = vld [vmem:[#allocation63_spill] sm:$0xff] }
 0x634   :  { %3746 = vst [vmem:[%s8156_s7 + $0x2f0] sm:$0xff] %v3536_v49  ;;  %v3172_v56 = vmul.f32 %v7580_v59, %v9093_v35  ;;  %v3530_v16 = vadd.f32 %v3355_v50, %v3170_v40  ;;  %v9094_v49 = vld [vmem:[#allocation65_spill] sm:$0xff]  ;;  %v9110_v35 = vld [vmem:[#allocation64_spill] sm:$0xff] }
 0x635   :  { %3747 = vst [vmem:[%s8156_s7 + $0x2f8] sm:$0xff] %v3537_v48  ;;  %3439 = vperm.xlu2 %4098, %v2931_v12   ;;  %v3529_v61 = vadd.f32 %v3355_v50, %v3169_v63  ;;  %v3531_v33 = vadd.f32 %v3355_v50, %v3171_v58  ;;  %v9095_v48 = vld [vmem:[#allocation67_spill] sm:$0xff] }
 0x636   :  { %3748 = vst [vmem:[%s8156_s7 + $0x300] sm:$0xff] %v3538_v14  ;;  %v3015_v34 = vpop.permute.xlu1 %3014  ;;  %v3035_v8 = vpop.permute.xlu2 %3034  ;;  %v3532_v4 = vadd.f32 %v3355_v50, %v3172_v56  ;;  %v9097_v14 = vld [vmem:[#allocation169_spill] sm:$0xff] }
 0x637   :  { %3749 = vst.msk [vmem:[%s8156_s7 + $0x308] sm:$0xff] %vm117_vm0, %v3539_v43  ;;  %v7667_v19 = vpop.permute.xlu0 %3009  ;;  %v3194_v9 = vmul.f32 %v3015_v34, %v9094_v49  ;;  %v3195_v59 = vmul.f32 %v3015_v34, %v9095_v48  ;;  %v3196_v13 = vmul.f32 %v3015_v34, %v9096_v38  ;;  %v3197_v0 = vmul.f32 %v3015_v34, %v9097_v14  ;;  %v9113_v38 = vld [vmem:[#allocation154_spill] sm:$0xff]  ;;  %v9114_v14 = vld [vmem:[#allocation155_spill] sm:$0xff] }
 0x638   :  { %3771 = vst [vmem:[%s8156_s7 + $0x3b8] sm:$0xff] %v3561_v1  ;;  %v3198_v43 = vmul.f32 %v3015_v34, %v9098_v18  ;;  %v3199_v54 = vmul.f32 %v3015_v34, %v9099_v53  ;;  %v3200_v31 = vmul.f32 %v3015_v34, %v9100_v25  ;;  %v3223_v3 = vmul.f32 %v3035_v8, %v9102_v15  ;;  %v9103_v34 = vld [vmem:[#allocation84_spill] sm:$0xff] }
 0x639   :  { %3772 = vst [vmem:[%s8156_s7 + $0x3c0] sm:$0xff] %v3562_v5  ;;  %v3224_v21 = vmul.f32 %v3035_v8, %v9103_v34  ;;  %v3226_v37 = vmul.f32 %v3035_v8, %v9105_v39  ;;  %v3227_v30 = vmul.f32 %v3035_v8, %v9106_v47  ;;  %v3228_v63 = vmul.f32 %v3035_v8, %v9107_v52  ;;  %v9117_v25 = vld [vmem:[#allocation80_spill] sm:$0xff]  ;;  %v9122_v39 = vld [vmem:[#allocation22_spill] sm:$0xff] }
 0x63a   :  { %3773 = vst [vmem:[%s8156_s7 + $0x3c8] sm:$0xff] %v3563_v51  ;;  %v3222_v51 = vmul.f32 %v3035_v8, %v9101_v62  ;;  %v3187_v40 = vmul.f32 %v7667_v19, %v9108_v2  ;;  %v3188_v58 = vmul.f32 %v7667_v19, %v9109_v41  ;;  %v3189_v56 = vmul.f32 %v7667_v19, %v9110_v35  ;;  %v9123_v47 = vld [vmem:[#allocation50_spill] sm:$0xff]  ;;  %v9126_v41 = vld [vmem:[#allocation193_spill] sm:$0xff]  ;;  %v9127_v35 = vld [vmem:[#allocation195_spill] sm:$0xff] }
 0x63b   :  { %3774 = vst [vmem:[%s8156_s7 + $0x3d0] sm:$0xff] %v3564_v17 }
 0x63c   :  { %3775 = vst [vmem:[%s8156_s7 + $0x3d8] sm:$0xff] %v3565_v42  ;;  %v9104_v42 = vld [vmem:[#allocation186_spill] sm:$0xff] }
 0x63d   :  { %3776 = vst [vmem:[%s8156_s7 + $0x3e0] sm:$0xff] %v3566_v27  ;;  %v3225_v45 = vmul.f32 %v3035_v8, %v9104_v42 }
 0x63e   :  { %3777 = vst.msk [vmem:[%s8156_s7 + $0x3e8] sm:$0xff] %vm117_vm0, %v3567_v26  ;;  %v3375_v32 = vpop.permute.xlu1 %3374  ;;  %v3395_v60 = vpop.permute.xlu2 %3394 }
 0x63f   :  { %3736 = vst [vmem:[%s8156_s7 + $0x2a0] sm:$0xff] %v3526_v20  ;;  %v3554_v57 = vadd.f32 %v3375_v32, %v3194_v9  ;;  %v3555_v50 = vadd.f32 %v3375_v32, %v3195_v59  ;;  %v3556_v55 = vadd.f32 %v3375_v32, %v3196_v13  ;;  %v3557_v1 = vadd.f32 %v3375_v32, %v3197_v0  ;;  %v3370_v24 = vpop.permute.xlu0 %3369 }
 0x640   :  { %3737 = vst [vmem:[%s8156_s7 + $0x2a8] sm:$0xff] %v3527_v22  ;;  %v3558_v5 = vadd.f32 %v3375_v32, %v3198_v43  ;;  %v3559_v12 = vadd.f32 %v3375_v32, %v3199_v54  ;;  %v3560_v17 = vadd.f32 %v3375_v32, %v3200_v31  ;;  %v3582_v36 = vadd.f32 %v3395_v60, %v3222_v51  ;;  %v9111_v32 = vld [vmem:[#allocation164_spill] sm:$0xff]  ;;  %v9119_v51 = vld [vmem:[#allocation171_spill] sm:$0xff] }
 0x641   :  { %3738 = vst [vmem:[%s8156_s7 + $0x2b0] sm:$0xff] %v3528_v7  ;;  %v3583_v23 = vadd.f32 %v3395_v60, %v3223_v3  ;;  %v3584_v26 = vadd.f32 %v3395_v60, %v3224_v21  ;;  %v3585_v20 = vadd.f32 %v3395_v60, %v3225_v45  ;;  %v3586_v22 = vadd.f32 %v3395_v60, %v3226_v37 }
 0x642   :  { %3739 = vst [vmem:[%s8156_s7 + $0x2b8] sm:$0xff] %v3529_v61  ;;  %v3587_v7 = vadd.f32 %v3395_v60, %v3227_v30  ;;  %v3588_v61 = vadd.f32 %v3395_v60, %v3228_v63  ;;  %v3548_v49 = vadd.f32 %v3370_v24, %v3188_v58  ;;  %v3549_v59 = vadd.f32 %v3370_v24, %v3189_v56  ;;  %v9118_v60 = vld [vmem:[#allocation181_spill] sm:$0xff] }
 0x643   :  { %3740 = vst [vmem:[%s8156_s7 + $0x2c0] sm:$0xff] %v3530_v16  ;;  %v3547_v16 = vadd.f32 %v3370_v24, %v3187_v40  ;;  %v3192_v13 = vmul.f32 %v7667_v19, %v9113_v38  ;;  %v3193_v0 = vmul.f32 %v7667_v19, %v9114_v14 }
 0x644   :  { %3741 = vst [vmem:[%s8156_s7 + $0x2c8] sm:$0xff] %v3531_v33  ;;  %v3190_v33 = vmul.f32 %v7667_v19, %v9111_v32  ;;  %v9128_v32 = vld [vmem:[#allocation194_spill] sm:$0xff] }
 0x645   :  { %3742 = vst.msk [vmem:[%s8156_s7 + $0x2d0] sm:$0xff] %vm117_vm0, %v3532_v4  ;;  %v9112_v4 = vld [vmem:[#allocation153_spill] sm:$0xff]  ;;  %v3552_v43 = vadd.f32 %v3370_v24, %v3192_v13  ;;  %v3553_v54 = vadd.f32 %v3370_v24, %v3193_v0  ;;  %v9130_v13 = vld [vmem:[#allocation75_spill] sm:$0xff] }
 0x646   :  { %3764 = vst [vmem:[%s8156_s7 + $0x380] sm:$0xff] %v3554_v57  ;;  %v3030_v27 = vpop.permute.xlu1 %3029  ;;  %v3050_v9 = vpop.permute.xlu2 %3049  ;;  %v3191_v48 = vmul.f32 %v7667_v19, %v9112_v4  ;;  %v3550_v57 = vadd.f32 %v3370_v24, %v3190_v33  ;;  %v9129_v4 = vld [vmem:[#allocation73_spill] sm:$0xff] }
 0x647   :  { %3765 = vst [vmem:[%s8156_s7 + $0x388] sm:$0xff] %v3555_v50  ;;  %v7758_v8 = vpop.permute.xlu0 %3024  ;;  %v3217_v31 = vmul.f32 %v3030_v27, %v9117_v25  ;;  %v3218_v62 = vmul.f32 %v3030_v27, %v9118_v60  ;;  %v3243_v37 = vmul.f32 %v3050_v9, %v9122_v39  ;;  %v3244_v30 = vmul.f32 %v3050_v9, %v9123_v47  ;;  %v9134_v25 = vld [vmem:[#allocation167_spill] sm:$0xff]  ;;  %v9135_v60 = vld [vmem:[#allocation168_spill] sm:$0xff] }
 0x648   :  { %3766 = vst [vmem:[%s8156_s7 + $0x390] sm:$0xff] %v3556_v55  ;;  %v3551_v50 = vadd.f32 %v3370_v24, %v3191_v48  ;;  %v9115_v55 = vld [vmem:[#allocation77_spill] sm:$0xff]  ;;  %v3247_v58 = vmul.f32 %v3050_v9, %v9126_v41  ;;  %v3248_v56 = vmul.f32 %v3050_v9, %v9127_v35  ;;  %v3249_v33 = vmul.f32 %v3050_v9, %v9128_v32 }
 0x649   :  { %3767 = vst [vmem:[%s8156_s7 + $0x398] sm:$0xff] %v3557_v1  ;;  %v3215_v53 = vmul.f32 %v3030_v27, %v9115_v55  ;;  %v9116_v1 = vld [vmem:[#allocation79_spill] sm:$0xff]  ;;  %v3208_v48 = vmul.f32 %v7758_v8, %v9129_v4 }
 0x64a   :  { %3768 = vst [vmem:[%s8156_s7 + $0x3a0] sm:$0xff] %v3558_v5  ;;  %v3216_v19 = vmul.f32 %v3030_v27, %v9116_v1 }
 0x64b   :  { %3769 = vst [vmem:[%s8156_s7 + $0x3a8] sm:$0xff] %v3559_v12  ;;  %v3219_v12 = vmul.f32 %v3030_v27, %v9119_v51 }
 0x64c   :  { %3770 = vst.msk [vmem:[%s8156_s7 + $0x3b0] sm:$0xff] %vm117_vm0, %v3560_v17  ;;  %v9120_v17 = vld [vmem:[#allocation173_spill] sm:$0xff] }
 0x64d   :  { %3792 = vst [vmem:[%s8156_s7 + $0x460] sm:$0xff] %v3582_v36  ;;  %v3220_v34 = vmul.f32 %v3030_v27, %v9120_v17  ;;  %v9121_v36 = vld [vmem:[#allocation172_spill] sm:$0xff] }
 0x64e   :  { %3793 = vst [vmem:[%s8156_s7 + $0x468] sm:$0xff] %v3583_v23  ;;  %v3390_v18 = vpop.permute.xlu1 %3389  ;;  %v3221_v42 = vmul.f32 %v3030_v27, %v9121_v36  ;;  %v3410_v23 = vpop.permute.xlu2 %3409  ;;  %v9124_v27 = vld [vmem:[#allocation78_spill] sm:$0xff]  ;;  %v9138_v36 = vld [vmem:[#allocation92_spill] sm:$0xff] }
 0x64f   :  { %3794 = vst [vmem:[%s8156_s7 + $0x470] sm:$0xff] %v3584_v26  ;;  %v3575_v5 = vadd.f32 %v3390_v18, %v3215_v53  ;;  %v3576_v24 = vadd.f32 %v3390_v18, %v3216_v19  ;;  %v3577_v15 = vadd.f32 %v3390_v18, %v3217_v31  ;;  %v3385_v3 = vpop.permute.xlu0 %3384  ;;  %v3578_v21 = vadd.f32 %v3390_v18, %v3218_v62 }
 0x650   :  { %3795 = vst [vmem:[%s8156_s7 + $0x478] sm:$0xff] %v3585_v20  ;;  %v3579_v45 = vadd.f32 %v3390_v18, %v3219_v12  ;;  %v3580_v26 = vadd.f32 %v3390_v18, %v3220_v34  ;;  %v3581_v20 = vadd.f32 %v3390_v18, %v3221_v42  ;;  %v3245_v52 = vmul.f32 %v3050_v9, %v9124_v27  ;;  %v9132_v18 = vld [vmem:[#allocation177_spill] sm:$0xff] }
 0x651   :  { %3796 = vst [vmem:[%s8156_s7 + $0x480] sm:$0xff] %v3586_v22  ;;  %v3603_v63 = vadd.f32 %v3410_v23, %v3243_v37  ;;  %v9125_v22 = vld [vmem:[#allocation199_spill] sm:$0xff]  ;;  %v3604_v40 = vadd.f32 %v3410_v23, %v3244_v30  ;;  %v3609_v14 = vadd.f32 %v3410_v23, %v3249_v33  ;;  %v3213_v31 = vmul.f32 %v7758_v8, %v9134_v25 }
 0x652   :  { %3797 = vst [vmem:[%s8156_s7 + $0x488] sm:$0xff] %v3587_v7  ;;  %v3246_v2 = vmul.f32 %v3050_v9, %v9125_v22  ;;  %v9131_v9 = vld [vmem:[#allocation76_spill] sm:$0xff]  ;;  %v3214_v62 = vmul.f32 %v7758_v8, %v9135_v60 }
 0x653   :  { %3798 = vst.msk [vmem:[%s8156_s7 + $0x490] sm:$0xff] %vm117_vm0, %v3588_v61  ;;  %v3605_v61 = vadd.f32 %v3410_v23, %v3245_v52  ;;  %v3210_v0 = vmul.f32 %v7758_v8, %v9131_v9  ;;  %v3573_v12 = vadd.f32 %v3385_v3, %v3213_v31  ;;  %v9149_v31 = vld [vmem:[#allocation183_spill] sm:$0xff] }
 0x654   :  { %3757 = vst [vmem:[%s8156_s7 + $0x348] sm:$0xff] %v3547_v16  ;;  %v3606_v16 = vadd.f32 %v3410_v23, %v3246_v2  ;;  %v3574_v34 = vadd.f32 %v3385_v3, %v3214_v62 }
 0x655   :  { %3758 = vst [vmem:[%s8156_s7 + $0x350] sm:$0xff] %v3548_v49  ;;  %v3607_v49 = vadd.f32 %v3410_v23, %v3247_v58  ;;  %v3570_v19 = vadd.f32 %v3385_v3, %v3210_v0 }
 0x656   :  { %3759 = vst [vmem:[%s8156_s7 + $0x358] sm:$0xff] %v3549_v59  ;;  %v3045_v7 = vpop.permute.xlu1 %3044  ;;  %v3608_v59 = vadd.f32 %v3410_v23, %v3248_v56  ;;  %v3065_v53 = vpop.permute.xlu2 %3064  ;;  %v9139_v23 = vld [vmem:[#allocation196_spill] sm:$0xff] }
 0x657   :  { %3760 = vst [vmem:[%s8156_s7 + $0x360] sm:$0xff] %v3550_v57  ;;  %v7849_v38 = vpop.permute.xlu0 %3039  ;;  %v3209_v57 = vmul.f32 %v7758_v8, %v9130_v13  ;;  %v3238_v42 = vmul.f32 %v3045_v7, %v9138_v36  ;;  %v3239_v39 = vmul.f32 %v3045_v7, %v9139_v23  ;;  %v3264_v41 = vmul.f32 %v3065_v53, %v8941_v46 }
 0x658   :  { %3761 = vst [vmem:[%s8156_s7 + $0x368] sm:$0xff] %v3551_v50  ;;  %v3568_v50 = vadd.f32 %v3385_v3, %v3208_v48  ;;  %v3267_v46 = vmul.f32 %v3065_v53, %v8947_v6  ;;  %v3268_v32 = vmul.f32 %v3065_v53, %v8948_v29  ;;  %v3269_v33 = vmul.f32 %v3065_v53, %v6088_v11  ;;  %v9143_v48 = vld [vmem:[#allocation85_spill] sm:$0xff]  ;;  %v9144_v11 = vld [vmem:[#allocation87_spill] sm:$0xff] }
 0x659   :  { %3762 = vst [vmem:[%s8156_s7 + $0x370] sm:$0xff] %v3552_v43  ;;  %v3211_v43 = vmul.f32 %v7758_v8, %v9132_v18  ;;  %v3569_v55 = vadd.f32 %v3385_v3, %v3209_v57  ;;  %v3230_v57 = vmul.f32 %v7849_v38, %v9144_v11 }
 0x65a   :  { %3763 = vst.msk [vmem:[%s8156_s7 + $0x378] sm:$0xff] %vm117_vm0, %v3553_v54  ;;  %v9133_v54 = vld [vmem:[#allocation165_spill] sm:$0xff] }
 0x65b   :  { %3785 = vst [vmem:[%s8156_s7 + $0x428] sm:$0xff] %v3575_v5  ;;  %v3212_v1 = vmul.f32 %v7758_v8, %v9133_v54  ;;  %v3571_v5 = vadd.f32 %v3385_v3, %v3211_v43 }
 0x65c   :  { %3786 = vst [vmem:[%s8156_s7 + $0x430] sm:$0xff] %v3576_v24 }
 0x65d   :  { %3787 = vst [vmem:[%s8156_s7 + $0x438] sm:$0xff] %v3577_v15  ;;  %v3572_v24 = vadd.f32 %v3385_v3, %v3212_v1  ;;  %v9136_v15 = vld [vmem:[#allocation89_spill] sm:$0xff]  ;;  %v9148_v1 = vld [vmem:[#allocation184_spill] sm:$0xff] }
 0x65e   :  { %3788 = vst [vmem:[%s8156_s7 + $0x440] sm:$0xff] %v3578_v21  ;;  %v3405_v51 = vpop.permute.xlu1 %3404  ;;  %v3236_v17 = vmul.f32 %v3045_v7, %v9136_v15  ;;  %v9137_v21 = vld [vmem:[#allocation91_spill] sm:$0xff] }
 0x65f   :  { %3789 = vst [vmem:[%s8156_s7 + $0x448] sm:$0xff] %v3579_v45  ;;  %v3237_v8 = vmul.f32 %v3045_v7, %v9137_v21  ;;  %v3400_v37 = vpop.permute.xlu0 %3399  ;;  %v3598_v30 = vadd.f32 %v3405_v51, %v3238_v42  ;;  %v3599_v52 = vadd.f32 %v3405_v51, %v3239_v39  ;;  %v9153_v42 = vld [vmem:[#allocation208_spill] sm:$0xff]  ;;  %v9154_v39 = vld [vmem:[#allocation203_spill] sm:$0xff] }
 0x660   :  { %3790 = vst [vmem:[%s8156_s7 + $0x450] sm:$0xff] %v3580_v26  ;;  %v3596_v45 = vadd.f32 %v3405_v51, %v3236_v17  ;;  %v9140_v26 = vld [vmem:[#allocation187_spill] sm:$0xff]  ;;  %v3590_v43 = vadd.f32 %v3400_v37, %v3230_v57  ;;  %v9151_v17 = vld [vmem:[#allocation58_spill] sm:$0xff] }
 0x661   :  { %3791 = vst.msk [vmem:[%s8156_s7 + $0x458] sm:$0xff] %vm117_vm0, %v3581_v20  ;;  %v3597_v3 = vadd.f32 %v3405_v51, %v3237_v8  ;;  %v3240_v47 = vmul.f32 %v3045_v7, %v9140_v26  ;;  %v9141_v20 = vld [vmem:[#allocation189_spill] sm:$0xff] }
 0x662   :  { %3813 = vst [vmem:[%s8156_s7 + $0x508] sm:$0xff] %v3603_v63  ;;  %v3241_v27 = vmul.f32 %v3045_v7, %v9141_v20  ;;  %v9142_v63 = vld [vmem:[#allocation188_spill] sm:$0xff]  ;;  %v9155_v26 = vld [vmem:[#allocation205_spill] sm:$0xff] }
 0x663   :  { %3814 = vst [vmem:[%s8156_s7 + $0x510] sm:$0xff] %v3604_v40  ;;  %v3242_v22 = vmul.f32 %v3045_v7, %v9142_v63  ;;  %v3600_v2 = vadd.f32 %v3405_v51, %v3240_v47  ;;  %v3425_v40 = vpop.permute.xlu2 %3424  ;;  %v3266_v7 = vmul.f32 %v3065_v53, %v8946_v44  ;;  %v9156_v20 = vld [vmem:[#allocation204_spill] sm:$0xff]  ;;  %v9157_v63 = vld [vmem:[#allocation26_spill] sm:$0xff] }
 0x664   :  { %3815 = vst [vmem:[%s8156_s7 + $0x518] sm:$0xff] %v3605_v61  ;;  %v3601_v58 = vadd.f32 %v3405_v51, %v3241_v27  ;;  %v3265_v61 = vmul.f32 %v3065_v53, %v8942_v10  ;;  %v3624_v56 = vadd.f32 %v3425_v40, %v3264_v41  ;;  %v3627_v6 = vadd.f32 %v3425_v40, %v3267_v46 }
 0x665   :  { %3816 = vst [vmem:[%s8156_s7 + $0x520] sm:$0xff] %v3606_v16  ;;  %v3602_v35 = vadd.f32 %v3405_v51, %v3242_v22  ;;  %v3626_v44 = vadd.f32 %v3425_v40, %v3266_v7  ;;  %v3628_v4 = vadd.f32 %v3425_v40, %v3268_v32  ;;  %v3629_v13 = vadd.f32 %v3425_v40, %v3269_v33  ;;  %v9150_v51 = vld [vmem:[#allocation30_spill] sm:$0xff] }
 0x666   :  { %3817 = vst [vmem:[%s8156_s7 + $0x528] sm:$0xff] %v3607_v49  ;;  %v3625_v16 = vadd.f32 %v3425_v40, %v3265_v61  ;;  %v3060_v10 = vpop.permute.xlu1 %3059  ;;  %v3270_v49 = vmul.f32 %v3065_v53, %v6084_v28  ;;  %v9145_v28 = vld [vmem:[#allocation88_spill] sm:$0xff]  ;;  %v9159_v61 = vld [vmem:[#allocation82_spill] sm:$0xff] }
 0x667   :  { %3818 = vst [vmem:[%s8156_s7 + $0x530] sm:$0xff] %v3608_v59  ;;  %v7940_v29 = vpop.permute.xlu0 %3054  ;;  %v3229_v59 = vmul.f32 %v7849_v38, %v9143_v48  ;;  %v3231_v9 = vmul.f32 %v7849_v38, %v9145_v28  ;;  %v3262_v47 = vmul.f32 %v3060_v10, %v9155_v26  ;;  %v3263_v27 = vmul.f32 %v3060_v10, %v9156_v20 }
 0x668   :  { %3819 = vst.msk [vmem:[%s8156_s7 + $0x538] sm:$0xff] %vm117_vm0, %v3609_v14  ;;  %v3630_v14 = vadd.f32 %v3425_v40, %v3270_v49  ;;  %v3250_v22 = vmul.f32 %v7940_v29, %v9157_v63  ;;  %v9158_v40 = vld [vmem:[#allocation54_spill] sm:$0xff]  ;;  %v9162_v49 = vld [vmem:[#allocation201_spill] sm:$0xff] }
 0x669   :  { %3778 = vst [vmem:[%s8156_s7 + $0x3f0] sm:$0xff] %v3568_v50  ;;  %v3589_v0 = vadd.f32 %v3400_v37, %v3229_v59  ;;  %v9146_v50 = vld [vmem:[#allocation191_spill] sm:$0xff]  ;;  %v3591_v54 = vadd.f32 %v3400_v37, %v3231_v9  ;;  %v3251_v41 = vmul.f32 %v7940_v29, %v9158_v40  ;;  %v9163_v59 = vld [vmem:[#allocation200_spill] sm:$0xff] }
 0x66a   :  { %3779 = vst [vmem:[%s8156_s7 + $0x3f8] sm:$0xff] %v3569_v55  ;;  %v3232_v18 = vmul.f32 %v7849_v38, %v9146_v50  ;;  %v9147_v55 = vld [vmem:[#allocation182_spill] sm:$0xff] }
 0x66b   :  { %3780 = vst [vmem:[%s8156_s7 + $0x400] sm:$0xff] %v3570_v19  ;;  %v3233_v53 = vmul.f32 %v7849_v38, %v9147_v55  ;;  %v3234_v19 = vmul.f32 %v7849_v38, %v9148_v1  ;;  %v9167_v55 = vld [vmem:[#allocation101_spill] sm:$0xff]  ;;  %v9168_v1 = vld [vmem:[#allocation223_spill] sm:$0xff] }
 0x66c   :  { %3781 = vst [vmem:[%s8156_s7 + $0x408] sm:$0xff] %v3571_v5  ;;  %v3592_v25 = vadd.f32 %v3400_v37, %v3232_v18  ;;  %v3235_v5 = vmul.f32 %v7849_v38, %v9149_v31  ;;  %v3258_v38 = vmul.f32 %v3060_v10, %v9151_v17  ;;  %v9166_v18 = vld [vmem:[#allocation74_spill] sm:$0xff] }
 0x66d   :  { %3782 = vst [vmem:[%s8156_s7 + $0x410] sm:$0xff] %v3572_v24  ;;  %v3593_v60 = vadd.f32 %v3400_v37, %v3233_v53  ;;  %v3594_v24 = vadd.f32 %v3400_v37, %v3234_v19 }
 0x66e   :  { %3783 = vst [vmem:[%s8156_s7 + $0x418] sm:$0xff] %v3573_v12  ;;  %v3420_v62 = vpop.permute.xlu1 %3419  ;;  %v3257_v12 = vmul.f32 %v3060_v10, %v9150_v51  ;;  %v3595_v15 = vadd.f32 %v3400_v37, %v3235_v5  ;;  %v9169_v5 = vld [vmem:[#allocation224_spill] sm:$0xff] }
 0x66f   :  { %3784 = vst.msk [vmem:[%s8156_s7 + $0x420] sm:$0xff] %vm117_vm0, %v3574_v34  ;;  %v9152_v34 = vld [vmem:[#allocation86_spill] sm:$0xff]  ;;  %v3415_v36 = vpop.permute.xlu0 %3414  ;;  %v3618_v23 = vadd.f32 %v3420_v62, %v3258_v38  ;;  %v9171_v38 = vld [vmem:[#allocation225_spill] sm:$0xff] }
 0x670   :  { %3806 = vst [vmem:[%s8156_s7 + $0x4d0] sm:$0xff] %v3596_v45  ;;  %v3259_v21 = vmul.f32 %v3060_v10, %v9152_v34  ;;  %v3617_v8 = vadd.f32 %v3420_v62, %v3257_v12  ;;  %v3260_v45 = vmul.f32 %v3060_v10, %v9153_v42  ;;  %v3610_v7 = vadd.f32 %v3415_v36, %v3250_v22  ;;  %v9170_v12 = vld [vmem:[#allocation226_spill] sm:$0xff]  ;;  %v9177_v22 = vld [vmem:[#allocation213_spill] sm:$0xff] }
 0x671   :  { %3807 = vst [vmem:[%s8156_s7 + $0x4d8] sm:$0xff] %v3597_v3  ;;  %v3261_v3 = vmul.f32 %v3060_v10, %v9154_v39 }
 0x672   :  { %3808 = vst [vmem:[%s8156_s7 + $0x4e0] sm:$0xff] %v3598_v30  ;;  %v3619_v37 = vadd.f32 %v3420_v62, %v3259_v21  ;;  %v3620_v30 = vadd.f32 %v3420_v62, %v3260_v45 }
 0x673   :  { %3809 = vst [vmem:[%s8156_s7 + $0x4e8] sm:$0xff] %v3599_v52  ;;  %v3621_v52 = vadd.f32 %v3420_v62, %v3261_v3  ;;  %v9174_v3 = vld [vmem:[#allocation215_spill] sm:$0xff] }
 0x674   :  { %3810 = vst [vmem:[%s8156_s7 + $0x4f0] sm:$0xff] %v3600_v2  ;;  %v3622_v2 = vadd.f32 %v3420_v62, %v3262_v47  ;;  %v9175_v47 = vld [vmem:[#allocation212_spill] sm:$0xff] }
 0x675   :  { %3811 = vst [vmem:[%s8156_s7 + $0x4f8] sm:$0xff] %v3601_v58  ;;  %v3623_v58 = vadd.f32 %v3420_v62, %v3263_v27  ;;  %v9176_v27 = vld [vmem:[#allocation214_spill] sm:$0xff] }
 0x676   :  { %3812 = vst.msk [vmem:[%s8156_s7 + $0x500] sm:$0xff] %vm117_vm0, %v3602_v35  ;;  %v3252_v35 = vmul.f32 %v7940_v29, %v9159_v61  ;;  %v9178_v61 = vld [vmem:[#allocation42_spill] sm:$0xff] }
 0x677   :  { %3834 = vst [vmem:[%s8156_s7 + $0x5b0] sm:$0xff] %v3624_v56  ;;  %v9160_v56 = vld [vmem:[#allocation202_spill] sm:$0xff] }
 0x678   :  { %3835 = vst [vmem:[%s8156_s7 + $0x5b8] sm:$0xff] %v3625_v16  ;;  %v3253_v46 = vmul.f32 %v7940_v29, %v9160_v56  ;;  %v3611_v16 = vadd.f32 %v3415_v36, %v3251_v41  ;;  %v9179_v56 = vld [vmem:[#allocation70_spill] sm:$0xff] }
 0x679   :  { %3836 = vst [vmem:[%s8156_s7 + $0x5c0] sm:$0xff] %v3626_v44  ;;  %v9161_v44 = vld [vmem:[#allocation198_spill] sm:$0xff] }
 0x67a   :  { %3837 = vst [vmem:[%s8156_s7 + $0x5c8] sm:$0xff] %v3627_v6  ;;  %v3254_v33 = vmul.f32 %v7940_v29, %v9161_v44  ;;  %v3612_v6 = vadd.f32 %v3415_v36, %v3252_v35  ;;  %v3613_v48 = vadd.f32 %v3415_v36, %v3253_v46  ;;  %v9181_v44 = vld [vmem:[#allocation218_spill] sm:$0xff] }
 0x67b   :  { %3838 = vst [vmem:[%s8156_s7 + $0x5d0] sm:$0xff] %v3628_v4  ;;  %v3255_v4 = vmul.f32 %v7940_v29, %v9162_v49  ;;  %v9182_v49 = vld [vmem:[#allocation217_spill] sm:$0xff] }
 0x67c   :  { %3839 = vst [vmem:[%s8156_s7 + $0x5d8] sm:$0xff] %v3629_v13  ;;  %v3256_v13 = vmul.f32 %v7940_v29, %v9163_v59  ;;  %v3614_v11 = vadd.f32 %v3415_v36, %v3254_v33  ;;  %v9164_v29 = vld [vmem:[#allocation38_spill] sm:$0xff]  ;;  %v9183_v59 = vld [vmem:[#allocation220_spill] sm:$0xff] }
 0x67d   :  { %3840 = vst.msk [vmem:[%s8156_s7 + $0x5e0] sm:$0xff] %vm117_vm0, %v3630_v14  ;;  %v3615_v57 = vadd.f32 %v3415_v36, %v3255_v4 }
 0x67e   :  { %3799 = vst [vmem:[%s8156_s7 + $0x498] sm:$0xff] %v3589_v0  ;;  %v3616_v14 = vadd.f32 %v3415_v36, %v3256_v13  ;;  %v9165_v0 = vld [vmem:[#allocation46_spill] sm:$0xff] }
 0x67f   :  { %3800 = vst [vmem:[%s8156_s7 + $0x4a0] sm:$0xff] %v3590_v43  ;;  %v9172_v36 = vld [vmem:[#allocation66_spill] sm:$0xff] }
 0x680   :  { %3801 = vst [vmem:[%s8156_s7 + $0x4a8] sm:$0xff] %v3591_v54 }
 0x681   :  { %3802 = vst [vmem:[%s8156_s7 + $0x4b0] sm:$0xff] %v3592_v25 }
 0x682   :  { %3803 = vst [vmem:[%s8156_s7 + $0x4b8] sm:$0xff] %v3593_v60 }
 0x683   :  { %3804 = vst [vmem:[%s8156_s7 + $0x4c0] sm:$0xff] %v3594_v24 }
 0x684   :  { %3805 = vst.msk [vmem:[%s8156_s7 + $0x4c8] sm:$0xff] %vm117_vm0, %v3595_v15 }
 0x685   :  { %3827 = vst [vmem:[%s8156_s7 + $0x578] sm:$0xff] %v3617_v8 }
 0x686   :  { %3828 = vst [vmem:[%s8156_s7 + $0x580] sm:$0xff] %v3618_v23  ;;  %v9173_v23 = vld [vmem:[#allocation93_spill] sm:$0xff] }
 0x687   :  { %3829 = vst [vmem:[%s8156_s7 + $0x588] sm:$0xff] %v3619_v37  ;;  %v3080_v10 = vpop.permute.xlu2 %3079 }
 0x688   :  { %3830 = vst [vmem:[%s8156_s7 + $0x590] sm:$0xff] %v3620_v30  ;;  %v3285_v50 = vmul.f32 %v3080_v10, %v9165_v0  ;;  %v3286_v43 = vmul.f32 %v3080_v10, %v9166_v18  ;;  %v3287_v53 = vmul.f32 %v3080_v10, %v9167_v55  ;;  %v3288_v19 = vmul.f32 %v3080_v10, %v9168_v1 }
 0x689   :  { %3831 = vst [vmem:[%s8156_s7 + $0x598] sm:$0xff] %v3621_v52  ;;  %v3070_v32 = vpop.permute.xlu0 %3069  ;;  %v3289_v60 = vmul.f32 %v3080_v10, %v9169_v5  ;;  %v3290_v15 = vmul.f32 %v3080_v10, %v9170_v12  ;;  %v3291_v34 = vmul.f32 %v3080_v10, %v9171_v38 }
 0x68a   :  { %3832 = vst [vmem:[%s8156_s7 + $0x5a0] sm:$0xff] %v3622_v2  ;;  %v3271_v28 = vmul.f32 %v3070_v32, %v9164_v29  ;;  %v3075_v9 = vpop.permute.xlu1 %3074  ;;  %v3272_v42 = vmul.f32 %v3070_v32, %v9172_v36  ;;  %v3273_v39 = vmul.f32 %v3070_v32, %v9173_v23  ;;  %v3274_v37 = vmul.f32 %v3070_v32, %v9174_v3 }
 0x68b   :  { %3833 = vst.msk [vmem:[%s8156_s7 + $0x5a8] sm:$0xff] %vm117_vm0, %v3623_v58  ;;  %v3275_v30 = vmul.f32 %v3070_v32, %v9175_v47  ;;  %v3276_v52 = vmul.f32 %v3070_v32, %v9176_v27  ;;  %v3277_v2 = vmul.f32 %v3070_v32, %v9177_v22  ;;  %v3278_v35 = vmul.f32 %v3075_v9, %v9178_v61 }
 0x68c   :  { %3820 = vst [vmem:[%s8156_s7 + $0x540] sm:$0xff] %v3610_v7  ;;  %v3279_v46 = vmul.f32 %v3075_v9, %v9179_v56  ;;  %v3281_v33 = vmul.f32 %v3075_v9, %v9181_v44  ;;  %v3282_v4 = vmul.f32 %v3075_v9, %v9182_v49  ;;  %v3283_v13 = vmul.f32 %v3075_v9, %v9183_v59 }
 0x68d   :  { %3821 = vst [vmem:[%s8156_s7 + $0x548] sm:$0xff] %v3611_v16  ;;  %v9180_v16 = vld [vmem:[#allocation97_spill] sm:$0xff] }
 0x68e   :  { %3822 = vst [vmem:[%s8156_s7 + $0x550] sm:$0xff] %v3612_v6  ;;  %v3280_v10 = vmul.f32 %v3075_v9, %v9180_v16 }
 0x68f   :  { %3823 = vst [vmem:[%s8156_s7 + $0x558] sm:$0xff] %v3613_v48  ;;  %v3440_v25 = vpop.permute.xlu2 %3439 }
 0x690   :  { %3824 = vst [vmem:[%s8156_s7 + $0x560] sm:$0xff] %v3614_v11  ;;  %v3645_v62 = vadd.f32 %v3440_v25, %v3285_v50  ;;  %v3646_v24 = vadd.f32 %v3440_v25, %v3286_v43  ;;  %v3647_v51 = vadd.f32 %v3440_v25, %v3287_v53  ;;  %v3648_v17 = vadd.f32 %v3440_v25, %v3288_v19 }
 0x691   :  { %3825 = vst [vmem:[%s8156_s7 + $0x568] sm:$0xff] %v3615_v57  ;;  %v3430_v54 = vpop.permute.xlu0 %3429  ;;  %v3649_v21 = vadd.f32 %v3440_v25, %v3289_v60  ;;  %v3650_v8 = vadd.f32 %v3440_v25, %v3290_v15  ;;  %v3651_v45 = vadd.f32 %v3440_v25, %v3291_v34  ;;  %v9184_v57 = vld [vmem:[#allocation219_spill] sm:$0xff] }
 0x692   :  { %3826 = vst.msk [vmem:[%s8156_s7 + $0x570] sm:$0xff] %vm117_vm0, %v3616_v14  ;;  %v3631_v31 = vadd.f32 %v3430_v54, %v3271_v28  ;;  %v3632_v26 = vadd.f32 %v3430_v54, %v3272_v42  ;;  %v3633_v20 = vadd.f32 %v3430_v54, %v3273_v39  ;;  %v3634_v63 = vadd.f32 %v3430_v54, %v3274_v37  ;;  %v3435_v41 = vpop.permute.xlu1 %3434 }
 0x693   :  { %3855 = vst [vmem:[%s8156_s7 + $0x658] sm:$0xff] %v3645_v62  ;;  %v3635_v40 = vadd.f32 %v3430_v54, %v3275_v30  ;;  %v3636_v58 = vadd.f32 %v3430_v54, %v3276_v52  ;;  %v3637_v7 = vadd.f32 %v3430_v54, %v3277_v2  ;;  %v3638_v32 = vadd.f32 %v3435_v41, %v3278_v35 }
 0x694   :  { %3841 = vst [vmem:[%s8156_s7 + $0x5e8] sm:$0xff] %v3631_v31  ;;  %v3639_v6 = vadd.f32 %v3435_v41, %v3279_v46  ;;  %v3640_v48 = vadd.f32 %v3435_v41, %v3280_v10  ;;  %v3641_v11 = vadd.f32 %v3435_v41, %v3281_v33  ;;  %v3284_v14 = vmul.f32 %v3075_v9, %v9184_v57 }
 0x695   :  { %3856 = vst [vmem:[%s8156_s7 + $0x660] sm:$0xff] %v3646_v24  ;;  %v3642_v29 = vadd.f32 %v3435_v41, %v3282_v4  ;;  %v3643_v28 = vadd.f32 %v3435_v41, %v3283_v13 }
 0x696   :  { %3857 = vst [vmem:[%s8156_s7 + $0x668] sm:$0xff] %v3647_v51  ;;  %v3644_v0 = vadd.f32 %v3435_v41, %v3284_v14 }
 0x697   :  { %3858 = vst [vmem:[%s8156_s7 + $0x670] sm:$0xff] %v3648_v17 }
 0x698   :  { %3859 = vst [vmem:[%s8156_s7 + $0x678] sm:$0xff] %v3649_v21 }
 0x699   :  { %3860 = vst [vmem:[%s8156_s7 + $0x680] sm:$0xff] %v3650_v8 }
 0x69a   :  { %3861 = vst.msk [vmem:[%s8156_s7 + $0x688] sm:$0xff] %vm117_vm0, %v3651_v45 }
 0x69b   :  { %3842 = vst [vmem:[%s8156_s7 + $0x5f0] sm:$0xff] %v3632_v26 }
 0x69c   :  { %3843 = vst [vmem:[%s8156_s7 + $0x5f8] sm:$0xff] %v3633_v20 }
 0x69d   :  { %3844 = vst [vmem:[%s8156_s7 + $0x600] sm:$0xff] %v3634_v63 }
 0x69e   :  { %3845 = vst [vmem:[%s8156_s7 + $0x608] sm:$0xff] %v3635_v40 }
 0x69f   :  { %3846 = vst [vmem:[%s8156_s7 + $0x610] sm:$0xff] %v3636_v58 }
 0x6a0   :  { %3847 = vst.msk [vmem:[%s8156_s7 + $0x618] sm:$0xff] %vm117_vm0, %v3637_v7 }
 0x6a1   :  { %3848 = vst [vmem:[%s8156_s7 + $0x620] sm:$0xff] %v3638_v32 }
 0x6a2   :  { %3849 = vst [vmem:[%s8156_s7 + $0x628] sm:$0xff] %v3639_v6 }
 0x6a3   :  { %3850 = vst [vmem:[%s8156_s7 + $0x630] sm:$0xff] %v3640_v48 }
 0x6a4   :  { %3851 = vst [vmem:[%s8156_s7 + $0x638] sm:$0xff] %v3641_v11 }
 0x6a5   :  { %3852 = vst [vmem:[%s8156_s7 + $0x640] sm:$0xff] %v3642_v29 }
 0x6a6   :  { %3853 = vst [vmem:[%s8156_s7 + $0x648] sm:$0xff] %v3643_v28 }
 0x6a7   :  { %3854 = vst.msk [vmem:[%s8156_s7 + $0x650] sm:$0xff] %vm117_vm0, %v3644_v0 }
 0x6a8   :  { %3866 = vsyncpa [#allocation3], 1 }

</bundles_post_ra>
